<compile_context>
chip_gen: v7x
topology: tpu7x:2x2x1
jax: 0.10.0
libtpu: 0.0.40
codegen_flags: <defaults>
</compile_context>

<pallas_src>
import math

import jax
import jax.numpy as jnp
from jax import lax
from jax.experimental import pallas as pl
from jax.experimental.pallas import tpu as pltpu

# ---------------- config (small, consistent with the module) ----------------
D_MODEL = 32          # config.embeddings['out_channels']
N_HEAD = 4            # config.transformer['num_heads']
HEAD_DIM = D_MODEL // N_HEAD
NUM_LAYERS = 2        # config.transformer['num_layers'] -> first block + (NUM_LAYERS-1) encoder layers
CONV_LEN = 3          # config.embeddings['conv_len']
FEATURE_DIM = 4       # config.feature_dim
DIM_FF = 64           # config.transformer['mlp_dim']
N_DEC_LAYERS = 1      # config.decoder_layers
LN_EPS = 1e-5
LANE = 128
# sparse == 'full'  (FullAttention(mask_flag=False) -> attention masks ignored)
# dropout -> identity (inference); embedding_weight=False -> x_in/x_out (positions) unused.


def _round8(n):
    return ((n + 7) // 8) * 8


# ------------------------- static slab layout --------------------------------
def _build_layout():
    w_entries = [
        ("enc_emb_conv", CONV_LEN, D_MODEL), ("enc_emb_feat", FEATURE_DIM, D_MODEL),
        ("dec_emb_conv", CONV_LEN, D_MODEL), ("dec_emb_feat", FEATURE_DIM, D_MODEL),
    ]
    for p in ("att", "dec"):
        for s in ("q", "k", "v", "o"):
            w_entries.append((f"{p}_{s}", D_MODEL, D_MODEL))
    w_entries += [
        ("fc1", D_MODEL, DIM_FF), ("fc2", DIM_FF, D_MODEL),
        ("fc4", D_MODEL, DIM_FF), ("fc5", DIM_FF, D_MODEL),
        ("fc3", D_MODEL, 1),
    ]
    for l in range(NUM_LAYERS - 1):
        for s in ("q", "k", "v", "o"):
            w_entries.append((f"enc{l}_{s}", D_MODEL, D_MODEL))
        w_entries += [(f"enc{l}_w1", D_MODEL, DIM_FF), (f"enc{l}_w2", DIM_FF, D_MODEL)]

    w_offsets, off = {}, 0
    for name, din, dout in w_entries:
        w_offsets[name] = (off, din, dout)
        off += _round8(din)           # 8-aligned row offsets -> tile-aligned ref slices
    w_rows = max(_round8(off), 8)

    b_entries = [("enc_emb_b", D_MODEL), ("dec_emb_b", D_MODEL)]
    for p in ("att", "dec"):
        for s in ("q", "k", "v", "o"):
            b_entries.append((f"{p}_{s}_b", D_MODEL))
    b_entries += [("fc1_b", DIM_FF), ("fc2_b", D_MODEL),
                  ("fc4_b", DIM_FF), ("fc5_b", D_MODEL), ("fc3_b", 1)]
    for n in ("norm1", "norm2", "norm3", "norm5", "norm6", "norm7"):
        b_entries += [(n + "_gamma", D_MODEL), (n + "_beta", D_MODEL)]
    for l in range(NUM_LAYERS - 1):
        for s in ("q", "k", "v", "o"):
            b_entries.append((f"enc{l}_{s}_b", D_MODEL))
        b_entries += [(f"enc{l}_w1_b", DIM_FF), (f"enc{l}_w2_b", D_MODEL),
                      (f"enc{l}_na_gamma", D_MODEL), (f"enc{l}_na_beta", D_MODEL),
                      (f"enc{l}_nb_gamma", D_MODEL), (f"enc{l}_nb_beta", D_MODEL)]

    b_offsets, row = {}, 0
    for name, dout in b_entries:
        b_offsets[name] = (row, dout)   # one row per vector
        row += 1
    b_rows = max(_round8(row), 8)
    return w_entries, w_offsets, w_rows, b_entries, b_offsets, b_rows


W_ENTRIES, W_OFFSETS, W_ROWS, B_ENTRIES, B_OFFSETS, B_ROWS = _build_layout()


# --------------------- deterministic packed parameters -----------------------
def init_packed_params(key):
    """Pack every parameter into two lane-padded f32 slabs (done once, outside jit)."""
    wslab = jnp.zeros((W_ROWS, LANE), jnp.float32)
    bslab = jnp.zeros((B_ROWS, LANE), jnp.float32)
    for i, (name, din, dout) in enumerate(W_ENTRIES):
        off = W_OFFSETS[name][0]
        w = 0.1 * jax.random.normal(jax.random.fold_in(key, i), (din, dout), jnp.float32)
        wslab = wslab.at[off:off + din, 0:dout].set(w)
    for i, (name, dout) in enumerate(B_ENTRIES):
        row = B_OFFSETS[name][0]
        if name.endswith("_gamma"):
            vec = jnp.ones((1, dout), jnp.float32)        # LayerNorm weight
        elif name.endswith("_beta"):
            vec = jnp.zeros((1, dout), jnp.float32)       # LayerNorm bias
        else:
            vec = 0.1 * jax.random.normal(jax.random.fold_in(key, 10_000 + i),
                                          (1, dout), jnp.float32)
        bslab = bslab.at[row:row + 1, 0:dout].set(vec)
    return wslab, bslab


# ------------------------------ fused kernel ----------------------------------
def _make_kernel(B, S_in, S_out, S_res):
    n_in, n_out = B * S_in, B * S_out
    scale = 1.0 / math.sqrt(HEAD_DIM)

    def kernel(yin_ref, yout_ref, fin_ref, fout_ref, w_ref, b_ref, o_ref):
        # --- packed-parameter accessors (static, tile-aligned ref slices) ---
        def W(name):
            off, din, dout = W_OFFSETS[name]
            return w_ref[off:off + din, 0:dout]

        def Bv(name):
            row, dout = B_OFFSETS[name]
            return b_ref[row:row + 1, 0:dout]

        def linear(x, wname, bname):
            return jnp.dot(x, W(wname), preferred_element_type=jnp.float32) + Bv(bname)

        def layernorm(x, name):
            # one pass: two independent cross-lane reductions (overlap in the XLU)
            mu = jnp.mean(x, axis=-1, keepdims=True)
            msq = jnp.mean(x * x, axis=-1, keepdims=True)
            inv = lax.rsqrt(msq - mu * mu + LN_EPS)
            return (x - mu) * inv * Bv(name + "_gamma") + Bv(name + "_beta")

        def ffn(x, w1, b1, w2, b2):
            return linear(jnp.maximum(linear(x, w1, b1), 0.0), w2, b2)

        # --- constant masks / shift matrices (built once per shape, hoisted) ---
        const_cache = {}

        def seg_mask(rows, cols, rgrp, cgrp):
            key = ("seg", rows, cols, rgrp, cgrp)
            if key not in const_cache:
                ri = lax.broadcasted_iota(jnp.int32, (rows, cols), 0)
                ci = lax.broadcasted_iota(jnp.int32, (rows, cols), 1)
                m = None
                for g in range(rows // rgrp):           # static group unroll (no vector div)
                    t = ((ri >= g * rgrp) & (ri < (g + 1) * rgrp) &
                         (ci >= g * cgrp) & (ci < (g + 1) * cgrp))
                    m = t if m is None else (m | t)
                const_cache[key] = jnp.where(m, 1.0, 0.0)
            return const_cache[key]

        def shift_matrix(n_rows, seq, shift):
            # 0/1 matrix: (Sh @ y)[r] = y[r - shift] within the same batch element, else 0
            key = ("shift", n_rows, seq, shift)
            if key not in const_cache:
                ri = lax.broadcasted_iota(jnp.int32, (n_rows, n_rows), 0)
                ci = lax.broadcasted_iota(jnp.int32, (n_rows, n_rows), 1)
                hit = (ci == ri - shift)
                valid = None
                for b in range(B):                       # static batch-boundary guard
                    t = (ri >= b * seq + shift) & (ri < (b + 1) * seq)
                    valid = t if valid is None else (valid | t)
                const_cache[key] = jnp.where(hit & valid, 1.0, 0.0)
            return const_cache[key]

        # --- multi-head attention without per-head lane slicing ---
        def mha_core(q, k, v):
            # All heads at once: head-block-diagonal K/V operands -> full-width matmuls,
            # segmented softmax via one masked-ones matmul.  FullAttention(mask_flag=False).
            sk = k.shape[0]
            hm = seg_mask(N_HEAD * sk, D_MODEL, sk, HEAD_DIM)
            kbd = jnp.concatenate([k] * N_HEAD, axis=0) * hm     # (H*Sk, D)
            vbd = jnp.concatenate([v] * N_HEAD, axis=0) * hm     # (H*Sk, D)
            s = lax.dot_general(q, kbd, (((1,), (1,)), ((), ())),
                                preferred_element_type=jnp.float32) * scale  # (Sq, H*Sk)
            s = s - jnp.max(s, axis=-1, keepdims=True)   # row-constant -> softmax-invariant
            p = jnp.exp(s)
            denom = jnp.dot(p, seg_mask(N_HEAD * sk, N_HEAD * sk, sk, sk),
                            preferred_element_type=jnp.float32)  # per-head sums, replicated
            p = p * pl.reciprocal(denom, approx=True)
            return jnp.dot(p, vbd, preferred_element_type=jnp.float32)  # (Sq, D), heads concat

        def attention(xq, xkv, sq, sk, prefix):
            # Q/K/V/output projections batched over all B*S rows; only the tiny per-batch
            # score/context matmuls are unrolled over B (sublane-aligned row slices).
            q = linear(xq, prefix + "_q", prefix + "_q_b")
            k = linear(xkv, prefix + "_k", prefix + "_k_b")
            v = linear(xkv, prefix + "_v", prefix + "_v_b")
            ctx = jnp.concatenate(
                [mha_core(q[b * sq:(b + 1) * sq, :],
                          k[b * sk:(b + 1) * sk, :],
                          v[b * sk:(b + 1) * sk, :]) for b in range(B)], axis=0)
            return linear(ctx, prefix + "_o", prefix + "_o_b")

        # --- value (causal Conv1d) + feature embedding, fused in-kernel ---
        # TODO(synk): causal zero left-pad + cross-correlation tap order assumed for the
        # Conv1d value embedding; verify against the real Embedding module before loading
        # trained weights.
        def embed(y_col, feat, prefix, n_rows, seq):
            emb = jnp.dot(feat, W(prefix + "_feat"),
                          preferred_element_type=jnp.float32) + Bv(prefix + "_b")
            wc = W(prefix + "_conv")                              # (CONV_LEN, D)
            for j in range(CONV_LEN):
                shift = CONV_LEN - 1 - j
                if shift == 0:
                    ys = y_col
                else:
                    ys = jnp.dot(shift_matrix(n_rows, seq, shift), y_col,
                                 preferred_element_type=jnp.float32)
                emb = emb + ys * wc[j:j + 1, :]                   # rank-1 tap contribution
            return emb

        # ================= forward pass (matches the PyTorch source) =================
        q_in = embed(yin_ref[...], fin_ref[...], "enc_emb", n_in, S_in)      # (B*S_in, D)
        q_dec = embed(yout_ref[...], fout_ref[...], "dec_emb", n_out, S_out)  # (B*S_out, D)

        # first encoder block: output = q_in + norm1(Att(q,q,q)); norm2(output + fc2(relu(fc1)))
        out = q_in + layernorm(attention(q_in, q_in, S_in, S_in, "att"), "norm1")
        out = layernorm(out + ffn(out, "fc1", "fc1_b", "fc2", "fc2_b"), "norm2")

        # stacked encoder: (num_layers - 1) layers
        # TODO(synk): Encoder/TransformerEncoder internals are not in the provided source;
        # modelled Informer-style (self-attn + FFN, post-norm) with per-layer weights.
        for l in range(NUM_LAYERS - 1):
            x1 = layernorm(out + attention(out, out, S_in, S_in, f"enc{l}"), f"enc{l}_na")
            out = layernorm(
                x1 + ffn(x1, f"enc{l}_w1", f"enc{l}_w1_b", f"enc{l}_w2", f"enc{l}_w2_b"),
                f"enc{l}_nb")

        # decoder: self-attention with the shared self.Att weights, then cross-attention
        if N_DEC_LAYERS != 0:
            out_dec = q_dec + layernorm(attention(q_dec, q_dec, S_out, S_out, "att"),
                                        "norm3")
            out = out_dec + attention(out_dec, out, S_out, S_in, "dec")

        # output head: x = y = norm5(out); y = norm6(out + fc5(relu(fc4(y)))); fc3(norm7(x+y))
        x_res = layernorm(out, "norm5")
        y_res = layernorm(out + ffn(x_res, "fc4", "fc4_b", "fc5", "fc5_b"), "norm6")
        final = linear(layernorm(x_res + y_res, "norm7"), "fc3", "fc3_b")   # (B*S_res, 1)
        o_ref[...] = final

    return kernel


# -------------------------------- forward ------------------------------------
def transformer_time_series_forward(wslab, bslab, x_in, y_in, x_out, y_out,
                                    feature_in, feature_out,
                                    attention_masks, dec_mask):
    # Inference: dropout = identity; FullAttention(mask_flag=False) ignores the attention
    # masks; embedding_weight=False (default) -> positional inputs x_in/x_out unused.
    del x_in, x_out, attention_masks, dec_mask

    B, S_in = y_in.shape
    S_out = y_out.shape[1]
    S_res = S_out if N_DEC_LAYERS != 0 else S_in
    n_in, n_out, n_res = B * S_in, B * S_out, B * S_res

    # free (contiguous, row-major) reshapes -> no host-side compute launches
    y_in_col = y_in.reshape(n_in, 1)
    y_out_col = y_out.reshape(n_out, 1)
    feat_in = feature_in.reshape(n_in, FEATURE_DIM)
    feat_out = feature_out.reshape(n_out, FEATURE_DIM)

    kernel = _make_kernel(B, S_in, S_out, S_res)
    out = pl.pallas_call(
        kernel,
        out_shape=jax.ShapeDtypeStruct((n_res, 1), jnp.float32),
        grid=(1,),   # single grid step: whole batch in one invocation
        in_specs=[
            pl.BlockSpec((n_in, 1), lambda i: (0, 0)),
            pl.BlockSpec((n_out, 1), lambda i: (0, 0)),
            pl.BlockSpec((n_in, FEATURE_DIM), lambda i: (0, 0)),
            pl.BlockSpec((n_out, FEATURE_DIM), lambda i: (0, 0)),
            pl.BlockSpec((W_ROWS, LANE), lambda i: (0, 0)),   # packed weight slab
            pl.BlockSpec((B_ROWS, LANE), lambda i: (0, 0)),   # packed bias / LN slab
        ],
        out_specs=pl.BlockSpec((n_res, 1), lambda i: (0, 0)),
        compiler_params=pltpu.CompilerParams(dimension_semantics=("arbitrary",)),
    )(y_in_col, y_out_col, feat_in, feat_out, wslab, bslab)

    return out.reshape(B, S_res, 1)   # contiguous -> free reshape


# --------------------------------- main --------------------------------------
if __name__ == "__main__":
    B, S_IN, S_OUT = 2, 8, 8
    key = jax.random.PRNGKey(0)
    kp, kd = jax.random.split(key)
    wslab, bslab = init_packed_params(kp)

    ks = jax.random.split(kd, 4)
    x_in = jnp.tile(jnp.arange(S_IN, dtype=jnp.float32)[None, :], (B, 1))
    x_out = jnp.tile(jnp.arange(S_OUT, dtype=jnp.float32)[None, :], (B, 1))
    y_in = jax.random.normal(ks[0], (B, S_IN), jnp.float32)
    y_out = jax.random.normal(ks[1], (B, S_OUT), jnp.float32)
    feature_in = jax.random.normal(ks[2], (B, S_IN, FEATURE_DIM), jnp.float32)
    feature_out = jax.random.normal(ks[3], (B, S_OUT, FEATURE_DIM), jnp.float32)
    attention_masks = jnp.zeros((S_IN, S_IN), jnp.float32)
    dec_mask = jnp.zeros((S_OUT, S_OUT), jnp.float32)

    fwd = jax.jit(transformer_time_series_forward)
    out = fwd(wslab, bslab, x_in, y_in, x_out, y_out, feature_in, feature_out,
              attention_masks, dec_mask)
    out = jax.block_until_ready(out)
    assert out.shape == (B, S_OUT, 1) and out.dtype == jnp.float32
    assert bool(jnp.all(jnp.isfinite(out)))
    print("KERNEL_OK")
</pallas_src>

<mosaic_0001>
module attributes {stable_mosaic.version = 11 : i64} {
  func.func @kernel(%arg0: i32, %arg1: memref<16x1xf32, #tpu.memory_space<vmem>>, %arg2: memref<16x1xf32, #tpu.memory_space<vmem>>, %arg3: memref<16x4xf32, #tpu.memory_space<vmem>>, %arg4: memref<16x4xf32, #tpu.memory_space<vmem>>, %arg5: memref<736x128xf32, #tpu.memory_space<vmem>>, %arg6: memref<40x128xf32, #tpu.memory_space<vmem>>, %arg7: memref<16x1xf32, #tpu.memory_space<vmem>>) attributes {dimension_semantics = [#tpu.dimension_semantics<arbitrary>], iteration_bounds = array<i64: 1>, scalar_prefetch = 0 : i64, scratch_operands = 0 : i64, tpu.core_type = #tpu.core_type<tc>, window_params = [{pipeline_mode = #tpu.pipeline_mode<synchronous>, transform_indices = @transform_0, window_bounds = array<i64: 16, 1>}, {pipeline_mode = #tpu.pipeline_mode<synchronous>, transform_indices = @transform_1, window_bounds = array<i64: 16, 1>}, {pipeline_mode = #tpu.pipeline_mode<synchronous>, transform_indices = @transform_2, window_bounds = array<i64: 16, 4>}, {pipeline_mode = #tpu.pipeline_mode<synchronous>, transform_indices = @transform_3, window_bounds = array<i64: 16, 4>}, {pipeline_mode = #tpu.pipeline_mode<synchronous>, transform_indices = @transform_4, window_bounds = array<i64: 736, 128>}, {pipeline_mode = #tpu.pipeline_mode<synchronous>, transform_indices = @transform_5, window_bounds = array<i64: 40, 128>}, {pipeline_mode = #tpu.pipeline_mode<synchronous>, transform_indices = @transform_6, window_bounds = array<i64: 16, 1>}]} {
    %c0 = arith.constant 0 : index
    %c0_0 = arith.constant 0 : index
    %0 = vector.load %arg1[%c0, %c0_0] : memref<16x1xf32, #tpu.memory_space<vmem>>, vector<16x1xf32>
    %c0_1 = arith.constant 0 : index
    %c0_2 = arith.constant 0 : index
    %1 = vector.load %arg3[%c0_1, %c0_2] : memref<16x4xf32, #tpu.memory_space<vmem>>, vector<16x4xf32>
    %c8 = arith.constant 8 : index
    %c0_3 = arith.constant 0 : index
    %2 = vector.load %arg5[%c8, %c0_3] : memref<736x128xf32, #tpu.memory_space<vmem>>, vector<4x32xf32>
    %cst = arith.constant dense<0.000000e+00> : vector<16x32xf32>
    %3 = tpu.matmul %1, %2, %cst {dimension_numbers = #tpu.dot_dimension_numbers<[1], [0], [0], [1], [0, 0, 1, 1], [], []>} : vector<16x4xf32>, vector<4x32xf32>, vector<16x32xf32> -> vector<16x32xf32>
    %c0_4 = arith.constant 0 : index
    %c0_5 = arith.constant 0 : index
    %4 = vector.load %arg6[%c0_4, %c0_5] : memref<40x128xf32, #tpu.memory_space<vmem>>, vector<1x32xf32>
    %5 = vector.broadcast %4 : vector<1x32xf32> to vector<16x32xf32>
    %6 = arith.addf %3, %5 : vector<16x32xf32>
    %c0_6 = arith.constant 0 : index
    %c0_7 = arith.constant 0 : index
    %7 = vector.load %arg5[%c0_6, %c0_7] : memref<736x128xf32, #tpu.memory_space<vmem>>, vector<3x32xf32>
    %8 = tpu.iota {dimensions = array<i32: 0>} : vector<16x16xi32>
    %9 = tpu.iota {dimensions = array<i32: 1>} : vector<16x16xi32>
    %c2_i32 = arith.constant 2 : i32
    %10 = vector.broadcast %c2_i32 : i32 to vector<16x16xi32>
    %11 = arith.subi %8, %10 : vector<16x16xi32>
    %12 = arith.cmpi eq, %9, %11 : vector<16x16xi32>
    %c2_i32_8 = arith.constant 2 : i32
    %13 = vector.broadcast %c2_i32_8 : i32 to vector<16x16xi32>
    %14 = arith.cmpi sge, %8, %13 : vector<16x16xi32>
    %c8_i32 = arith.constant 8 : i32
    %15 = vector.broadcast %c8_i32 : i32 to vector<16x16xi32>
    %16 = arith.cmpi slt, %8, %15 : vector<16x16xi32>
    %17 = arith.andi %14, %16 : vector<16x16xi1>
    %c10_i32 = arith.constant 10 : i32
    %18 = vector.broadcast %c10_i32 : i32 to vector<16x16xi32>
    %19 = arith.cmpi sge, %8, %18 : vector<16x16xi32>
    %c16_i32 = arith.constant 16 : i32
    %20 = vector.broadcast %c16_i32 : i32 to vector<16x16xi32>
    %21 = arith.cmpi slt, %8, %20 : vector<16x16xi32>
    %22 = arith.andi %19, %21 : vector<16x16xi1>
    %23 = arith.ori %17, %22 : vector<16x16xi1>
    %24 = arith.andi %12, %23 : vector<16x16xi1>
    %cst_9 = arith.constant 1.000000e+00 : f32
    %cst_10 = arith.constant 0.000000e+00 : f32
    %25 = vector.broadcast %cst_9 : f32 to vector<16x16xf32>
    %26 = vector.broadcast %cst_10 : f32 to vector<16x16xf32>
    %27 = arith.select %24, %25, %26 : vector<16x16xi1>, vector<16x16xf32>
    %cst_11 = arith.constant dense<0.000000e+00> : vector<16x1xf32>
    %28 = tpu.matmul %27, %0, %cst_11 {dimension_numbers = #tpu.dot_dimension_numbers<[1], [0], [0], [1], [0, 0, 1, 1], [], []>} : vector<16x16xf32>, vector<16x1xf32>, vector<16x1xf32> -> vector<16x1xf32>
    %29 = vector.extract_strided_slice %7 {offsets = [0, 0], sizes = [1, 32], strides = [1, 1]} : vector<3x32xf32> to vector<1x32xf32>
    %30 = vector.broadcast %28 : vector<16x1xf32> to vector<16x32xf32>
    %31 = vector.broadcast %29 : vector<1x32xf32> to vector<16x32xf32>
    %32 = arith.mulf %30, %31 : vector<16x32xf32>
    %33 = arith.addf %6, %32 : vector<16x32xf32>
    %34 = tpu.iota {dimensions = array<i32: 0>} : vector<16x16xi32>
    %35 = tpu.iota {dimensions = array<i32: 1>} : vector<16x16xi32>
    %c1_i32 = arith.constant 1 : i32
    %36 = vector.broadcast %c1_i32 : i32 to vector<16x16xi32>
    %37 = arith.subi %34, %36 : vector<16x16xi32>
    %38 = arith.cmpi eq, %35, %37 : vector<16x16xi32>
    %c1_i32_12 = arith.constant 1 : i32
    %39 = vector.broadcast %c1_i32_12 : i32 to vector<16x16xi32>
    %40 = arith.cmpi sge, %34, %39 : vector<16x16xi32>
    %c8_i32_13 = arith.constant 8 : i32
    %41 = vector.broadcast %c8_i32_13 : i32 to vector<16x16xi32>
    %42 = arith.cmpi slt, %34, %41 : vector<16x16xi32>
    %43 = arith.andi %40, %42 : vector<16x16xi1>
    %c9_i32 = arith.constant 9 : i32
    %44 = vector.broadcast %c9_i32 : i32 to vector<16x16xi32>
    %45 = arith.cmpi sge, %34, %44 : vector<16x16xi32>
    %c16_i32_14 = arith.constant 16 : i32
    %46 = vector.broadcast %c16_i32_14 : i32 to vector<16x16xi32>
    %47 = arith.cmpi slt, %34, %46 : vector<16x16xi32>
    %48 = arith.andi %45, %47 : vector<16x16xi1>
    %49 = arith.ori %43, %48 : vector<16x16xi1>
    %50 = arith.andi %38, %49 : vector<16x16xi1>
    %cst_15 = arith.constant 1.000000e+00 : f32
    %cst_16 = arith.constant 0.000000e+00 : f32
    %51 = vector.broadcast %cst_15 : f32 to vector<16x16xf32>
    %52 = vector.broadcast %cst_16 : f32 to vector<16x16xf32>
    %53 = arith.select %50, %51, %52 : vector<16x16xi1>, vector<16x16xf32>
    %cst_17 = arith.constant dense<0.000000e+00> : vector<16x1xf32>
    %54 = tpu.matmul %53, %0, %cst_17 {dimension_numbers = #tpu.dot_dimension_numbers<[1], [0], [0], [1], [0, 0, 1, 1], [], []>} : vector<16x16xf32>, vector<16x1xf32>, vector<16x1xf32> -> vector<16x1xf32>
    %55 = vector.extract_strided_slice %7 {offsets = [1, 0], sizes = [1, 32], strides = [1, 1]} : vector<3x32xf32> to vector<1x32xf32>
    %56 = vector.broadcast %54 : vector<16x1xf32> to vector<16x32xf32>
    %57 = vector.broadcast %55 : vector<1x32xf32> to vector<16x32xf32>
    %58 = arith.mulf %56, %57 : vector<16x32xf32>
    %59 = arith.addf %33, %58 : vector<16x32xf32>
    %60 = vector.extract_strided_slice %7 {offsets = [2, 0], sizes = [1, 32], strides = [1, 1]} : vector<3x32xf32> to vector<1x32xf32>
    %61 = vector.broadcast %0 : vector<16x1xf32> to vector<16x32xf32>
    %62 = vector.broadcast %60 : vector<1x32xf32> to vector<16x32xf32>
    %63 = arith.mulf %61, %62 : vector<16x32xf32>
    %64 = arith.addf %59, %63 : vector<16x32xf32>
    %c0_18 = arith.constant 0 : index
    %c0_19 = arith.constant 0 : index
    %65 = vector.load %arg2[%c0_18, %c0_19] : memref<16x1xf32, #tpu.memory_space<vmem>>, vector<16x1xf32>
    %c0_20 = arith.constant 0 : index
    %c0_21 = arith.constant 0 : index
    %66 = vector.load %arg4[%c0_20, %c0_21] : memref<16x4xf32, #tpu.memory_space<vmem>>, vector<16x4xf32>
    %c24 = arith.constant 24 : index
    %c0_22 = arith.constant 0 : index
    %67 = vector.load %arg5[%c24, %c0_22] : memref<736x128xf32, #tpu.memory_space<vmem>>, vector<4x32xf32>
    %cst_23 = arith.constant dense<0.000000e+00> : vector<16x32xf32>
    %68 = tpu.matmul %66, %67, %cst_23 {dimension_numbers = #tpu.dot_dimension_numbers<[1], [0], [0], [1], [0, 0, 1, 1], [], []>} : vector<16x4xf32>, vector<4x32xf32>, vector<16x32xf32> -> vector<16x32xf32>
    %c1 = arith.constant 1 : index
    %c0_24 = arith.constant 0 : index
    %69 = vector.load %arg6[%c1, %c0_24] : memref<40x128xf32, #tpu.memory_space<vmem>>, vector<1x32xf32>
    %70 = vector.broadcast %69 : vector<1x32xf32> to vector<16x32xf32>
    %71 = arith.addf %68, %70 : vector<16x32xf32>
    %c16 = arith.constant 16 : index
    %c0_25 = arith.constant 0 : index
    %72 = vector.load %arg5[%c16, %c0_25] : memref<736x128xf32, #tpu.memory_space<vmem>>, vector<3x32xf32>
    %cst_26 = arith.constant dense<0.000000e+00> : vector<16x1xf32>
    %73 = tpu.matmul %27, %65, %cst_26 {dimension_numbers = #tpu.dot_dimension_numbers<[1], [0], [0], [1], [0, 0, 1, 1], [], []>} : vector<16x16xf32>, vector<16x1xf32>, vector<16x1xf32> -> vector<16x1xf32>
    %74 = vector.extract_strided_slice %72 {offsets = [0, 0], sizes = [1, 32], strides = [1, 1]} : vector<3x32xf32> to vector<1x32xf32>
    %75 = vector.broadcast %73 : vector<16x1xf32> to vector<16x32xf32>
    %76 = vector.broadcast %74 : vector<1x32xf32> to vector<16x32xf32>
    %77 = arith.mulf %75, %76 : vector<16x32xf32>
    %78 = arith.addf %71, %77 : vector<16x32xf32>
    %cst_27 = arith.constant dense<0.000000e+00> : vector<16x1xf32>
    %79 = tpu.matmul %53, %65, %cst_27 {dimension_numbers = #tpu.dot_dimension_numbers<[1], [0], [0], [1], [0, 0, 1, 1], [], []>} : vector<16x16xf32>, vector<16x1xf32>, vector<16x1xf32> -> vector<16x1xf32>
    %80 = vector.extract_strided_slice %72 {offsets = [1, 0], sizes = [1, 32], strides = [1, 1]} : vector<3x32xf32> to vector<1x32xf32>
    %81 = vector.broadcast %79 : vector<16x1xf32> to vector<16x32xf32>
    %82 = vector.broadcast %80 : vector<1x32xf32> to vector<16x32xf32>
    %83 = arith.mulf %81, %82 : vector<16x32xf32>
    %84 = arith.addf %78, %83 : vector<16x32xf32>
    %85 = vector.extract_strided_slice %72 {offsets = [2, 0], sizes = [1, 32], strides = [1, 1]} : vector<3x32xf32> to vector<1x32xf32>
    %86 = vector.broadcast %65 : vector<16x1xf32> to vector<16x32xf32>
    %87 = vector.broadcast %85 : vector<1x32xf32> to vector<16x32xf32>
    %88 = arith.mulf %86, %87 : vector<16x32xf32>
    %89 = arith.addf %84, %88 : vector<16x32xf32>
    %c32 = arith.constant 32 : index
    %c0_28 = arith.constant 0 : index
    %90 = vector.load %arg5[%c32, %c0_28] : memref<736x128xf32, #tpu.memory_space<vmem>>, vector<32x32xf32>
    %cst_29 = arith.constant dense<0.000000e+00> : vector<16x32xf32>
    %91 = tpu.matmul %64, %90, %cst_29 {dimension_numbers = #tpu.dot_dimension_numbers<[1], [0], [0], [1], [0, 0, 1, 1], [], []>} : vector<16x32xf32>, vector<32x32xf32>, vector<16x32xf32> -> vector<16x32xf32>
    %c2 = arith.constant 2 : index
    %c0_30 = arith.constant 0 : index
    %92 = vector.load %arg6[%c2, %c0_30] : memref<40x128xf32, #tpu.memory_space<vmem>>, vector<1x32xf32>
    %93 = vector.broadcast %92 : vector<1x32xf32> to vector<16x32xf32>
    %94 = arith.addf %91, %93 : vector<16x32xf32>
    %c64 = arith.constant 64 : index
    %c0_31 = arith.constant 0 : index
    %95 = vector.load %arg5[%c64, %c0_31] : memref<736x128xf32, #tpu.memory_space<vmem>>, vector<32x32xf32>
    %cst_32 = arith.constant dense<0.000000e+00> : vector<16x32xf32>
    %96 = tpu.matmul %64, %95, %cst_32 {dimension_numbers = #tpu.dot_dimension_numbers<[1], [0], [0], [1], [0, 0, 1, 1], [], []>} : vector<16x32xf32>, vector<32x32xf32>, vector<16x32xf32> -> vector<16x32xf32>
    %c3 = arith.constant 3 : index
    %c0_33 = arith.constant 0 : index
    %97 = vector.load %arg6[%c3, %c0_33] : memref<40x128xf32, #tpu.memory_space<vmem>>, vector<1x32xf32>
    %98 = vector.broadcast %97 : vector<1x32xf32> to vector<16x32xf32>
    %99 = arith.addf %96, %98 : vector<16x32xf32>
    %c96 = arith.constant 96 : index
    %c0_34 = arith.constant 0 : index
    %100 = vector.load %arg5[%c96, %c0_34] : memref<736x128xf32, #tpu.memory_space<vmem>>, vector<32x32xf32>
    %cst_35 = arith.constant dense<0.000000e+00> : vector<16x32xf32>
    %101 = tpu.matmul %64, %100, %cst_35 {dimension_numbers = #tpu.dot_dimension_numbers<[1], [0], [0], [1], [0, 0, 1, 1], [], []>} : vector<16x32xf32>, vector<32x32xf32>, vector<16x32xf32> -> vector<16x32xf32>
    %c4 = arith.constant 4 : index
    %c0_36 = arith.constant 0 : index
    %102 = vector.load %arg6[%c4, %c0_36] : memref<40x128xf32, #tpu.memory_space<vmem>>, vector<1x32xf32>
    %103 = vector.broadcast %102 : vector<1x32xf32> to vector<16x32xf32>
    %104 = arith.addf %101, %103 : vector<16x32xf32>
    %105 = vector.extract_strided_slice %94 {offsets = [0, 0], sizes = [8, 32], strides = [1, 1]} : vector<16x32xf32> to vector<8x32xf32>
    %106 = vector.extract_strided_slice %99 {offsets = [0, 0], sizes = [8, 32], strides = [1, 1]} : vector<16x32xf32> to vector<8x32xf32>
    %107 = vector.extract_strided_slice %104 {offsets = [0, 0], sizes = [8, 32], strides = [1, 1]} : vector<16x32xf32> to vector<8x32xf32>
    %108 = tpu.iota {dimensions = array<i32: 0>} : vector<32x32xi32>
    %109 = tpu.iota {dimensions = array<i32: 1>} : vector<32x32xi32>
    %c0_i32 = arith.constant 0 : i32
    %110 = vector.broadcast %c0_i32 : i32 to vector<32x32xi32>
    %111 = arith.cmpi sge, %108, %110 : vector<32x32xi32>
    %c8_i32_37 = arith.constant 8 : i32
    %112 = vector.broadcast %c8_i32_37 : i32 to vector<32x32xi32>
    %113 = arith.cmpi slt, %108, %112 : vector<32x32xi32>
    %114 = arith.andi %111, %113 : vector<32x32xi1>
    %c0_i32_38 = arith.constant 0 : i32
    %115 = vector.broadcast %c0_i32_38 : i32 to vector<32x32xi32>
    %116 = arith.cmpi sge, %109, %115 : vector<32x32xi32>
    %117 = arith.andi %114, %116 : vector<32x32xi1>
    %c8_i32_39 = arith.constant 8 : i32
    %118 = vector.broadcast %c8_i32_39 : i32 to vector<32x32xi32>
    %119 = arith.cmpi slt, %109, %118 : vector<32x32xi32>
    %120 = arith.andi %117, %119 : vector<32x32xi1>
    %c8_i32_40 = arith.constant 8 : i32
    %121 = vector.broadcast %c8_i32_40 : i32 to vector<32x32xi32>
    %122 = arith.cmpi sge, %108, %121 : vector<32x32xi32>
    %c16_i32_41 = arith.constant 16 : i32
    %123 = vector.broadcast %c16_i32_41 : i32 to vector<32x32xi32>
    %124 = arith.cmpi slt, %108, %123 : vector<32x32xi32>
    %125 = arith.andi %122, %124 : vector<32x32xi1>
    %c8_i32_42 = arith.constant 8 : i32
    %126 = vector.broadcast %c8_i32_42 : i32 to vector<32x32xi32>
    %127 = arith.cmpi sge, %109, %126 : vector<32x32xi32>
    %128 = arith.andi %125, %127 : vector<32x32xi1>
    %c16_i32_43 = arith.constant 16 : i32
    %129 = vector.broadcast %c16_i32_43 : i32 to vector<32x32xi32>
    %130 = arith.cmpi slt, %109, %129 : vector<32x32xi32>
    %131 = arith.andi %128, %130 : vector<32x32xi1>
    %132 = arith.ori %120, %131 : vector<32x32xi1>
    %c16_i32_44 = arith.constant 16 : i32
    %133 = vector.broadcast %c16_i32_44 : i32 to vector<32x32xi32>
    %134 = arith.cmpi sge, %108, %133 : vector<32x32xi32>
    %c24_i32 = arith.constant 24 : i32
    %135 = vector.broadcast %c24_i32 : i32 to vector<32x32xi32>
    %136 = arith.cmpi slt, %108, %135 : vector<32x32xi32>
    %137 = arith.andi %134, %136 : vector<32x32xi1>
    %c16_i32_45 = arith.constant 16 : i32
    %138 = vector.broadcast %c16_i32_45 : i32 to vector<32x32xi32>
    %139 = arith.cmpi sge, %109, %138 : vector<32x32xi32>
    %140 = arith.andi %137, %139 : vector<32x32xi1>
    %c24_i32_46 = arith.constant 24 : i32
    %141 = vector.broadcast %c24_i32_46 : i32 to vector<32x32xi32>
    %142 = arith.cmpi slt, %109, %141 : vector<32x32xi32>
    %143 = arith.andi %140, %142 : vector<32x32xi1>
    %144 = arith.ori %132, %143 : vector<32x32xi1>
    %c24_i32_47 = arith.constant 24 : i32
    %145 = vector.broadcast %c24_i32_47 : i32 to vector<32x32xi32>
    %146 = arith.cmpi sge, %108, %145 : vector<32x32xi32>
    %c32_i32 = arith.constant 32 : i32
    %147 = vector.broadcast %c32_i32 : i32 to vector<32x32xi32>
    %148 = arith.cmpi slt, %108, %147 : vector<32x32xi32>
    %149 = arith.andi %146, %148 : vector<32x32xi1>
    %c24_i32_48 = arith.constant 24 : i32
    %150 = vector.broadcast %c24_i32_48 : i32 to vector<32x32xi32>
    %151 = arith.cmpi sge, %109, %150 : vector<32x32xi32>
    %152 = arith.andi %149, %151 : vector<32x32xi1>
    %c32_i32_49 = arith.constant 32 : i32
    %153 = vector.broadcast %c32_i32_49 : i32 to vector<32x32xi32>
    %154 = arith.cmpi slt, %109, %153 : vector<32x32xi32>
    %155 = arith.andi %152, %154 : vector<32x32xi1>
    %156 = arith.ori %144, %155 : vector<32x32xi1>
    %cst_50 = arith.constant 1.000000e+00 : f32
    %cst_51 = arith.constant 0.000000e+00 : f32
    %157 = vector.broadcast %cst_50 : f32 to vector<32x32xf32>
    %158 = vector.broadcast %cst_51 : f32 to vector<32x32xf32>
    %159 = arith.select %156, %157, %158 : vector<32x32xi1>, vector<32x32xf32>
    %160 = tpu.concatenate %106, %106, %106, %106 in 0 : vector<8x32xf32>, vector<8x32xf32>, vector<8x32xf32>, vector<8x32xf32> -> vector<32x32xf32>
    %161 = arith.mulf %160, %159 : vector<32x32xf32>
    %162 = tpu.concatenate %107, %107, %107, %107 in 0 : vector<8x32xf32>, vector<8x32xf32>, vector<8x32xf32>, vector<8x32xf32> -> vector<32x32xf32>
    %163 = arith.mulf %162, %159 : vector<32x32xf32>
    %cst_52 = arith.constant dense<0.000000e+00> : vector<8x32xf32>
    %164 = tpu.matmul %105, %161, %cst_52 {dimension_numbers = #tpu.dot_dimension_numbers<[1], [1], [0], [0], [0, 0, 1, 0], [], []>} : vector<8x32xf32>, vector<32x32xf32>, vector<8x32xf32> -> vector<8x32xf32>
    %cst_53 = arith.constant 0.353553385 : f32
    %165 = vector.broadcast %cst_53 : f32 to vector<8x32xf32>
    %166 = arith.mulf %164, %165 : vector<8x32xf32>
    %cst_54 = arith.constant dense<0xFF800000> : vector<8xf32>
    %167 = vector.multi_reduction <maximumf>, %166, %cst_54 [1] : vector<8x32xf32> to vector<8xf32>
    %168 = vector.shape_cast %167 : vector<8xf32> to vector<8x1xf32>
    %169 = vector.broadcast %168 : vector<8x1xf32> to vector<8x32xf32>
    %170 = arith.subf %166, %169 : vector<8x32xf32>
    %171 = math.exp %170 : vector<8x32xf32>
    %cst_55 = arith.constant dense<0.000000e+00> : vector<8x32xf32>
    %172 = tpu.matmul %171, %159, %cst_55 {dimension_numbers = #tpu.dot_dimension_numbers<[1], [0], [0], [1], [0, 0, 1, 1], [], []>} : vector<8x32xf32>, vector<32x32xf32>, vector<8x32xf32> -> vector<8x32xf32>
    %173 = tpu.reciprocal %172 {approx = true} : vector<8x32xf32> -> vector<8x32xf32>
    %174 = arith.mulf %171, %173 : vector<8x32xf32>
    %cst_56 = arith.constant dense<0.000000e+00> : vector<8x32xf32>
    %175 = tpu.matmul %174, %163, %cst_56 {dimension_numbers = #tpu.dot_dimension_numbers<[1], [0], [0], [1], [0, 0, 1, 1], [], []>} : vector<8x32xf32>, vector<32x32xf32>, vector<8x32xf32> -> vector<8x32xf32>
    %176 = vector.extract_strided_slice %94 {offsets = [8, 0], sizes = [8, 32], strides = [1, 1]} : vector<16x32xf32> to vector<8x32xf32>
    %177 = vector.extract_strided_slice %99 {offsets = [8, 0], sizes = [8, 32], strides = [1, 1]} : vector<16x32xf32> to vector<8x32xf32>
    %178 = vector.extract_strided_slice %104 {offsets = [8, 0], sizes = [8, 32], strides = [1, 1]} : vector<16x32xf32> to vector<8x32xf32>
    %179 = tpu.concatenate %177, %177, %177, %177 in 0 : vector<8x32xf32>, vector<8x32xf32>, vector<8x32xf32>, vector<8x32xf32> -> vector<32x32xf32>
    %180 = arith.mulf %179, %159 : vector<32x32xf32>
    %181 = tpu.concatenate %178, %178, %178, %178 in 0 : vector<8x32xf32>, vector<8x32xf32>, vector<8x32xf32>, vector<8x32xf32> -> vector<32x32xf32>
    %182 = arith.mulf %181, %159 : vector<32x32xf32>
    %cst_57 = arith.constant dense<0.000000e+00> : vector<8x32xf32>
    %183 = tpu.matmul %176, %180, %cst_57 {dimension_numbers = #tpu.dot_dimension_numbers<[1], [1], [0], [0], [0, 0, 1, 0], [], []>} : vector<8x32xf32>, vector<32x32xf32>, vector<8x32xf32> -> vector<8x32xf32>
    %cst_58 = arith.constant 0.353553385 : f32
    %184 = vector.broadcast %cst_58 : f32 to vector<8x32xf32>
    %185 = arith.mulf %183, %184 : vector<8x32xf32>
    %cst_59 = arith.constant dense<0xFF800000> : vector<8xf32>
    %186 = vector.multi_reduction <maximumf>, %185, %cst_59 [1] : vector<8x32xf32> to vector<8xf32>
    %187 = vector.shape_cast %186 : vector<8xf32> to vector<8x1xf32>
    %188 = vector.broadcast %187 : vector<8x1xf32> to vector<8x32xf32>
    %189 = arith.subf %185, %188 : vector<8x32xf32>
    %190 = math.exp %189 : vector<8x32xf32>
    %cst_60 = arith.constant dense<0.000000e+00> : vector<8x32xf32>
    %191 = tpu.matmul %190, %159, %cst_60 {dimension_numbers = #tpu.dot_dimension_numbers<[1], [0], [0], [1], [0, 0, 1, 1], [], []>} : vector<8x32xf32>, vector<32x32xf32>, vector<8x32xf32> -> vector<8x32xf32>
    %192 = tpu.reciprocal %191 {approx = true} : vector<8x32xf32> -> vector<8x32xf32>
    %193 = arith.mulf %190, %192 : vector<8x32xf32>
    %cst_61 = arith.constant dense<0.000000e+00> : vector<8x32xf32>
    %194 = tpu.matmul %193, %182, %cst_61 {dimension_numbers = #tpu.dot_dimension_numbers<[1], [0], [0], [1], [0, 0, 1, 1], [], []>} : vector<8x32xf32>, vector<32x32xf32>, vector<8x32xf32> -> vector<8x32xf32>
    %195 = tpu.concatenate %175, %194 in 0 : vector<8x32xf32>, vector<8x32xf32> -> vector<16x32xf32>
    %c128 = arith.constant 128 : index
    %c0_62 = arith.constant 0 : index
    %196 = vector.load %arg5[%c128, %c0_62] : memref<736x128xf32, #tpu.memory_space<vmem>>, vector<32x32xf32>
    %cst_63 = arith.constant dense<0.000000e+00> : vector<16x32xf32>
    %197 = tpu.matmul %195, %196, %cst_63 {dimension_numbers = #tpu.dot_dimension_numbers<[1], [0], [0], [1], [0, 0, 1, 1], [], []>} : vector<16x32xf32>, vector<32x32xf32>, vector<16x32xf32> -> vector<16x32xf32>
    %c5 = arith.constant 5 : index
    %c0_64 = arith.constant 0 : index
    %198 = vector.load %arg6[%c5, %c0_64] : memref<40x128xf32, #tpu.memory_space<vmem>>, vector<1x32xf32>
    %199 = vector.broadcast %198 : vector<1x32xf32> to vector<16x32xf32>
    %200 = arith.addf %197, %199 : vector<16x32xf32>
    %cst_65 = arith.constant dense<0.000000e+00> : vector<16xf32>
    %201 = vector.multi_reduction <add>, %200, %cst_65 [1] : vector<16x32xf32> to vector<16xf32>
    %202 = vector.shape_cast %201 : vector<16xf32> to vector<16x1xf32>
    %cst_66 = arith.constant 3.200000e+01 : f32
    %203 = vector.broadcast %cst_66 : f32 to vector<16x1xf32>
    %204 = arith.divf %202, %203 : vector<16x1xf32>
    %205 = arith.mulf %200, %200 : vector<16x32xf32>
    %cst_67 = arith.constant dense<0.000000e+00> : vector<16xf32>
    %206 = vector.multi_reduction <add>, %205, %cst_67 [1] : vector<16x32xf32> to vector<16xf32>
    %207 = vector.shape_cast %206 : vector<16xf32> to vector<16x1xf32>
    %cst_68 = arith.constant 3.200000e+01 : f32
    %208 = vector.broadcast %cst_68 : f32 to vector<16x1xf32>
    %209 = arith.divf %207, %208 : vector<16x1xf32>
    %210 = arith.mulf %204, %204 : vector<16x1xf32>
    %211 = arith.subf %209, %210 : vector<16x1xf32>
    %cst_69 = arith.constant 9.99999974E-6 : f32
    %212 = vector.broadcast %cst_69 : f32 to vector<16x1xf32>
    %213 = arith.addf %211, %212 : vector<16x1xf32>
    %214 = math.rsqrt %213 : vector<16x1xf32>
    %215 = vector.broadcast %204 : vector<16x1xf32> to vector<16x32xf32>
    %216 = arith.subf %200, %215 : vector<16x32xf32>
    %217 = vector.broadcast %214 : vector<16x1xf32> to vector<16x32xf32>
    %218 = arith.mulf %216, %217 : vector<16x32xf32>
    %c15 = arith.constant 15 : index
    %c0_70 = arith.constant 0 : index
    %219 = vector.load %arg6[%c15, %c0_70] : memref<40x128xf32, #tpu.memory_space<vmem>>, vector<1x32xf32>
    %220 = vector.broadcast %219 : vector<1x32xf32> to vector<16x32xf32>
    %221 = arith.mulf %218, %220 : vector<16x32xf32>
    %c16_71 = arith.constant 16 : index
    %c0_72 = arith.constant 0 : index
    %222 = vector.load %arg6[%c16_71, %c0_72] : memref<40x128xf32, #tpu.memory_space<vmem>>, vector<1x32xf32>
    %223 = vector.broadcast %222 : vector<1x32xf32> to vector<16x32xf32>
    %224 = arith.addf %221, %223 : vector<16x32xf32>
    %225 = arith.addf %64, %224 : vector<16x32xf32>
    %c288 = arith.constant 288 : index
    %c0_73 = arith.constant 0 : index
    %226 = vector.load %arg5[%c288, %c0_73] : memref<736x128xf32, #tpu.memory_space<vmem>>, vector<32x64xf32>
    %cst_74 = arith.constant dense<0.000000e+00> : vector<16x64xf32>
    %227 = tpu.matmul %225, %226, %cst_74 {dimension_numbers = #tpu.dot_dimension_numbers<[1], [0], [0], [1], [0, 0, 1, 1], [], []>} : vector<16x32xf32>, vector<32x64xf32>, vector<16x64xf32> -> vector<16x64xf32>
    %c10 = arith.constant 10 : index
    %c0_75 = arith.constant 0 : index
    %228 = vector.load %arg6[%c10, %c0_75] : memref<40x128xf32, #tpu.memory_space<vmem>>, vector<1x64xf32>
    %229 = vector.broadcast %228 : vector<1x64xf32> to vector<16x64xf32>
    %230 = arith.addf %227, %229 : vector<16x64xf32>
    %cst_76 = arith.constant 0.000000e+00 : f32
    %231 = vector.broadcast %cst_76 : f32 to vector<16x64xf32>
    %232 = arith.maximumf %230, %231 : vector<16x64xf32>
    %c320 = arith.constant 320 : index
    %c0_77 = arith.constant 0 : index
    %233 = vector.load %arg5[%c320, %c0_77] : memref<736x128xf32, #tpu.memory_space<vmem>>, vector<64x32xf32>
    %cst_78 = arith.constant dense<0.000000e+00> : vector<16x32xf32>
    %234 = tpu.matmul %232, %233, %cst_78 {dimension_numbers = #tpu.dot_dimension_numbers<[1], [0], [0], [1], [0, 0, 1, 1], [], []>} : vector<16x64xf32>, vector<64x32xf32>, vector<16x32xf32> -> vector<16x32xf32>
    %c11 = arith.constant 11 : index
    %c0_79 = arith.constant 0 : index
    %235 = vector.load %arg6[%c11, %c0_79] : memref<40x128xf32, #tpu.memory_space<vmem>>, vector<1x32xf32>
    %236 = vector.broadcast %235 : vector<1x32xf32> to vector<16x32xf32>
    %237 = arith.addf %234, %236 : vector<16x32xf32>
    %238 = arith.addf %225, %237 : vector<16x32xf32>
    %cst_80 = arith.constant dense<0.000000e+00> : vector<16xf32>
    %239 = vector.multi_reduction <add>, %238, %cst_80 [1] : vector<16x32xf32> to vector<16xf32>
    %240 = vector.shape_cast %239 : vector<16xf32> to vector<16x1xf32>
    %cst_81 = arith.constant 3.200000e+01 : f32
    %241 = vector.broadcast %cst_81 : f32 to vector<16x1xf32>
    %242 = arith.divf %240, %241 : vector<16x1xf32>
    %243 = arith.mulf %238, %238 : vector<16x32xf32>
    %cst_82 = arith.constant dense<0.000000e+00> : vector<16xf32>
    %244 = vector.multi_reduction <add>, %243, %cst_82 [1] : vector<16x32xf32> to vector<16xf32>
    %245 = vector.shape_cast %244 : vector<16xf32> to vector<16x1xf32>
    %cst_83 = arith.constant 3.200000e+01 : f32
    %246 = vector.broadcast %cst_83 : f32 to vector<16x1xf32>
    %247 = arith.divf %245, %246 : vector<16x1xf32>
    %248 = arith.mulf %242, %242 : vector<16x1xf32>
    %249 = arith.subf %247, %248 : vector<16x1xf32>
    %cst_84 = arith.constant 9.99999974E-6 : f32
    %250 = vector.broadcast %cst_84 : f32 to vector<16x1xf32>
    %251 = arith.addf %249, %250 : vector<16x1xf32>
    %252 = math.rsqrt %251 : vector<16x1xf32>
    %253 = vector.broadcast %242 : vector<16x1xf32> to vector<16x32xf32>
    %254 = arith.subf %238, %253 : vector<16x32xf32>
    %255 = vector.broadcast %252 : vector<16x1xf32> to vector<16x32xf32>
    %256 = arith.mulf %254, %255 : vector<16x32xf32>
    %c17 = arith.constant 17 : index
    %c0_85 = arith.constant 0 : index
    %257 = vector.load %arg6[%c17, %c0_85] : memref<40x128xf32, #tpu.memory_space<vmem>>, vector<1x32xf32>
    %258 = vector.broadcast %257 : vector<1x32xf32> to vector<16x32xf32>
    %259 = arith.mulf %256, %258 : vector<16x32xf32>
    %c18 = arith.constant 18 : index
    %c0_86 = arith.constant 0 : index
    %260 = vector.load %arg6[%c18, %c0_86] : memref<40x128xf32, #tpu.memory_space<vmem>>, vector<1x32xf32>
    %261 = vector.broadcast %260 : vector<1x32xf32> to vector<16x32xf32>
    %262 = arith.addf %259, %261 : vector<16x32xf32>
    %c512 = arith.constant 512 : index
    %c0_87 = arith.constant 0 : index
    %263 = vector.load %arg5[%c512, %c0_87] : memref<736x128xf32, #tpu.memory_space<vmem>>, vector<32x32xf32>
    %cst_88 = arith.constant dense<0.000000e+00> : vector<16x32xf32>
    %264 = tpu.matmul %262, %263, %cst_88 {dimension_numbers = #tpu.dot_dimension_numbers<[1], [0], [0], [1], [0, 0, 1, 1], [], []>} : vector<16x32xf32>, vector<32x32xf32>, vector<16x32xf32> -> vector<16x32xf32>
    %c27 = arith.constant 27 : index
    %c0_89 = arith.constant 0 : index
    %265 = vector.load %arg6[%c27, %c0_89] : memref<40x128xf32, #tpu.memory_space<vmem>>, vector<1x32xf32>
    %266 = vector.broadcast %265 : vector<1x32xf32> to vector<16x32xf32>
    %267 = arith.addf %264, %266 : vector<16x32xf32>
    %c544 = arith.constant 544 : index
    %c0_90 = arith.constant 0 : index
    %268 = vector.load %arg5[%c544, %c0_90] : memref<736x128xf32, #tpu.memory_space<vmem>>, vector<32x32xf32>
    %cst_91 = arith.constant dense<0.000000e+00> : vector<16x32xf32>
    %269 = tpu.matmul %262, %268, %cst_91 {dimension_numbers = #tpu.dot_dimension_numbers<[1], [0], [0], [1], [0, 0, 1, 1], [], []>} : vector<16x32xf32>, vector<32x32xf32>, vector<16x32xf32> -> vector<16x32xf32>
    %c28 = arith.constant 28 : index
    %c0_92 = arith.constant 0 : index
    %270 = vector.load %arg6[%c28, %c0_92] : memref<40x128xf32, #tpu.memory_space<vmem>>, vector<1x32xf32>
    %271 = vector.broadcast %270 : vector<1x32xf32> to vector<16x32xf32>
    %272 = arith.addf %269, %271 : vector<16x32xf32>
    %c576 = arith.constant 576 : index
    %c0_93 = arith.constant 0 : index
    %273 = vector.load %arg5[%c576, %c0_93] : memref<736x128xf32, #tpu.memory_space<vmem>>, vector<32x32xf32>
    %cst_94 = arith.constant dense<0.000000e+00> : vector<16x32xf32>
    %274 = tpu.matmul %262, %273, %cst_94 {dimension_numbers = #tpu.dot_dimension_numbers<[1], [0], [0], [1], [0, 0, 1, 1], [], []>} : vector<16x32xf32>, vector<32x32xf32>, vector<16x32xf32> -> vector<16x32xf32>
    %c29 = arith.constant 29 : index
    %c0_95 = arith.constant 0 : index
    %275 = vector.load %arg6[%c29, %c0_95] : memref<40x128xf32, #tpu.memory_space<vmem>>, vector<1x32xf32>
    %276 = vector.broadcast %275 : vector<1x32xf32> to vector<16x32xf32>
    %277 = arith.addf %274, %276 : vector<16x32xf32>
    %278 = vector.extract_strided_slice %267 {offsets = [0, 0], sizes = [8, 32], strides = [1, 1]} : vector<16x32xf32> to vector<8x32xf32>
    %279 = vector.extract_strided_slice %272 {offsets = [0, 0], sizes = [8, 32], strides = [1, 1]} : vector<16x32xf32> to vector<8x32xf32>
    %280 = vector.extract_strided_slice %277 {offsets = [0, 0], sizes = [8, 32], strides = [1, 1]} : vector<16x32xf32> to vector<8x32xf32>
    %281 = tpu.concatenate %279, %279, %279, %279 in 0 : vector<8x32xf32>, vector<8x32xf32>, vector<8x32xf32>, vector<8x32xf32> -> vector<32x32xf32>
    %282 = arith.mulf %281, %159 : vector<32x32xf32>
    %283 = tpu.concatenate %280, %280, %280, %280 in 0 : vector<8x32xf32>, vector<8x32xf32>, vector<8x32xf32>, vector<8x32xf32> -> vector<32x32xf32>
    %284 = arith.mulf %283, %159 : vector<32x32xf32>
    %cst_96 = arith.constant dense<0.000000e+00> : vector<8x32xf32>
    %285 = tpu.matmul %278, %282, %cst_96 {dimension_numbers = #tpu.dot_dimension_numbers<[1], [1], [0], [0], [0, 0, 1, 0], [], []>} : vector<8x32xf32>, vector<32x32xf32>, vector<8x32xf32> -> vector<8x32xf32>
    %cst_97 = arith.constant 0.353553385 : f32
    %286 = vector.broadcast %cst_97 : f32 to vector<8x32xf32>
    %287 = arith.mulf %285, %286 : vector<8x32xf32>
    %cst_98 = arith.constant dense<0xFF800000> : vector<8xf32>
    %288 = vector.multi_reduction <maximumf>, %287, %cst_98 [1] : vector<8x32xf32> to vector<8xf32>
    %289 = vector.shape_cast %288 : vector<8xf32> to vector<8x1xf32>
    %290 = vector.broadcast %289 : vector<8x1xf32> to vector<8x32xf32>
    %291 = arith.subf %287, %290 : vector<8x32xf32>
    %292 = math.exp %291 : vector<8x32xf32>
    %cst_99 = arith.constant dense<0.000000e+00> : vector<8x32xf32>
    %293 = tpu.matmul %292, %159, %cst_99 {dimension_numbers = #tpu.dot_dimension_numbers<[1], [0], [0], [1], [0, 0, 1, 1], [], []>} : vector<8x32xf32>, vector<32x32xf32>, vector<8x32xf32> -> vector<8x32xf32>
    %294 = tpu.reciprocal %293 {approx = true} : vector<8x32xf32> -> vector<8x32xf32>
    %295 = arith.mulf %292, %294 : vector<8x32xf32>
    %cst_100 = arith.constant dense<0.000000e+00> : vector<8x32xf32>
    %296 = tpu.matmul %295, %284, %cst_100 {dimension_numbers = #tpu.dot_dimension_numbers<[1], [0], [0], [1], [0, 0, 1, 1], [], []>} : vector<8x32xf32>, vector<32x32xf32>, vector<8x32xf32> -> vector<8x32xf32>
    %297 = vector.extract_strided_slice %267 {offsets = [8, 0], sizes = [8, 32], strides = [1, 1]} : vector<16x32xf32> to vector<8x32xf32>
    %298 = vector.extract_strided_slice %272 {offsets = [8, 0], sizes = [8, 32], strides = [1, 1]} : vector<16x32xf32> to vector<8x32xf32>
    %299 = vector.extract_strided_slice %277 {offsets = [8, 0], sizes = [8, 32], strides = [1, 1]} : vector<16x32xf32> to vector<8x32xf32>
    %300 = tpu.concatenate %298, %298, %298, %298 in 0 : vector<8x32xf32>, vector<8x32xf32>, vector<8x32xf32>, vector<8x32xf32> -> vector<32x32xf32>
    %301 = arith.mulf %300, %159 : vector<32x32xf32>
    %302 = tpu.concatenate %299, %299, %299, %299 in 0 : vector<8x32xf32>, vector<8x32xf32>, vector<8x32xf32>, vector<8x32xf32> -> vector<32x32xf32>
    %303 = arith.mulf %302, %159 : vector<32x32xf32>
    %cst_101 = arith.constant dense<0.000000e+00> : vector<8x32xf32>
    %304 = tpu.matmul %297, %301, %cst_101 {dimension_numbers = #tpu.dot_dimension_numbers<[1], [1], [0], [0], [0, 0, 1, 0], [], []>} : vector<8x32xf32>, vector<32x32xf32>, vector<8x32xf32> -> vector<8x32xf32>
    %cst_102 = arith.constant 0.353553385 : f32
    %305 = vector.broadcast %cst_102 : f32 to vector<8x32xf32>
    %306 = arith.mulf %304, %305 : vector<8x32xf32>
    %cst_103 = arith.constant dense<0xFF800000> : vector<8xf32>
    %307 = vector.multi_reduction <maximumf>, %306, %cst_103 [1] : vector<8x32xf32> to vector<8xf32>
    %308 = vector.shape_cast %307 : vector<8xf32> to vector<8x1xf32>
    %309 = vector.broadcast %308 : vector<8x1xf32> to vector<8x32xf32>
    %310 = arith.subf %306, %309 : vector<8x32xf32>
    %311 = math.exp %310 : vector<8x32xf32>
    %cst_104 = arith.constant dense<0.000000e+00> : vector<8x32xf32>
    %312 = tpu.matmul %311, %159, %cst_104 {dimension_numbers = #tpu.dot_dimension_numbers<[1], [0], [0], [1], [0, 0, 1, 1], [], []>} : vector<8x32xf32>, vector<32x32xf32>, vector<8x32xf32> -> vector<8x32xf32>
    %313 = tpu.reciprocal %312 {approx = true} : vector<8x32xf32> -> vector<8x32xf32>
    %314 = arith.mulf %311, %313 : vector<8x32xf32>
    %cst_105 = arith.constant dense<0.000000e+00> : vector<8x32xf32>
    %315 = tpu.matmul %314, %303, %cst_105 {dimension_numbers = #tpu.dot_dimension_numbers<[1], [0], [0], [1], [0, 0, 1, 1], [], []>} : vector<8x32xf32>, vector<32x32xf32>, vector<8x32xf32> -> vector<8x32xf32>
    %316 = tpu.concatenate %296, %315 in 0 : vector<8x32xf32>, vector<8x32xf32> -> vector<16x32xf32>
    %c608 = arith.constant 608 : index
    %c0_106 = arith.constant 0 : index
    %317 = vector.load %arg5[%c608, %c0_106] : memref<736x128xf32, #tpu.memory_space<vmem>>, vector<32x32xf32>
    %cst_107 = arith.constant dense<0.000000e+00> : vector<16x32xf32>
    %318 = tpu.matmul %316, %317, %cst_107 {dimension_numbers = #tpu.dot_dimension_numbers<[1], [0], [0], [1], [0, 0, 1, 1], [], []>} : vector<16x32xf32>, vector<32x32xf32>, vector<16x32xf32> -> vector<16x32xf32>
    %c30 = arith.constant 30 : index
    %c0_108 = arith.constant 0 : index
    %319 = vector.load %arg6[%c30, %c0_108] : memref<40x128xf32, #tpu.memory_space<vmem>>, vector<1x32xf32>
    %320 = vector.broadcast %319 : vector<1x32xf32> to vector<16x32xf32>
    %321 = arith.addf %318, %320 : vector<16x32xf32>
    %322 = arith.addf %262, %321 : vector<16x32xf32>
    %cst_109 = arith.constant dense<0.000000e+00> : vector<16xf32>
    %323 = vector.multi_reduction <add>, %322, %cst_109 [1] : vector<16x32xf32> to vector<16xf32>
    %324 = vector.shape_cast %323 : vector<16xf32> to vector<16x1xf32>
    %cst_110 = arith.constant 3.200000e+01 : f32
    %325 = vector.broadcast %cst_110 : f32 to vector<16x1xf32>
    %326 = arith.divf %324, %325 : vector<16x1xf32>
    %327 = arith.mulf %322, %322 : vector<16x32xf32>
    %cst_111 = arith.constant dense<0.000000e+00> : vector<16xf32>
    %328 = vector.multi_reduction <add>, %327, %cst_111 [1] : vector<16x32xf32> to vector<16xf32>
    %329 = vector.shape_cast %328 : vector<16xf32> to vector<16x1xf32>
    %cst_112 = arith.constant 3.200000e+01 : f32
    %330 = vector.broadcast %cst_112 : f32 to vector<16x1xf32>
    %331 = arith.divf %329, %330 : vector<16x1xf32>
    %332 = arith.mulf %326, %326 : vector<16x1xf32>
    %333 = arith.subf %331, %332 : vector<16x1xf32>
    %cst_113 = arith.constant 9.99999974E-6 : f32
    %334 = vector.broadcast %cst_113 : f32 to vector<16x1xf32>
    %335 = arith.addf %333, %334 : vector<16x1xf32>
    %336 = math.rsqrt %335 : vector<16x1xf32>
    %337 = vector.broadcast %326 : vector<16x1xf32> to vector<16x32xf32>
    %338 = arith.subf %322, %337 : vector<16x32xf32>
    %339 = vector.broadcast %336 : vector<16x1xf32> to vector<16x32xf32>
    %340 = arith.mulf %338, %339 : vector<16x32xf32>
    %c33 = arith.constant 33 : index
    %c0_114 = arith.constant 0 : index
    %341 = vector.load %arg6[%c33, %c0_114] : memref<40x128xf32, #tpu.memory_space<vmem>>, vector<1x32xf32>
    %342 = vector.broadcast %341 : vector<1x32xf32> to vector<16x32xf32>
    %343 = arith.mulf %340, %342 : vector<16x32xf32>
    %c34 = arith.constant 34 : index
    %c0_115 = arith.constant 0 : index
    %344 = vector.load %arg6[%c34, %c0_115] : memref<40x128xf32, #tpu.memory_space<vmem>>, vector<1x32xf32>
    %345 = vector.broadcast %344 : vector<1x32xf32> to vector<16x32xf32>
    %346 = arith.addf %343, %345 : vector<16x32xf32>
    %c640 = arith.constant 640 : index
    %c0_116 = arith.constant 0 : index
    %347 = vector.load %arg5[%c640, %c0_116] : memref<736x128xf32, #tpu.memory_space<vmem>>, vector<32x64xf32>
    %cst_117 = arith.constant dense<0.000000e+00> : vector<16x64xf32>
    %348 = tpu.matmul %346, %347, %cst_117 {dimension_numbers = #tpu.dot_dimension_numbers<[1], [0], [0], [1], [0, 0, 1, 1], [], []>} : vector<16x32xf32>, vector<32x64xf32>, vector<16x64xf32> -> vector<16x64xf32>
    %c31 = arith.constant 31 : index
    %c0_118 = arith.constant 0 : index
    %349 = vector.load %arg6[%c31, %c0_118] : memref<40x128xf32, #tpu.memory_space<vmem>>, vector<1x64xf32>
    %350 = vector.broadcast %349 : vector<1x64xf32> to vector<16x64xf32>
    %351 = arith.addf %348, %350 : vector<16x64xf32>
    %cst_119 = arith.constant 0.000000e+00 : f32
    %352 = vector.broadcast %cst_119 : f32 to vector<16x64xf32>
    %353 = arith.maximumf %351, %352 : vector<16x64xf32>
    %c672 = arith.constant 672 : index
    %c0_120 = arith.constant 0 : index
    %354 = vector.load %arg5[%c672, %c0_120] : memref<736x128xf32, #tpu.memory_space<vmem>>, vector<64x32xf32>
    %cst_121 = arith.constant dense<0.000000e+00> : vector<16x32xf32>
    %355 = tpu.matmul %353, %354, %cst_121 {dimension_numbers = #tpu.dot_dimension_numbers<[1], [0], [0], [1], [0, 0, 1, 1], [], []>} : vector<16x64xf32>, vector<64x32xf32>, vector<16x32xf32> -> vector<16x32xf32>
    %c32_122 = arith.constant 32 : index
    %c0_123 = arith.constant 0 : index
    %356 = vector.load %arg6[%c32_122, %c0_123] : memref<40x128xf32, #tpu.memory_space<vmem>>, vector<1x32xf32>
    %357 = vector.broadcast %356 : vector<1x32xf32> to vector<16x32xf32>
    %358 = arith.addf %355, %357 : vector<16x32xf32>
    %359 = arith.addf %346, %358 : vector<16x32xf32>
    %cst_124 = arith.constant dense<0.000000e+00> : vector<16xf32>
    %360 = vector.multi_reduction <add>, %359, %cst_124 [1] : vector<16x32xf32> to vector<16xf32>
    %361 = vector.shape_cast %360 : vector<16xf32> to vector<16x1xf32>
    %cst_125 = arith.constant 3.200000e+01 : f32
    %362 = vector.broadcast %cst_125 : f32 to vector<16x1xf32>
    %363 = arith.divf %361, %362 : vector<16x1xf32>
    %364 = arith.mulf %359, %359 : vector<16x32xf32>
    %cst_126 = arith.constant dense<0.000000e+00> : vector<16xf32>
    %365 = vector.multi_reduction <add>, %364, %cst_126 [1] : vector<16x32xf32> to vector<16xf32>
    %366 = vector.shape_cast %365 : vector<16xf32> to vector<16x1xf32>
    %cst_127 = arith.constant 3.200000e+01 : f32
    %367 = vector.broadcast %cst_127 : f32 to vector<16x1xf32>
    %368 = arith.divf %366, %367 : vector<16x1xf32>
    %369 = arith.mulf %363, %363 : vector<16x1xf32>
    %370 = arith.subf %368, %369 : vector<16x1xf32>
    %cst_128 = arith.constant 9.99999974E-6 : f32
    %371 = vector.broadcast %cst_128 : f32 to vector<16x1xf32>
    %372 = arith.addf %370, %371 : vector<16x1xf32>
    %373 = math.rsqrt %372 : vector<16x1xf32>
    %374 = vector.broadcast %363 : vector<16x1xf32> to vector<16x32xf32>
    %375 = arith.subf %359, %374 : vector<16x32xf32>
    %376 = vector.broadcast %373 : vector<16x1xf32> to vector<16x32xf32>
    %377 = arith.mulf %375, %376 : vector<16x32xf32>
    %c35 = arith.constant 35 : index
    %c0_129 = arith.constant 0 : index
    %378 = vector.load %arg6[%c35, %c0_129] : memref<40x128xf32, #tpu.memory_space<vmem>>, vector<1x32xf32>
    %379 = vector.broadcast %378 : vector<1x32xf32> to vector<16x32xf32>
    %380 = arith.mulf %377, %379 : vector<16x32xf32>
    %c36 = arith.constant 36 : index
    %c0_130 = arith.constant 0 : index
    %381 = vector.load %arg6[%c36, %c0_130] : memref<40x128xf32, #tpu.memory_space<vmem>>, vector<1x32xf32>
    %382 = vector.broadcast %381 : vector<1x32xf32> to vector<16x32xf32>
    %383 = arith.addf %380, %382 : vector<16x32xf32>
    %c32_131 = arith.constant 32 : index
    %c0_132 = arith.constant 0 : index
    %384 = vector.load %arg5[%c32_131, %c0_132] : memref<736x128xf32, #tpu.memory_space<vmem>>, vector<32x32xf32>
    %cst_133 = arith.constant dense<0.000000e+00> : vector<16x32xf32>
    %385 = tpu.matmul %89, %384, %cst_133 {dimension_numbers = #tpu.dot_dimension_numbers<[1], [0], [0], [1], [0, 0, 1, 1], [], []>} : vector<16x32xf32>, vector<32x32xf32>, vector<16x32xf32> -> vector<16x32xf32>
    %c2_134 = arith.constant 2 : index
    %c0_135 = arith.constant 0 : index
    %386 = vector.load %arg6[%c2_134, %c0_135] : memref<40x128xf32, #tpu.memory_space<vmem>>, vector<1x32xf32>
    %387 = vector.broadcast %386 : vector<1x32xf32> to vector<16x32xf32>
    %388 = arith.addf %385, %387 : vector<16x32xf32>
    %c64_136 = arith.constant 64 : index
    %c0_137 = arith.constant 0 : index
    %389 = vector.load %arg5[%c64_136, %c0_137] : memref<736x128xf32, #tpu.memory_space<vmem>>, vector<32x32xf32>
    %cst_138 = arith.constant dense<0.000000e+00> : vector<16x32xf32>
    %390 = tpu.matmul %89, %389, %cst_138 {dimension_numbers = #tpu.dot_dimension_numbers<[1], [0], [0], [1], [0, 0, 1, 1], [], []>} : vector<16x32xf32>, vector<32x32xf32>, vector<16x32xf32> -> vector<16x32xf32>
    %c3_139 = arith.constant 3 : index
    %c0_140 = arith.constant 0 : index
    %391 = vector.load %arg6[%c3_139, %c0_140] : memref<40x128xf32, #tpu.memory_space<vmem>>, vector<1x32xf32>
    %392 = vector.broadcast %391 : vector<1x32xf32> to vector<16x32xf32>
    %393 = arith.addf %390, %392 : vector<16x32xf32>
    %c96_141 = arith.constant 96 : index
    %c0_142 = arith.constant 0 : index
    %394 = vector.load %arg5[%c96_141, %c0_142] : memref<736x128xf32, #tpu.memory_space<vmem>>, vector<32x32xf32>
    %cst_143 = arith.constant dense<0.000000e+00> : vector<16x32xf32>
    %395 = tpu.matmul %89, %394, %cst_143 {dimension_numbers = #tpu.dot_dimension_numbers<[1], [0], [0], [1], [0, 0, 1, 1], [], []>} : vector<16x32xf32>, vector<32x32xf32>, vector<16x32xf32> -> vector<16x32xf32>
    %c4_144 = arith.constant 4 : index
    %c0_145 = arith.constant 0 : index
    %396 = vector.load %arg6[%c4_144, %c0_145] : memref<40x128xf32, #tpu.memory_space<vmem>>, vector<1x32xf32>
    %397 = vector.broadcast %396 : vector<1x32xf32> to vector<16x32xf32>
    %398 = arith.addf %395, %397 : vector<16x32xf32>
    %399 = vector.extract_strided_slice %388 {offsets = [0, 0], sizes = [8, 32], strides = [1, 1]} : vector<16x32xf32> to vector<8x32xf32>
    %400 = vector.extract_strided_slice %393 {offsets = [0, 0], sizes = [8, 32], strides = [1, 1]} : vector<16x32xf32> to vector<8x32xf32>
    %401 = vector.extract_strided_slice %398 {offsets = [0, 0], sizes = [8, 32], strides = [1, 1]} : vector<16x32xf32> to vector<8x32xf32>
    %402 = tpu.concatenate %400, %400, %400, %400 in 0 : vector<8x32xf32>, vector<8x32xf32>, vector<8x32xf32>, vector<8x32xf32> -> vector<32x32xf32>
    %403 = arith.mulf %402, %159 : vector<32x32xf32>
    %404 = tpu.concatenate %401, %401, %401, %401 in 0 : vector<8x32xf32>, vector<8x32xf32>, vector<8x32xf32>, vector<8x32xf32> -> vector<32x32xf32>
    %405 = arith.mulf %404, %159 : vector<32x32xf32>
    %cst_146 = arith.constant dense<0.000000e+00> : vector<8x32xf32>
    %406 = tpu.matmul %399, %403, %cst_146 {dimension_numbers = #tpu.dot_dimension_numbers<[1], [1], [0], [0], [0, 0, 1, 0], [], []>} : vector<8x32xf32>, vector<32x32xf32>, vector<8x32xf32> -> vector<8x32xf32>
    %cst_147 = arith.constant 0.353553385 : f32
    %407 = vector.broadcast %cst_147 : f32 to vector<8x32xf32>
    %408 = arith.mulf %406, %407 : vector<8x32xf32>
    %cst_148 = arith.constant dense<0xFF800000> : vector<8xf32>
    %409 = vector.multi_reduction <maximumf>, %408, %cst_148 [1] : vector<8x32xf32> to vector<8xf32>
    %410 = vector.shape_cast %409 : vector<8xf32> to vector<8x1xf32>
    %411 = vector.broadcast %410 : vector<8x1xf32> to vector<8x32xf32>
    %412 = arith.subf %408, %411 : vector<8x32xf32>
    %413 = math.exp %412 : vector<8x32xf32>
    %cst_149 = arith.constant dense<0.000000e+00> : vector<8x32xf32>
    %414 = tpu.matmul %413, %159, %cst_149 {dimension_numbers = #tpu.dot_dimension_numbers<[1], [0], [0], [1], [0, 0, 1, 1], [], []>} : vector<8x32xf32>, vector<32x32xf32>, vector<8x32xf32> -> vector<8x32xf32>
    %415 = tpu.reciprocal %414 {approx = true} : vector<8x32xf32> -> vector<8x32xf32>
    %416 = arith.mulf %413, %415 : vector<8x32xf32>
    %cst_150 = arith.constant dense<0.000000e+00> : vector<8x32xf32>
    %417 = tpu.matmul %416, %405, %cst_150 {dimension_numbers = #tpu.dot_dimension_numbers<[1], [0], [0], [1], [0, 0, 1, 1], [], []>} : vector<8x32xf32>, vector<32x32xf32>, vector<8x32xf32> -> vector<8x32xf32>
    %418 = vector.extract_strided_slice %388 {offsets = [8, 0], sizes = [8, 32], strides = [1, 1]} : vector<16x32xf32> to vector<8x32xf32>
    %419 = vector.extract_strided_slice %393 {offsets = [8, 0], sizes = [8, 32], strides = [1, 1]} : vector<16x32xf32> to vector<8x32xf32>
    %420 = vector.extract_strided_slice %398 {offsets = [8, 0], sizes = [8, 32], strides = [1, 1]} : vector<16x32xf32> to vector<8x32xf32>
    %421 = tpu.concatenate %419, %419, %419, %419 in 0 : vector<8x32xf32>, vector<8x32xf32>, vector<8x32xf32>, vector<8x32xf32> -> vector<32x32xf32>
    %422 = arith.mulf %421, %159 : vector<32x32xf32>
    %423 = tpu.concatenate %420, %420, %420, %420 in 0 : vector<8x32xf32>, vector<8x32xf32>, vector<8x32xf32>, vector<8x32xf32> -> vector<32x32xf32>
    %424 = arith.mulf %423, %159 : vector<32x32xf32>
    %cst_151 = arith.constant dense<0.000000e+00> : vector<8x32xf32>
    %425 = tpu.matmul %418, %422, %cst_151 {dimension_numbers = #tpu.dot_dimension_numbers<[1], [1], [0], [0], [0, 0, 1, 0], [], []>} : vector<8x32xf32>, vector<32x32xf32>, vector<8x32xf32> -> vector<8x32xf32>
    %cst_152 = arith.constant 0.353553385 : f32
    %426 = vector.broadcast %cst_152 : f32 to vector<8x32xf32>
    %427 = arith.mulf %425, %426 : vector<8x32xf32>
    %cst_153 = arith.constant dense<0xFF800000> : vector<8xf32>
    %428 = vector.multi_reduction <maximumf>, %427, %cst_153 [1] : vector<8x32xf32> to vector<8xf32>
    %429 = vector.shape_cast %428 : vector<8xf32> to vector<8x1xf32>
    %430 = vector.broadcast %429 : vector<8x1xf32> to vector<8x32xf32>
    %431 = arith.subf %427, %430 : vector<8x32xf32>
    %432 = math.exp %431 : vector<8x32xf32>
    %cst_154 = arith.constant dense<0.000000e+00> : vector<8x32xf32>
    %433 = tpu.matmul %432, %159, %cst_154 {dimension_numbers = #tpu.dot_dimension_numbers<[1], [0], [0], [1], [0, 0, 1, 1], [], []>} : vector<8x32xf32>, vector<32x32xf32>, vector<8x32xf32> -> vector<8x32xf32>
    %434 = tpu.reciprocal %433 {approx = true} : vector<8x32xf32> -> vector<8x32xf32>
    %435 = arith.mulf %432, %434 : vector<8x32xf32>
    %cst_155 = arith.constant dense<0.000000e+00> : vector<8x32xf32>
    %436 = tpu.matmul %435, %424, %cst_155 {dimension_numbers = #tpu.dot_dimension_numbers<[1], [0], [0], [1], [0, 0, 1, 1], [], []>} : vector<8x32xf32>, vector<32x32xf32>, vector<8x32xf32> -> vector<8x32xf32>
    %437 = tpu.concatenate %417, %436 in 0 : vector<8x32xf32>, vector<8x32xf32> -> vector<16x32xf32>
    %c128_156 = arith.constant 128 : index
    %c0_157 = arith.constant 0 : index
    %438 = vector.load %arg5[%c128_156, %c0_157] : memref<736x128xf32, #tpu.memory_space<vmem>>, vector<32x32xf32>
    %cst_158 = arith.constant dense<0.000000e+00> : vector<16x32xf32>
    %439 = tpu.matmul %437, %438, %cst_158 {dimension_numbers = #tpu.dot_dimension_numbers<[1], [0], [0], [1], [0, 0, 1, 1], [], []>} : vector<16x32xf32>, vector<32x32xf32>, vector<16x32xf32> -> vector<16x32xf32>
    %c5_159 = arith.constant 5 : index
    %c0_160 = arith.constant 0 : index
    %440 = vector.load %arg6[%c5_159, %c0_160] : memref<40x128xf32, #tpu.memory_space<vmem>>, vector<1x32xf32>
    %441 = vector.broadcast %440 : vector<1x32xf32> to vector<16x32xf32>
    %442 = arith.addf %439, %441 : vector<16x32xf32>
    %cst_161 = arith.constant dense<0.000000e+00> : vector<16xf32>
    %443 = vector.multi_reduction <add>, %442, %cst_161 [1] : vector<16x32xf32> to vector<16xf32>
    %444 = vector.shape_cast %443 : vector<16xf32> to vector<16x1xf32>
    %cst_162 = arith.constant 3.200000e+01 : f32
    %445 = vector.broadcast %cst_162 : f32 to vector<16x1xf32>
    %446 = arith.divf %444, %445 : vector<16x1xf32>
    %447 = arith.mulf %442, %442 : vector<16x32xf32>
    %cst_163 = arith.constant dense<0.000000e+00> : vector<16xf32>
    %448 = vector.multi_reduction <add>, %447, %cst_163 [1] : vector<16x32xf32> to vector<16xf32>
    %449 = vector.shape_cast %448 : vector<16xf32> to vector<16x1xf32>
    %cst_164 = arith.constant 3.200000e+01 : f32
    %450 = vector.broadcast %cst_164 : f32 to vector<16x1xf32>
    %451 = arith.divf %449, %450 : vector<16x1xf32>
    %452 = arith.mulf %446, %446 : vector<16x1xf32>
    %453 = arith.subf %451, %452 : vector<16x1xf32>
    %cst_165 = arith.constant 9.99999974E-6 : f32
    %454 = vector.broadcast %cst_165 : f32 to vector<16x1xf32>
    %455 = arith.addf %453, %454 : vector<16x1xf32>
    %456 = math.rsqrt %455 : vector<16x1xf32>
    %457 = vector.broadcast %446 : vector<16x1xf32> to vector<16x32xf32>
    %458 = arith.subf %442, %457 : vector<16x32xf32>
    %459 = vector.broadcast %456 : vector<16x1xf32> to vector<16x32xf32>
    %460 = arith.mulf %458, %459 : vector<16x32xf32>
    %c19 = arith.constant 19 : index
    %c0_166 = arith.constant 0 : index
    %461 = vector.load %arg6[%c19, %c0_166] : memref<40x128xf32, #tpu.memory_space<vmem>>, vector<1x32xf32>
    %462 = vector.broadcast %461 : vector<1x32xf32> to vector<16x32xf32>
    %463 = arith.mulf %460, %462 : vector<16x32xf32>
    %c20 = arith.constant 20 : index
    %c0_167 = arith.constant 0 : index
    %464 = vector.load %arg6[%c20, %c0_167] : memref<40x128xf32, #tpu.memory_space<vmem>>, vector<1x32xf32>
    %465 = vector.broadcast %464 : vector<1x32xf32> to vector<16x32xf32>
    %466 = arith.addf %463, %465 : vector<16x32xf32>
    %467 = arith.addf %89, %466 : vector<16x32xf32>
    %c160 = arith.constant 160 : index
    %c0_168 = arith.constant 0 : index
    %468 = vector.load %arg5[%c160, %c0_168] : memref<736x128xf32, #tpu.memory_space<vmem>>, vector<32x32xf32>
    %cst_169 = arith.constant dense<0.000000e+00> : vector<16x32xf32>
    %469 = tpu.matmul %467, %468, %cst_169 {dimension_numbers = #tpu.dot_dimension_numbers<[1], [0], [0], [1], [0, 0, 1, 1], [], []>} : vector<16x32xf32>, vector<32x32xf32>, vector<16x32xf32> -> vector<16x32xf32>
    %c6 = arith.constant 6 : index
    %c0_170 = arith.constant 0 : index
    %470 = vector.load %arg6[%c6, %c0_170] : memref<40x128xf32, #tpu.memory_space<vmem>>, vector<1x32xf32>
    %471 = vector.broadcast %470 : vector<1x32xf32> to vector<16x32xf32>
    %472 = arith.addf %469, %471 : vector<16x32xf32>
    %c192 = arith.constant 192 : index
    %c0_171 = arith.constant 0 : index
    %473 = vector.load %arg5[%c192, %c0_171] : memref<736x128xf32, #tpu.memory_space<vmem>>, vector<32x32xf32>
    %cst_172 = arith.constant dense<0.000000e+00> : vector<16x32xf32>
    %474 = tpu.matmul %383, %473, %cst_172 {dimension_numbers = #tpu.dot_dimension_numbers<[1], [0], [0], [1], [0, 0, 1, 1], [], []>} : vector<16x32xf32>, vector<32x32xf32>, vector<16x32xf32> -> vector<16x32xf32>
    %c7 = arith.constant 7 : index
    %c0_173 = arith.constant 0 : index
    %475 = vector.load %arg6[%c7, %c0_173] : memref<40x128xf32, #tpu.memory_space<vmem>>, vector<1x32xf32>
    %476 = vector.broadcast %475 : vector<1x32xf32> to vector<16x32xf32>
    %477 = arith.addf %474, %476 : vector<16x32xf32>
    %c224 = arith.constant 224 : index
    %c0_174 = arith.constant 0 : index
    %478 = vector.load %arg5[%c224, %c0_174] : memref<736x128xf32, #tpu.memory_space<vmem>>, vector<32x32xf32>
    %cst_175 = arith.constant dense<0.000000e+00> : vector<16x32xf32>
    %479 = tpu.matmul %383, %478, %cst_175 {dimension_numbers = #tpu.dot_dimension_numbers<[1], [0], [0], [1], [0, 0, 1, 1], [], []>} : vector<16x32xf32>, vector<32x32xf32>, vector<16x32xf32> -> vector<16x32xf32>
    %c8_176 = arith.constant 8 : index
    %c0_177 = arith.constant 0 : index
    %480 = vector.load %arg6[%c8_176, %c0_177] : memref<40x128xf32, #tpu.memory_space<vmem>>, vector<1x32xf32>
    %481 = vector.broadcast %480 : vector<1x32xf32> to vector<16x32xf32>
    %482 = arith.addf %479, %481 : vector<16x32xf32>
    %483 = vector.extract_strided_slice %472 {offsets = [0, 0], sizes = [8, 32], strides = [1, 1]} : vector<16x32xf32> to vector<8x32xf32>
    %484 = vector.extract_strided_slice %477 {offsets = [0, 0], sizes = [8, 32], strides = [1, 1]} : vector<16x32xf32> to vector<8x32xf32>
    %485 = vector.extract_strided_slice %482 {offsets = [0, 0], sizes = [8, 32], strides = [1, 1]} : vector<16x32xf32> to vector<8x32xf32>
    %486 = tpu.concatenate %484, %484, %484, %484 in 0 : vector<8x32xf32>, vector<8x32xf32>, vector<8x32xf32>, vector<8x32xf32> -> vector<32x32xf32>
    %487 = arith.mulf %486, %159 : vector<32x32xf32>
    %488 = tpu.concatenate %485, %485, %485, %485 in 0 : vector<8x32xf32>, vector<8x32xf32>, vector<8x32xf32>, vector<8x32xf32> -> vector<32x32xf32>
    %489 = arith.mulf %488, %159 : vector<32x32xf32>
    %cst_178 = arith.constant dense<0.000000e+00> : vector<8x32xf32>
    %490 = tpu.matmul %483, %487, %cst_178 {dimension_numbers = #tpu.dot_dimension_numbers<[1], [1], [0], [0], [0, 0, 1, 0], [], []>} : vector<8x32xf32>, vector<32x32xf32>, vector<8x32xf32> -> vector<8x32xf32>
    %cst_179 = arith.constant 0.353553385 : f32
    %491 = vector.broadcast %cst_179 : f32 to vector<8x32xf32>
    %492 = arith.mulf %490, %491 : vector<8x32xf32>
    %cst_180 = arith.constant dense<0xFF800000> : vector<8xf32>
    %493 = vector.multi_reduction <maximumf>, %492, %cst_180 [1] : vector<8x32xf32> to vector<8xf32>
    %494 = vector.shape_cast %493 : vector<8xf32> to vector<8x1xf32>
    %495 = vector.broadcast %494 : vector<8x1xf32> to vector<8x32xf32>
    %496 = arith.subf %492, %495 : vector<8x32xf32>
    %497 = math.exp %496 : vector<8x32xf32>
    %cst_181 = arith.constant dense<0.000000e+00> : vector<8x32xf32>
    %498 = tpu.matmul %497, %159, %cst_181 {dimension_numbers = #tpu.dot_dimension_numbers<[1], [0], [0], [1], [0, 0, 1, 1], [], []>} : vector<8x32xf32>, vector<32x32xf32>, vector<8x32xf32> -> vector<8x32xf32>
    %499 = tpu.reciprocal %498 {approx = true} : vector<8x32xf32> -> vector<8x32xf32>
    %500 = arith.mulf %497, %499 : vector<8x32xf32>
    %cst_182 = arith.constant dense<0.000000e+00> : vector<8x32xf32>
    %501 = tpu.matmul %500, %489, %cst_182 {dimension_numbers = #tpu.dot_dimension_numbers<[1], [0], [0], [1], [0, 0, 1, 1], [], []>} : vector<8x32xf32>, vector<32x32xf32>, vector<8x32xf32> -> vector<8x32xf32>
    %502 = vector.extract_strided_slice %472 {offsets = [8, 0], sizes = [8, 32], strides = [1, 1]} : vector<16x32xf32> to vector<8x32xf32>
    %503 = vector.extract_strided_slice %477 {offsets = [8, 0], sizes = [8, 32], strides = [1, 1]} : vector<16x32xf32> to vector<8x32xf32>
    %504 = vector.extract_strided_slice %482 {offsets = [8, 0], sizes = [8, 32], strides = [1, 1]} : vector<16x32xf32> to vector<8x32xf32>
    %505 = tpu.concatenate %503, %503, %503, %503 in 0 : vector<8x32xf32>, vector<8x32xf32>, vector<8x32xf32>, vector<8x32xf32> -> vector<32x32xf32>
    %506 = arith.mulf %505, %159 : vector<32x32xf32>
    %507 = tpu.concatenate %504, %504, %504, %504 in 0 : vector<8x32xf32>, vector<8x32xf32>, vector<8x32xf32>, vector<8x32xf32> -> vector<32x32xf32>
    %508 = arith.mulf %507, %159 : vector<32x32xf32>
    %cst_183 = arith.constant dense<0.000000e+00> : vector<8x32xf32>
    %509 = tpu.matmul %502, %506, %cst_183 {dimension_numbers = #tpu.dot_dimension_numbers<[1], [1], [0], [0], [0, 0, 1, 0], [], []>} : vector<8x32xf32>, vector<32x32xf32>, vector<8x32xf32> -> vector<8x32xf32>
    %cst_184 = arith.constant 0.353553385 : f32
    %510 = vector.broadcast %cst_184 : f32 to vector<8x32xf32>
    %511 = arith.mulf %509, %510 : vector<8x32xf32>
    %cst_185 = arith.constant dense<0xFF800000> : vector<8xf32>
    %512 = vector.multi_reduction <maximumf>, %511, %cst_185 [1] : vector<8x32xf32> to vector<8xf32>
    %513 = vector.shape_cast %512 : vector<8xf32> to vector<8x1xf32>
    %514 = vector.broadcast %513 : vector<8x1xf32> to vector<8x32xf32>
    %515 = arith.subf %511, %514 : vector<8x32xf32>
    %516 = math.exp %515 : vector<8x32xf32>
    %cst_186 = arith.constant dense<0.000000e+00> : vector<8x32xf32>
    %517 = tpu.matmul %516, %159, %cst_186 {dimension_numbers = #tpu.dot_dimension_numbers<[1], [0], [0], [1], [0, 0, 1, 1], [], []>} : vector<8x32xf32>, vector<32x32xf32>, vector<8x32xf32> -> vector<8x32xf32>
    %518 = tpu.reciprocal %517 {approx = true} : vector<8x32xf32> -> vector<8x32xf32>
    %519 = arith.mulf %516, %518 : vector<8x32xf32>
    %cst_187 = arith.constant dense<0.000000e+00> : vector<8x32xf32>
    %520 = tpu.matmul %519, %508, %cst_187 {dimension_numbers = #tpu.dot_dimension_numbers<[1], [0], [0], [1], [0, 0, 1, 1], [], []>} : vector<8x32xf32>, vector<32x32xf32>, vector<8x32xf32> -> vector<8x32xf32>
    %521 = tpu.concatenate %501, %520 in 0 : vector<8x32xf32>, vector<8x32xf32> -> vector<16x32xf32>
    %c256 = arith.constant 256 : index
    %c0_188 = arith.constant 0 : index
    %522 = vector.load %arg5[%c256, %c0_188] : memref<736x128xf32, #tpu.memory_space<vmem>>, vector<32x32xf32>
    %cst_189 = arith.constant dense<0.000000e+00> : vector<16x32xf32>
    %523 = tpu.matmul %521, %522, %cst_189 {dimension_numbers = #tpu.dot_dimension_numbers<[1], [0], [0], [1], [0, 0, 1, 1], [], []>} : vector<16x32xf32>, vector<32x32xf32>, vector<16x32xf32> -> vector<16x32xf32>
    %c9 = arith.constant 9 : index
    %c0_190 = arith.constant 0 : index
    %524 = vector.load %arg6[%c9, %c0_190] : memref<40x128xf32, #tpu.memory_space<vmem>>, vector<1x32xf32>
    %525 = vector.broadcast %524 : vector<1x32xf32> to vector<16x32xf32>
    %526 = arith.addf %523, %525 : vector<16x32xf32>
    %527 = arith.addf %467, %526 : vector<16x32xf32>
    %cst_191 = arith.constant dense<0.000000e+00> : vector<16xf32>
    %528 = vector.multi_reduction <add>, %527, %cst_191 [1] : vector<16x32xf32> to vector<16xf32>
    %529 = vector.shape_cast %528 : vector<16xf32> to vector<16x1xf32>
    %cst_192 = arith.constant 3.200000e+01 : f32
    %530 = vector.broadcast %cst_192 : f32 to vector<16x1xf32>
    %531 = arith.divf %529, %530 : vector<16x1xf32>
    %532 = arith.mulf %527, %527 : vector<16x32xf32>
    %cst_193 = arith.constant dense<0.000000e+00> : vector<16xf32>
    %533 = vector.multi_reduction <add>, %532, %cst_193 [1] : vector<16x32xf32> to vector<16xf32>
    %534 = vector.shape_cast %533 : vector<16xf32> to vector<16x1xf32>
    %cst_194 = arith.constant 3.200000e+01 : f32
    %535 = vector.broadcast %cst_194 : f32 to vector<16x1xf32>
    %536 = arith.divf %534, %535 : vector<16x1xf32>
    %537 = arith.mulf %531, %531 : vector<16x1xf32>
    %538 = arith.subf %536, %537 : vector<16x1xf32>
    %cst_195 = arith.constant 9.99999974E-6 : f32
    %539 = vector.broadcast %cst_195 : f32 to vector<16x1xf32>
    %540 = arith.addf %538, %539 : vector<16x1xf32>
    %541 = math.rsqrt %540 : vector<16x1xf32>
    %542 = vector.broadcast %531 : vector<16x1xf32> to vector<16x32xf32>
    %543 = arith.subf %527, %542 : vector<16x32xf32>
    %544 = vector.broadcast %541 : vector<16x1xf32> to vector<16x32xf32>
    %545 = arith.mulf %543, %544 : vector<16x32xf32>
    %c21 = arith.constant 21 : index
    %c0_196 = arith.constant 0 : index
    %546 = vector.load %arg6[%c21, %c0_196] : memref<40x128xf32, #tpu.memory_space<vmem>>, vector<1x32xf32>
    %547 = vector.broadcast %546 : vector<1x32xf32> to vector<16x32xf32>
    %548 = arith.mulf %545, %547 : vector<16x32xf32>
    %c22 = arith.constant 22 : index
    %c0_197 = arith.constant 0 : index
    %549 = vector.load %arg6[%c22, %c0_197] : memref<40x128xf32, #tpu.memory_space<vmem>>, vector<1x32xf32>
    %550 = vector.broadcast %549 : vector<1x32xf32> to vector<16x32xf32>
    %551 = arith.addf %548, %550 : vector<16x32xf32>
    %c384 = arith.constant 384 : index
    %c0_198 = arith.constant 0 : index
    %552 = vector.load %arg5[%c384, %c0_198] : memref<736x128xf32, #tpu.memory_space<vmem>>, vector<32x64xf32>
    %cst_199 = arith.constant dense<0.000000e+00> : vector<16x64xf32>
    %553 = tpu.matmul %551, %552, %cst_199 {dimension_numbers = #tpu.dot_dimension_numbers<[1], [0], [0], [1], [0, 0, 1, 1], [], []>} : vector<16x32xf32>, vector<32x64xf32>, vector<16x64xf32> -> vector<16x64xf32>
    %c12 = arith.constant 12 : index
    %c0_200 = arith.constant 0 : index
    %554 = vector.load %arg6[%c12, %c0_200] : memref<40x128xf32, #tpu.memory_space<vmem>>, vector<1x64xf32>
    %555 = vector.broadcast %554 : vector<1x64xf32> to vector<16x64xf32>
    %556 = arith.addf %553, %555 : vector<16x64xf32>
    %cst_201 = arith.constant 0.000000e+00 : f32
    %557 = vector.broadcast %cst_201 : f32 to vector<16x64xf32>
    %558 = arith.maximumf %556, %557 : vector<16x64xf32>
    %c416 = arith.constant 416 : index
    %c0_202 = arith.constant 0 : index
    %559 = vector.load %arg5[%c416, %c0_202] : memref<736x128xf32, #tpu.memory_space<vmem>>, vector<64x32xf32>
    %cst_203 = arith.constant dense<0.000000e+00> : vector<16x32xf32>
    %560 = tpu.matmul %558, %559, %cst_203 {dimension_numbers = #tpu.dot_dimension_numbers<[1], [0], [0], [1], [0, 0, 1, 1], [], []>} : vector<16x64xf32>, vector<64x32xf32>, vector<16x32xf32> -> vector<16x32xf32>
    %c13 = arith.constant 13 : index
    %c0_204 = arith.constant 0 : index
    %561 = vector.load %arg6[%c13, %c0_204] : memref<40x128xf32, #tpu.memory_space<vmem>>, vector<1x32xf32>
    %562 = vector.broadcast %561 : vector<1x32xf32> to vector<16x32xf32>
    %563 = arith.addf %560, %562 : vector<16x32xf32>
    %564 = arith.addf %527, %563 : vector<16x32xf32>
    %cst_205 = arith.constant dense<0.000000e+00> : vector<16xf32>
    %565 = vector.multi_reduction <add>, %564, %cst_205 [1] : vector<16x32xf32> to vector<16xf32>
    %566 = vector.shape_cast %565 : vector<16xf32> to vector<16x1xf32>
    %cst_206 = arith.constant 3.200000e+01 : f32
    %567 = vector.broadcast %cst_206 : f32 to vector<16x1xf32>
    %568 = arith.divf %566, %567 : vector<16x1xf32>
    %569 = arith.mulf %564, %564 : vector<16x32xf32>
    %cst_207 = arith.constant dense<0.000000e+00> : vector<16xf32>
    %570 = vector.multi_reduction <add>, %569, %cst_207 [1] : vector<16x32xf32> to vector<16xf32>
    %571 = vector.shape_cast %570 : vector<16xf32> to vector<16x1xf32>
    %cst_208 = arith.constant 3.200000e+01 : f32
    %572 = vector.broadcast %cst_208 : f32 to vector<16x1xf32>
    %573 = arith.divf %571, %572 : vector<16x1xf32>
    %574 = arith.mulf %568, %568 : vector<16x1xf32>
    %575 = arith.subf %573, %574 : vector<16x1xf32>
    %cst_209 = arith.constant 9.99999974E-6 : f32
    %576 = vector.broadcast %cst_209 : f32 to vector<16x1xf32>
    %577 = arith.addf %575, %576 : vector<16x1xf32>
    %578 = math.rsqrt %577 : vector<16x1xf32>
    %579 = vector.broadcast %568 : vector<16x1xf32> to vector<16x32xf32>
    %580 = arith.subf %564, %579 : vector<16x32xf32>
    %581 = vector.broadcast %578 : vector<16x1xf32> to vector<16x32xf32>
    %582 = arith.mulf %580, %581 : vector<16x32xf32>
    %c23 = arith.constant 23 : index
    %c0_210 = arith.constant 0 : index
    %583 = vector.load %arg6[%c23, %c0_210] : memref<40x128xf32, #tpu.memory_space<vmem>>, vector<1x32xf32>
    %584 = vector.broadcast %583 : vector<1x32xf32> to vector<16x32xf32>
    %585 = arith.mulf %582, %584 : vector<16x32xf32>
    %c24_211 = arith.constant 24 : index
    %c0_212 = arith.constant 0 : index
    %586 = vector.load %arg6[%c24_211, %c0_212] : memref<40x128xf32, #tpu.memory_space<vmem>>, vector<1x32xf32>
    %587 = vector.broadcast %586 : vector<1x32xf32> to vector<16x32xf32>
    %588 = arith.addf %585, %587 : vector<16x32xf32>
    %589 = arith.addf %551, %588 : vector<16x32xf32>
    %cst_213 = arith.constant dense<0.000000e+00> : vector<16xf32>
    %590 = vector.multi_reduction <add>, %589, %cst_213 [1] : vector<16x32xf32> to vector<16xf32>
    %591 = vector.shape_cast %590 : vector<16xf32> to vector<16x1xf32>
    %cst_214 = arith.constant 3.200000e+01 : f32
    %592 = vector.broadcast %cst_214 : f32 to vector<16x1xf32>
    %593 = arith.divf %591, %592 : vector<16x1xf32>
    %594 = arith.mulf %589, %589 : vector<16x32xf32>
    %cst_215 = arith.constant dense<0.000000e+00> : vector<16xf32>
    %595 = vector.multi_reduction <add>, %594, %cst_215 [1] : vector<16x32xf32> to vector<16xf32>
    %596 = vector.shape_cast %595 : vector<16xf32> to vector<16x1xf32>
    %cst_216 = arith.constant 3.200000e+01 : f32
    %597 = vector.broadcast %cst_216 : f32 to vector<16x1xf32>
    %598 = arith.divf %596, %597 : vector<16x1xf32>
    %599 = arith.mulf %593, %593 : vector<16x1xf32>
    %600 = arith.subf %598, %599 : vector<16x1xf32>
    %cst_217 = arith.constant 9.99999974E-6 : f32
    %601 = vector.broadcast %cst_217 : f32 to vector<16x1xf32>
    %602 = arith.addf %600, %601 : vector<16x1xf32>
    %603 = math.rsqrt %602 : vector<16x1xf32>
    %604 = vector.broadcast %593 : vector<16x1xf32> to vector<16x32xf32>
    %605 = arith.subf %589, %604 : vector<16x32xf32>
    %606 = vector.broadcast %603 : vector<16x1xf32> to vector<16x32xf32>
    %607 = arith.mulf %605, %606 : vector<16x32xf32>
    %c25 = arith.constant 25 : index
    %c0_218 = arith.constant 0 : index
    %608 = vector.load %arg6[%c25, %c0_218] : memref<40x128xf32, #tpu.memory_space<vmem>>, vector<1x32xf32>
    %609 = vector.broadcast %608 : vector<1x32xf32> to vector<16x32xf32>
    %610 = arith.mulf %607, %609 : vector<16x32xf32>
    %c26 = arith.constant 26 : index
    %c0_219 = arith.constant 0 : index
    %611 = vector.load %arg6[%c26, %c0_219] : memref<40x128xf32, #tpu.memory_space<vmem>>, vector<1x32xf32>
    %612 = vector.broadcast %611 : vector<1x32xf32> to vector<16x32xf32>
    %613 = arith.addf %610, %612 : vector<16x32xf32>
    %c480 = arith.constant 480 : index
    %c0_220 = arith.constant 0 : index
    %614 = vector.load %arg5[%c480, %c0_220] : memref<736x128xf32, #tpu.memory_space<vmem>>, vector<32x1xf32>
    %cst_221 = arith.constant dense<0.000000e+00> : vector<16x1xf32>
    %615 = tpu.matmul %613, %614, %cst_221 {dimension_numbers = #tpu.dot_dimension_numbers<[1], [0], [0], [1], [0, 0, 1, 1], [], []>} : vector<16x32xf32>, vector<32x1xf32>, vector<16x1xf32> -> vector<16x1xf32>
    %c14 = arith.constant 14 : index
    %c0_222 = arith.constant 0 : index
    %616 = vector.load %arg6[%c14, %c0_222] : memref<40x128xf32, #tpu.memory_space<vmem>>, vector<1x1xf32>
    %617 = vector.broadcast %616 : vector<1x1xf32> to vector<16x1xf32>
    %618 = arith.addf %615, %617 : vector<16x1xf32>
    %c0_223 = arith.constant 0 : index
    %c0_224 = arith.constant 0 : index
    %619 = vector.load %arg7[%c0_223, %c0_224] : memref<16x1xf32, #tpu.memory_space<vmem>>, vector<16x1xf32>
    tpu.vector_store %arg7[%c0_223, %c0_224], %618 {strides = array<i32>} : memref<16x1xf32, #tpu.memory_space<vmem>>, vector<16x1xf32>,
    return
  }
  func.func @transform_0(%arg0: i32) -> (i32, i32) {
    %c0_i32 = arith.constant 0 : i32
    %c0_i32_0 = arith.constant 0 : i32
    %c0_i32_1 = arith.constant 0 : i32
    return %c0_i32, %c0_i32_0 : i32, i32
  }
  func.func @transform_1(%arg0: i32) -> (i32, i32) {
    %c0_i32 = arith.constant 0 : i32
    %c0_i32_0 = arith.constant 0 : i32
    %c0_i32_1 = arith.constant 0 : i32
    return %c0_i32, %c0_i32_0 : i32, i32
  }
  func.func @transform_2(%arg0: i32) -> (i32, i32) {
    %c0_i32 = arith.constant 0 : i32
    %c0_i32_0 = arith.constant 0 : i32
    %c0_i32_1 = arith.constant 0 : i32
    return %c0_i32, %c0_i32_0 : i32, i32
  }
  func.func @transform_3(%arg0: i32) -> (i32, i32) {
    %c0_i32 = arith.constant 0 : i32
    %c0_i32_0 = arith.constant 0 : i32
    %c0_i32_1 = arith.constant 0 : i32
    return %c0_i32, %c0_i32_0 : i32, i32
  }
  func.func @transform_4(%arg0: i32) -> (i32, i32) {
    %c0_i32 = arith.constant 0 : i32
    %c0_i32_0 = arith.constant 0 : i32
    %c0_i32_1 = arith.constant 0 : i32
    return %c0_i32, %c0_i32_0 : i32, i32
  }
  func.func @transform_5(%arg0: i32) -> (i32, i32) {
    %c0_i32 = arith.constant 0 : i32
    %c0_i32_0 = arith.constant 0 : i32
    %c0_i32_1 = arith.constant 0 : i32
    return %c0_i32, %c0_i32_0 : i32, i32
  }
  func.func @transform_6(%arg0: i32) -> (i32, i32) {
    %c0_i32 = arith.constant 0 : i32
    %c0_i32_0 = arith.constant 0 : i32
    %c0_i32_1 = arith.constant 0 : i32
    return %c0_i32, %c0_i32_0 : i32, i32
  }
}

</mosaic_0001>

<bundles_post_ra>
// kernel: transformer_time_series_forward.1
= control target key start
LH: loop header
LB: loop body
LE: loop exit
PB: predicated region body
PF: predicated region fallthrough
CT: control target
= control target key end

     0   :  { %11 = vsyncpa [#allocation3], 0  ;;  %s6718_s21 = smov [#allocation2]   ;;  %s7607_s0 = inlined_call_operand.vmem [shape: f32[16,1], index: 0, kind: input, shape index: {}]   ;;  %s7608_s1 = inlined_call_operand.vmem [shape: f32[16,1], index: 1, kind: input, shape index: {}]   ;;  %s7609_s2 = inlined_call_operand.vmem [shape: f32[16,4], index: 2, kind: input, shape index: {}]   ;;  %s7610_s3 = inlined_call_operand.vmem [shape: f32[16,4], index: 3, kind: input, shape index: {}]   ;;  %s7611_s4 = inlined_call_operand.hbm [shape: f32[736,128], index: 4, kind: input, shape index: {}]   ;;  %s7612_s5 = inlined_call_operand.vmem [shape: f32[40,128], index: 5, kind: input, shape index: {}]   ;;  %s7613_s6 = inlined_call_operand.vmem [shape: f32[16,1], index: 6, kind: output, shape index: {}]  }
   0x1   :  { %s25_s22 = sshll.u32 %s6718_s21, 4  ;;  %s6694_s25 = scalar_lea.hbm %s7611_s4, 11776  ;;  %s26_s22 = int_to_ptr.vmem [resolvable:$true] %s25_s22 }
   0x2   :  { %p6695_p0 = scmp.ne.s32.totalorder %s7611_s4, %s6694_s25  ;;  %p6698_p1 = scmp.lt.u32.totalorder %s6694_s25, %s7611_s4 }
   0x4   :  { %p6700_p2 = pnand %p6698_p1, %p6695_p0 }
   0x6   :  { %6703 = shalt.err (!%p6700_p2)
}
   0x7   :  { %s6704_s30 = scalar_lea.vmem %s26_s22, 11776  ;;  %p6709_p4 = scmp.lt.s32.totalorder %s26_s22, %s26_s22 }
   0x8   :  { %p6705_p3 = scmp.ne.s32.totalorder %s26_s22, %s6704_s30  ;;  %p6710_p5 = scmp.lt.s32.totalorder %s6704_s30, %s6704_s30 }
   0xa   :  { %p6711_p6 = por %p6710_p5, %p6709_p4 }
   0xc   :  { %p6712_p7 = pnand %p6711_p6, %p6705_p3 }
   0xe   :  { %6715 = shalt.err (!%p6712_p7)
}
   0xf   :  { %s6719_s7 = smov 128   ;;  %s6720_s8 = smov 8  }
  0x10   :  { %31 = dma.hbm_to_vmem [thread:$0]  %s7611_s4, 11776, %s26_s22, [#allocation3], %s6719_s7, %s6719_s7, %s6720_s8  }
  0x11   :  { %6716 = dma.done.wait [#allocation3], 11776  }
  0x12   :  { %6717 = vsyncadd [#allocation3], 4294955520  ;;  %v134_v0 = vlaneseq  ;;  %vm54_vm0 = vcmask 1043456   ;;  %vm47_vm1 = vcmask 31744   ;;  %vm161_vm4 = vcmask 130048   ;;  %v39_v7 = vld [vmem:[%s7609_s2] sm:$0xff] }
  0x13   :  { %v41_v6 = vld [vmem:[#allocation2 + $0x8] sm:$0xf]  ;;  %5653 = vmatprep.mubr.msk.f32.mxu0 %vm47_vm1, %v39_v7  ;;  %v6795_v10 = vld [vmem:[%s7607_s0] sm:$0xff]  ;;  %v6721_v14 = vmov 0.0   ;;  %v6722_v19 = vmov 0   ;;  %v697_v38 = vld [vmem:[#allocation2 + $0x30] sm:$0xff] }
  0x14   :  { %v6773_v1 = vshrl.u32 %v134_v0, 7  ;;  %v6775_v2 = vand.u32 127, %v134_v0  ;;  %v40_v8 = vld [vmem:[%s7609_s2 + $0x8] sm:$0xff]  ;;  %5651 = vmatprep.subr.msk.mxu0 %vm54_vm0, %v41_v6  ;;  %6623 = vset.pattern.permute.xlu1 %v6722_v19  ;;  %v400_v20 = vld [vmem:[#allocation2 + $0x18] sm:$0xf]  ;;  %v396_v23 = vld [vmem:[%s7608_s1] sm:$0xff] }
  0x15   :  { %v6800_v11 = vld [vmem:[%s7607_s0 + $0x8] sm:$0xff]  ;;  %5652 = vmatpush3.msk.msra.mxu0 %vm54_vm0, %v41_v6  ;;  %6622 = vset.pattern.permute.xlu0 %v6722_v19  ;;  %v398_v28 = vld [vmem:[%s7610_s3] sm:$0xff]  ;;  %v698_v39 = vld [vmem:[#allocation2 + $0x38] sm:$0xff]  ;;  %vm704_vm15 = vcmask 261120  }
  0x16   :  { %v5174_v3 = vadd.s32 4294967294, %v6773_v1  ;;  %v5178_v4 = vadd.s32 4294967295, %v6773_v1  ;;  %vm143_vm2 = vcmp.ge.s32.totalorder %v6773_v1, 2  ;;  %v136_v5 = vadd.s32 8, %v6773_v1  ;;  %5654 = vmatmul.mubr.msk.f32.vlgmr.msra.gmra.mrb[0].mxu0 %vm47_vm1, %v40_v8  ;;  %v397_v24 = vld [vmem:[%s7608_s1 + $0x8] sm:$0xff]  ;;  %v695_v32 = vld [vmem:[#allocation2 + $0x20] sm:$0xff] }
  0x17   :  { %vm265_vm6 = vcmp.ge.s32.totalorder %v6773_v1, 1  ;;  %v6230_v13 = vpack.c.bf16 %v6800_v11, %v6795_v10  ;;  %v6238_v25 = vpack.c.bf16 %v397_v24, %v396_v23  ;;  %v399_v31 = vld [vmem:[%s7610_s3 + $0x8] sm:$0xff]  ;;  %v786_v35 = vld [vmem:[#allocation2 + $0x40] sm:$0xff]  ;;  %v6848_v40 = vpack.c.bf16 %v698_v39, %v697_v38  ;;  %v788_v41 = vld [vmem:[#allocation2 + $0x50] sm:$0xff] }
  0x18   :  { %vm141_vm3 = vcmp.eq.s32.totalorder %v6775_v2, %v5174_v3  ;;  %vm263_vm5 = vcmp.eq.s32.totalorder %v6775_v2, %v5178_v4  ;;  %v5175_v9 = vadd.s32 4294967294, %v136_v5  ;;  %vm150_vm7 = vcmp.ge.s32.totalorder %v136_v5, 10  ;;  %v696_v33 = vld [vmem:[#allocation2 + $0x28] sm:$0xff]  ;;  %v789_v42 = vld [vmem:[#allocation2 + $0x58] sm:$0xff]  ;;  %v870_v44 = vld [vmem:[#allocation2 + $0x60] sm:$0xff] }
  0x19   :  { %vm157_vm8 = vmand %vm141_vm3, %vm143_vm2  ;;  %v5179_v12 = vadd.s32 4294967295, %v136_v5  ;;  %vm270_vm9 = vcmp.ge.s32.totalorder %v136_v5, 9  ;;  %6231 = vmatprep.subr.bf16.mxu1 %v6230_v13  ;;  %6235 = vmatprep.subr.bf16.mxu0 %v6230_v13  ;;  %v6840_v34 = vpack.c.bf16 %v696_v33, %v695_v32  ;;  %v787_v36 = vld [vmem:[#allocation2 + $0x48] sm:$0xff]  ;;  %v6851_v43 = vpack.c.bf16 %v789_v42, %v788_v41  ;;  %v133_v48 = vld [vmem:[#allocation2] sm:$0x7] }
  0x1a   :  { %v159_v15 = vsel %vm157_vm8, 1.0, %v6721_v14  ;;  %vm275_vm10 = vmand %vm263_vm5, %vm265_vm6  ;;  %vm142_vm11 = vcmp.eq.s32.totalorder %v6775_v2, %v5175_v9  ;;  %6233 = vmatpush3.bf16.msra.mxu1 %v6230_v13  ;;  %6237 = vmatpush3.bf16.msra.mxu0 %v6230_v13  ;;  %v6843_v37 = vpack.c.bf16 %v787_v36, %v786_v35  ;;  %v871_v45 = vld [vmem:[#allocation2 + $0x68] sm:$0xff]  ;;  %v255_v47 = vsub.s32 0, %v6773_v1  ;;  %v5170_v51 = vld [vmem:[%s7612_s5] ss:$0 sm:$0xff] }
  0x1b   :  { %5660 = vmatprep.mubr.msk.f32.mxu1 %vm161_vm4, %v159_v15  ;;  %v277_v16 = vsel %vm275_vm10, 1.0, %v6721_v14  ;;  %vm158_vm12 = vmand %vm142_vm11, %vm150_vm7  ;;  %vm264_vm13 = vcmp.eq.s32.totalorder %v6775_v2, %v5179_v12  ;;  %5670 = vmatprep.subr.msk.mxu1 %vm54_vm0, %v400_v20  ;;  %v6858_v46 = vpack.c.bf16 %v871_v45, %v870_v44  ;;  %v372_v49 = vsub.s32 1, %v6773_v1  ;;  %v873_v12 = vld [vmem:[#allocation2 + $0x78] sm:$0xff] }
  0x1c   :  { %vm276_vm14 = vmand %vm264_vm13, %vm270_vm9  ;;  %v160_v17 = vsel %vm158_vm12, 1.0, %v6721_v14  ;;  %5667 = vmatprep.mubr.msk.f32.mxu0 %vm161_vm4, %v277_v16  ;;  %6239 = vmatprep.subr.bf16.mxu0 %v6238_v25  ;;  %v256_v50 = vrot.slane %v133_v48, %v255_v47  ;;  %v390_v56 = vsub.s32 2, %v6773_v1  ;;  %v6723_v23 = vmov 0.0|0.0  }
  0x1d   :  { %v278_v18 = vsel %vm276_vm14, 1.0, %v6721_v14  ;;  %5661 = vmatmul.mubr.msk.f32.vlgmr.msra.gmra.mrb[0].mxu1 %vm161_vm4, %v160_v17  ;;  %v373_v54 = vrot.slane %v133_v48, %v372_v49  ;;  %vm991_vm2 = vcmp.lt.s32.totalorder %v6775_v2, 16  ;;  %vm971_vm3 = vcmp.lt.s32.totalorder %v6775_v2, 8  ;;  %vm6951_vm11 = vmpackc.low %vm704_vm15, %vm704_vm15 }
  0x1e   :  { %5668 = vmatmul.mubr.msk.f32.vlgmr.msra.gmra.mrb[2].mxu0 %vm161_vm4, %v278_v18  ;;  %5671 = vmatpush3.msk.msra.mxu1 %vm54_vm0, %v400_v20  ;;  %v391_v0 = vrot.slane %v133_v48, %v390_v56  ;;  %vm6724_vm0 = vmmov 0   ;;  %vm1012_vm5 = vcmp.ge.s32.totalorder %v6775_v2, 16  ;;  %vm1017_vm6 = vcmp.lt.s32.totalorder %v6775_v2, 24 }
  0x1f   :  { %5679 = vmatprep.mubr.msk.f32.mxu0 %vm161_vm4, %v159_v15  ;;  %5672 = vmatprep.mubr.msk.f32.mxu1 %vm47_vm1, %v398_v28  ;;  %vm1038_vm7 = vcmp.ge.s32.totalorder %v6775_v2, 24  ;;  %vm1043_vm8 = vcmp.lt.s32.totalorder %v6775_v2, 32  ;;  %v6932_v28 = vsel %vm971_vm3, 1.0, %v6721_v14  ;;  %vm6939_vm9 = vmand %vm1012_vm5, %vm1017_vm6  ;;  %vm1794_vm14 = vcmask 523264  }
  0x20   :  { %6241 = vmatpush3.bf16.msra.mxu0 %v6238_v25  ;;  %6243 = vmatprep.subr.bf16.mxu1 %v6238_v25  ;;  %vm6943_vm10 = vmand %vm1038_vm7, %vm1043_vm8  ;;  %v6958_v42 = vsel %vm6939_vm9, 1.0, %v6721_v14 }
  0x21   :  { %5673 = vmatmul.mubr.msk.f32.vlgmr.msra.gmra.mrb[2].mxu1 %vm47_vm1, %v399_v31  ;;  %6247 = vmatprep.subr.bf16.mxu0 %v6840_v34  ;;  %vm986_vm1 = vcmp.ge.s32.totalorder %v6775_v2, 8  ;;  %v6963_v44 = vsel %vm6943_vm10, 1.0, %v6721_v14  ;;  %vm7009_vm13 = vmpackc.low %vm6943_vm10, %vm6939_vm9 }
  0x22   :  { %5686 = vmatprep.mubr.msk.f32.mxu1 %vm161_vm4, %v277_v16  ;;  %6245 = vmatpush3.bf16.msra.mxu1 %v6238_v25  ;;  %v5193_v25 = vld [vmem:[%s7612_s5 + $0x3] ss:$0 sm:$0xff] }
  0x23   :  { %5680 = vmatmul.mubr.msk.f32.vlgmr.msra.gmra.mrb[4].mxu0 %vm161_vm4, %v160_v17  ;;  %6255 = vmatprep.subr.bf16.mxu1 %v6843_v37 }
  0x24   :  { %6249 = vmatpush3.bf16.msra.mxu0 %v6840_v34 }
  0x25   :  { %5687 = vmatmul.mubr.msk.f32.vlgmr.msra.gmra.mrb[4].mxu1 %vm161_vm4, %v278_v18  ;;  %6251 = vmatprep.subr.bf16.mxu0 %v6848_v40  ;;  %vm6918_vm4 = vmand %vm986_vm1, %vm991_vm2 }
  0x26   :  { %6257 = vmatpush3.bf16.msra.mxu1 %v6843_v37  ;;  %vm6997_vm12 = vmpackc.low %vm6918_vm4, %vm971_vm3 }
  0x27   :  { %6259 = vmatprep.subr.bf16.mxu1 %v6851_v43 }
  0x28   :  { %6253 = vmatpush3.bf16.msra.mxu0 %v6848_v40 }
  0x29   :  { %6263 = vmatprep.subr.bf16.mxu0 %v6858_v46 }
  0x2a   :  { %6261 = vmatpush3.bf16.msra.mxu1 %v6851_v43 }
  0x2b   :  { %6270 = vmatprep.subr.bf16.mxu1 %v6723_v23 }
  0xe9   :  { %v5655_v21 = vpop.f32.mrb[0].mxu0 }
  0xea   :  { %v124_v22 = vpop.f32.mrb[1].mxu0  ;;  %v130_v57 = vadd.f32 %v5655_v21, %v5170_v51 }
  0xeb   :  { %v125_v58 = vadd.f32 %v5170_v51, %v124_v22 }
  0xf0   :  { %v5662_v26 = vpop.f32.mrb[0].mxu1 }
  0xf1   :  { %v5669_v27 = vpop.f32.mrb[2].mxu0  ;;  %250 = vperm.xlu0 %6622, %v5662_v26   ;;  %v234_v30 = vpop.f32.mrb[1].mxu1 }
  0xf2   :  { %367 = vperm.xlu1 %6623, %v5669_v27   ;;  %v351_v29 = vpop.f32.mrb[3].mxu0 }
  0xf4   :  { %v6897_v17 = vpop.f32.mrb[2].mxu1 }
  0xf5   :  { %245 = vperm.xlu0 %6622, %v234_v30   ;;  %v6899_v18 = vpop.f32.mrb[3].mxu1 }
  0xf6   :  { %362 = vperm.xlu1 %6623, %v351_v29   ;;  %v6901_v19 = vpop.f32.mrb[4].mxu0  ;;  %v6937_v29 = vsel %vm6918_vm4, 1.0, %v6721_v14 }
  0xf7   :  { %v6903_v20 = vpop.f32.mrb[5].mxu0 }
  0xf8   :  { %v6905_v21 = vpop.f32.mrb[4].mxu1 }
  0xf9   :  { %380 = vperm.xlu0 %6622, %v6795_v10   ;;  %v6907_v22 = vpop.f32.mrb[5].mxu1 }
  0xfa   :  { %385 = vperm.xlu1 %6623, %v6800_v11   ;;  %v872_v11 = vld [vmem:[#allocation2 + $0x70] sm:$0xff] }
  0xfb   :  { %v6880_v16 = vpack.c.bf16 %v873_v12, %v872_v11  ;;  %v6725_v11 = vmov 1.0|1.0   ;;  %v4660_v12 = vld [vmem:[#allocation2 + $0x110] sm:$0xff] }
 0x170   :  { %v251_v53 = vpop.permute.xlu0 %250 }
 0x171   :  { %v368_v52 = vpop.permute.xlu1 %367  ;;  %v258_v55 = vmul.f32 %v256_v50, %v251_v53 }
 0x172   :  { %v375_v61 = vmul.f32 %v373_v54, %v368_v52 }
 0x173   :  { %v260_v62 = vadd.f32 %v258_v55, %v130_v57 }
 0x174   :  { %v246_v60 = vpop.permute.xlu0 %245 }
 0x175   :  { %v363_v59 = vpop.permute.xlu1 %362  ;;  %v257_v63 = vmul.f32 %v256_v50, %v246_v60  ;;  %v377_v7 = vadd.f32 %v375_v61, %v260_v62 }
 0x176   :  { %v374_v3 = vmul.f32 %v373_v54, %v363_v59  ;;  %v5190_v54 = vld [vmem:[%s7612_s5 + $0x2] ss:$0 sm:$0xff] }
 0x177   :  { %v259_v4 = vadd.f32 %v257_v63, %v125_v58 }
 0x178   :  { %v381_v6 = vpop.permute.xlu0 %380 }
 0x179   :  { %v386_v5 = vpop.permute.xlu1 %385  ;;  %v376_v9 = vadd.f32 %v374_v3, %v259_v4  ;;  %v392_v10 = vmul.f32 %v391_v0, %v381_v6 }
 0x17a   :  { %v393_v8 = vmul.f32 %v391_v0, %v386_v5 }
 0x17b   :  { %v6878_v15 = vadd.f32 %v392_v10, %v376_v9 }
 0x17c   :  { %v6876_v13 = vadd.f32 %v393_v8, %v377_v7 }
 0x17d   :  { %5697 = vmatprep.mubr.msk.f32.mxu0 %vm704_vm15, %v6878_v15  ;;  %5708 = vmatprep.mubr.msk.f32.mxu1 %vm704_vm15, %v6878_v15 }
 0x17e   :  { %5698 = vmatmul.mubr.msk.f32.vlgmr.msra.gmra.mrb[6].mxu0 %vm704_vm15, %v6876_v13  ;;  %5709 = vmatmul.mubr.msk.f32.vlgmr.msra.gmra.mrb[6].mxu1 %vm704_vm15, %v6876_v13 }
 0x17f   :  { %6265 = vmatpush3.bf16.msra.mxu0 %v6858_v46  ;;  %5719 = vmatprep.mubr.msk.f32.mxu0 %vm704_vm15, %v6878_v15 }
 0x180   :  { %6267 = vmatprep.subr.bf16.mxu0 %v6880_v16  ;;  %5730 = vmatprep.mubr.msk.f32.mxu1 %vm6724_vm0, %v6721_v14 }
 0x183   :  { %6269 = vmatpush3.bf16.msra.mxu0 %v6880_v16 }
 0x184   :  { %6278 = vmatprep.subr.bf16.mxu0 %v6723_v23 }
 0x186   :  { %5720 = vmatmul.mubr.msk.f32.vlgmr.msra.gmra.mrb[8].mxu0 %vm704_vm15, %v6876_v13 }
 0x187   :  { %5741 = vmatprep.mubr.msk.f32.mxu0 %vm6724_vm0, %v6721_v14  ;;  %6280 = vmatpush3.bf16.msk.msra.mxu0 %vm6997_vm12, %v6725_v11 }
 0x188   :  { %6281 = vmatprep.subr.bf16.mxu0 %v6723_v23 }
 0x18b   :  { %6283 = vmatpush3.bf16.msk.msra.mxu0 %vm7009_vm13, %v6725_v11 }
 0x18c   :  { %6284 = vmatprep.subr.bf16.mxu0 %v6723_v23 }
 0x251   :  { %v5699_v26 = vpop.f32.mrb[6].mxu0  ;;  %v5710_v27 = vpop.f32.mrb[6].mxu1 }
 0x252   :  { %v777_v30 = vpop.f32.mrb[7].mxu0  ;;  %v861_v31 = vpop.f32.mrb[7].mxu1  ;;  %v867_v52 = vadd.f32 %v5710_v27, %v5193_v25  ;;  %v783_v63 = vadd.f32 %v5699_v26, %v5190_v54  ;;  %v5196_v26 = vld [vmem:[%s7612_s5 + $0x4] ss:$0 sm:$0xff] }
 0x253   :  { %v862_v32 = vadd.f32 %v5193_v25, %v861_v31  ;;  %v778_v58 = vadd.f32 %v5190_v54, %v777_v30 }
 0x254   :  { %v1304_v55 = vmul.f32 %v6932_v28, %v867_v52  ;;  %v1305_v57 = vmul.f32 %v6937_v29, %v867_v52  ;;  %v1306_v60 = vmul.f32 %v6958_v42, %v867_v52  ;;  %v1307_v61 = vmul.f32 %v6963_v44, %v867_v52 }
 0x255   :  { %v1056_v36 = vmul.f32 %v6932_v28, %v862_v32  ;;  %v1057_v38 = vmul.f32 %v6937_v29, %v862_v32  ;;  %v1058_v50 = vmul.f32 %v6958_v42, %v862_v32  ;;  %v1059_v51 = vmul.f32 %v6963_v44, %v862_v32 }
 0x256   :  { %v6291_v59 = vpack.c.bf16 %v1305_v57, %v1304_v55  ;;  %v6295_v62 = vpack.c.bf16 %v1307_v61, %v1306_v60 }
 0x257   :  { %v6271_v41 = vpack.c.bf16 %v1057_v38, %v1056_v36  ;;  %v6275_v53 = vpack.c.bf16 %v1059_v51, %v1058_v50 }
 0x259   :  { %v6965_v45 = vpop.f32.mrb[8].mxu0  ;;  %6273 = vmatpush3.bf16.xpose.msk.msra.mxu1 %vm6951_vm11, %v6271_v41 }
 0x25a   :  { %v945_v48 = vpop.f32.mrb[9].mxu0  ;;  %6274 = vmatprep.subr.bf16.mxu1 %v6723_v23  ;;  %v951_v55 = vadd.f32 %v6965_v45, %v5196_v26 }
 0x25b   :  { %v946_v27 = vadd.f32 %v5196_v26, %v945_v48 }
 0x25c   :  { %v1308_v57 = vmul.f32 %v6932_v28, %v951_v55  ;;  %v1311_v60 = vmul.f32 %v6963_v44, %v951_v55 }
 0x25d   :  { %v1060_v30 = vmul.f32 %v6932_v28, %v946_v27  ;;  %v1061_v31 = vmul.f32 %v6937_v29, %v946_v27  ;;  %v1062_v33 = vmul.f32 %v6958_v42, %v946_v27  ;;  %v1063_v35 = vmul.f32 %v6963_v44, %v946_v27 }
 0x25f   :  { %v6285_v36 = vpack.c.bf16 %v1061_v31, %v1060_v30  ;;  %v6288_v38 = vpack.c.bf16 %v1063_v35, %v1062_v33  ;;  %v5221_v30 = vld [vmem:[%s7612_s5 + $0x5] ss:$0 sm:$0xff] }
 0x261   :  { %6277 = vmatpush3.bf16.xpose.msk.msra.mxu1 %vm6951_vm11, %v6275_v53 }
 0x262   :  { %6290 = vmatprep.subr.bf16.mxu1 %v6723_v23 }
 0x268   :  { %5731 = vmatmul.mubr.msk.f32.vlgmr.msra.gmra.mrb[8].mxu1 %vm704_vm15, %v778_v58  ;;  %v1309_v58 = vmul.f32 %v6937_v29, %v951_v55 }
 0x269   :  { %6293 = vmatpush3.bf16.xpose.msk.msra.mxu1 %vm6951_vm11, %v6291_v59  ;;  %5763 = vmatprep.mubr.msk.f32.mxu1 %vm6724_vm0, %v6721_v14  ;;  %v1310_v59 = vmul.f32 %v6958_v42, %v951_v55  ;;  %v1691_v55 = vld [vmem:[#allocation2 + $0x130] sm:$0xff] }
 0x26a   :  { %6294 = vmatprep.subr.bf16.mxu1 %v6723_v23  ;;  %v6305_v61 = vpack.c.bf16 %v1309_v58, %v1308_v57  ;;  %v1692_v57 = vld [vmem:[#allocation2 + $0x138] sm:$0xff] }
 0x26b   :  { %v6322_v58 = vpack.c.bf16 %v1692_v57, %v1691_v55  ;;  %v5225_v55 = vld [vmem:[%s7612_s5 + $0x10] ss:$0 sm:$0xff] }
 0x271   :  { %6297 = vmatpush3.bf16.xpose.msk.msra.mxu1 %vm6951_vm11, %v6295_v62  ;;  %v6308_v62 = vpack.c.bf16 %v1311_v60, %v1310_v59  ;;  %v1782_v59 = vld [vmem:[#allocation2 + $0x148] sm:$0xff]  ;;  %v1783_v60 = vld [vmem:[#allocation2 + $0x150] sm:$0xff] }
 0x278   :  { %5764 = vmatmul.mubr.msk.f32.vlgmr.msra.gmra.mrb[10].mxu1 %vm704_vm15, %v783_v63  ;;  %v1552_v63 = vld [vmem:[#allocation2 + $0x80] sm:$0xff] }
 0x33b   :  { %v1145_v0 = vpop.f32.mrb[8].mxu1 }
 0x33c   :  { %v1149_v3 = vmul.f32 0.35355338, %v1145_v0  ;;  %v5732_v4 = vpop.f32.mrb[9].mxu1  ;;  %v1553_v0 = vld [vmem:[#allocation2 + $0x88] sm:$0xff] }
 0x33d   :  { %v7049_v4 = vpack.c.bf16 %v1553_v0, %v1552_v63  ;;  %v1785_v0 = vld [vmem:[#allocation2 + $0x160] sm:$0xff] }
 0x33e   :  { %v1150_v5 = vsel %vm704_vm15, %v1149_v3, -inf }
 0x33f   :  { %1151 = vmax.xlane.f32.xlu0 %v1150_v5  ;;  %v1555_v5 = vld [vmem:[#allocation2 + $0x98] sm:$0xff]  ;;  %6311 = vmatprep.subr.bf16.mxu1 %v7049_v4 }
 0x340   :  { %6313 = vmatpush3.bf16.msra.mxu1 %v7049_v4 }
 0x34b   :  { %v1393_v6 = vpop.f32.mrb[10].mxu1 }
 0x34c   :  { %v1397_v7 = vmul.f32 0.35355338, %v1393_v6  ;;  %v5765_v8 = vpop.f32.mrb[11].mxu1 }
 0x34e   :  { %v1398_v9 = vsel %vm704_vm15, %v1397_v7, -inf }
 0x34f   :  { %1399 = vmax.xlane.f32.xlu1 %v1398_v9 }
 0x3cc   :  { %v1152_v2 = vpop.xlane.xlu0 %1151 }
 0x3cd   :  { %v1153_v24 = vsub.f32 %v1149_v3, %v1152_v2  ;;  %v1554_v3 = vld [vmem:[#allocation2 + $0x90] sm:$0xff] }
 0x3ce   :  { %v7051_v6 = vpack.c.bf16 %v1555_v5, %v1554_v3  ;;  %v1786_v3 = vld [vmem:[#allocation2 + $0x168] sm:$0xff] }
 0x3cf   :  { %v1154_v25 = vmul.f32 1.442695, %v1153_v24  ;;  %v6334_v5 = vpack.c.bf16 %v1786_v3, %v1785_v0  ;;  %v5226_v0 = vld [vmem:[%s7612_s5 + $0xa] ss:$0 sm:$0xff] }
 0x3d0   :  { %6315 = vmatprep.subr.bf16.mxu1 %v7051_v6 }
 0x3d1   :  { %6624 = vpow2.f32 %v1154_v25  ;;  %6317 = vmatpush3.bf16.msra.mxu1 %v7051_v6 }
 0x3db   :  { %v6625_v32 = vpop.eup %6624 }
 0x3dc   :  { %5742 = vmatmul.mubr.msk.f32.vlgmr.msra.gmra.mrb[10].mxu0 %vm704_vm15, %v6625_v32  ;;  %v1400_v41 = vpop.xlane.xlu1 %1399 }
 0x3dd   :  { %6286 = vmatpush3.bf16.msra.mxu0 %v6285_v36  ;;  %5752 = vmatprep.mubr.msk.f32.mxu0 %vm6724_vm0, %v6721_v14  ;;  %v1401_v51 = vsub.f32 %v1397_v7, %v1400_v41 }
 0x3de   :  { %6287 = vmatprep.subr.bf16.mxu0 %v6723_v23 }
 0x3df   :  { %v1402_v52 = vmul.f32 1.442695, %v1401_v51 }
 0x3e1   :  { %6289 = vmatpush3.bf16.msra.mxu0 %v6288_v38 }
 0x3e2   :  { %6298 = vmatprep.subr.bf16.mxu0 %v6723_v23 }
 0x4af   :  { %v1225_v48 = vpop.f32.mrb[10].mxu0 }
 0x4b0   :  { %6626 = vrcp.f32 %v1225_v48  ;;  %v5743_v50 = vpop.f32.mrb[11].mxu0 }
 0x4b1   :  { %6628 = vpow2.f32 %v1402_v52  ;;  %v1689_v52 = vld [vmem:[#allocation2 + $0x120] sm:$0xff] }
 0x4ba   :  { %v6627_v53 = vpop.eup %6626 }
 0x4bb   :  { %v1230_v54 = vmul.f32 %v6627_v53, %v6625_v32  ;;  %v6629_v45 = vpop.eup %6628  ;;  %v1690_v53 = vld [vmem:[#allocation2 + $0x128] sm:$0xff] }
 0x4bd   :  { %5753 = vmatmul.mubr.msk.f32.vlgmr.msra.gmra.mrb[12].mxu0 %vm704_vm15, %v1230_v54  ;;  %v6318_v54 = vpack.c.bf16 %v1690_v53, %v1689_v52 }
 0x4be   :  { %6300 = vmatpush3.bf16.msk.msra.mxu0 %vm6997_vm12, %v6725_v11  ;;  %5774 = vmatprep.mubr.msk.f32.mxu0 %vm6724_vm0, %v6721_v14 }
 0x4bf   :  { %6301 = vmatprep.subr.bf16.mxu0 %v6723_v23 }
 0x4c2   :  { %6303 = vmatpush3.bf16.msk.msra.mxu0 %vm7009_vm13, %v6725_v11 }
 0x4c3   :  { %6304 = vmatprep.subr.bf16.mxu0 %v6723_v23 }
 0x4c5   :  { %5775 = vmatmul.mubr.msk.f32.vlgmr.msra.gmra.mrb[14].mxu0 %vm704_vm15, %v6629_v45 }
 0x4c6   :  { %6306 = vmatpush3.bf16.msra.mxu0 %v6305_v61  ;;  %5785 = vmatprep.mubr.msk.f32.mxu0 %vm6724_vm0, %v6721_v14 }
 0x4c7   :  { %6307 = vmatprep.subr.bf16.mxu0 %v6723_v23 }
 0x4ca   :  { %6309 = vmatpush3.bf16.msra.mxu0 %v6308_v62  ;;  %v1784_v62 = vld [vmem:[#allocation2 + $0x158] sm:$0xff] }
 0x4cb   :  { %6319 = vmatprep.subr.bf16.mxu0 %v6318_v54  ;;  %v6330_v63 = vpack.c.bf16 %v1784_v62, %v1783_v60  ;;  %v1788_v62 = vld [vmem:[#allocation2 + $0x178] sm:$0xff] }
 0x590   :  { %v1300_v7 = vpop.f32.mrb[12].mxu0 }
 0x591   :  { %v5754_v8 = vpop.f32.mrb[13].mxu0  ;;  %5796 = vmatprep.mubr.msk.f32.mxu1 %vm704_vm15, %v1300_v7 }
 0x598   :  { %v1473_v9 = vpop.f32.mrb[14].mxu0 }
 0x599   :  { %6630 = vrcp.f32 %v1473_v9  ;;  %v5776_v2 = vpop.f32.mrb[15].mxu0 }
 0x5a3   :  { %v6631_v24 = vpop.eup %6630 }
 0x5a4   :  { %v1478_v25 = vmul.f32 %v6631_v24, %v6629_v45  ;;  %v1781_v45 = vld [vmem:[#allocation2 + $0x140] sm:$0xff] }
 0x5a5   :  { %v6326_v61 = vpack.c.bf16 %v1782_v59, %v1781_v45 }
 0x5a6   :  { %5786 = vmatmul.mubr.msk.f32.vlgmr.msra.gmra.mrb[16].mxu0 %vm704_vm15, %v1478_v25 }
 0x5a7   :  { %6321 = vmatpush3.bf16.msra.mxu0 %v6318_v54  ;;  %6327 = vmatprep.subr.bf16.mxu1 %v6326_v61 }
 0x5a8   :  { %6323 = vmatprep.subr.bf16.mxu0 %v6322_v58 }
 0x5ab   :  { %6325 = vmatpush3.bf16.msra.mxu0 %v6322_v58 }
 0x679   :  { %v1548_v26 = vpop.f32.mrb[16].mxu0 }
 0x67a   :  { %v5787_v27 = vpop.f32.mrb[17].mxu0  ;;  %5797 = vmatmul.mubr.msk.f32.vlgmr.msra.gmra.mrb[12].mxu1 %vm704_vm15, %v1548_v26 }
 0x67b   :  { %6329 = vmatpush3.bf16.msra.mxu1 %v6326_v61 }
 0x67c   :  { %6331 = vmatprep.subr.bf16.mxu1 %v6330_v63 }
 0x67f   :  { %6333 = vmatpush3.bf16.msra.mxu1 %v6330_v63 }
 0x680   :  { %6335 = vmatprep.subr.bf16.mxu1 %v6334_v5 }
 0x683   :  { %6337 = vmatpush3.bf16.msra.mxu1 %v6334_v5 }
 0x74d   :  { %v5798_v31 = vpop.f32.mrb[12].mxu1 }
 0x74e   :  { %v7063_v32 = vadd.f32 %v5798_v31, %v5221_v30  ;;  %v1633_v33 = vpop.f32.mrb[13].mxu1 }
 0x74f   :  { %v1634_v35 = vadd.f32 %v5221_v30, %v1633_v33 }
 0x750   :  { %v1645_v36 = vsel %vm704_vm15, %v7063_v32, 0.0  ;;  %v1652_v50 = vmul.f32 %v7063_v32, %v7063_v32 }
 0x751   :  { %1646 = vadd.xlane.f32.xlu0 %v1645_v36  ;;  %v1651_v38 = vmul.f32 %v1634_v35, %v1634_v35  ;;  %v1642_v48 = vsel %vm704_vm15, %v1634_v35, 0.0 }
 0x752   :  { %v1656_v51 = vsel %vm704_vm15, %v1652_v50, 0.0 }
 0x753   :  { %v1653_v41 = vsel %vm704_vm15, %v1651_v38, 0.0 }
 0x754   :  { %1654 = vadd.xlane.f32.xlu1 %v1653_v41 }
 0x755   :  { %1643 = vadd.xlane.f32.xlu0 %v1642_v48 }
 0x759   :  { %1657 = vadd.xlane.f32.xlu0 %v1656_v51  ;;  %v5224_v51 = vld [vmem:[%s7612_s5 + $0xf] ss:$0 sm:$0xff] }
 0x7de   :  { %v1647_v7 = vpop.xlane.xlu0 %1646 }
 0x7df   :  { %v1650_v2 = vmul.f32 0.03125, %v1647_v7 }
 0x7e1   :  { %v1655_v8 = vpop.xlane.xlu1 %1654  ;;  %v1662_v30 = vmul.f32 %v1650_v2, %v1650_v2  ;;  %v1670_v52 = vsub.f32 %v7063_v32, %v1650_v2  ;;  %v1787_v32 = vld [vmem:[#allocation2 + $0x170] sm:$0xff] }
 0x7e2   :  { %v1644_v9 = vpop.xlane.xlu0 %1643  ;;  %v1659_v25 = vmul.f32 0.03125, %v1655_v8  ;;  %v6338_v63 = vpack.c.bf16 %v1788_v62, %v1787_v32  ;;  %v2013_v32 = vld [vmem:[#allocation2 + $0x228] sm:$0xff] }
 0x7e3   :  { %v1649_v24 = vmul.f32 0.03125, %v1644_v9 }
 0x7e4   :  { %6339 = vmatprep.subr.bf16.mxu1 %v6338_v63 }
 0x7e5   :  { %v1661_v26 = vmul.f32 %v1649_v24, %v1649_v24  ;;  %v1669_v48 = vsub.f32 %v1634_v35, %v1649_v24  ;;  %6341 = vmatpush3.bf16.msra.mxu1 %v6338_v63 }
 0x7e6   :  { %v1658_v27 = vpop.xlane.xlu0 %1657 }
 0x7e7   :  { %v1663_v31 = vsub.f32 %v1659_v25, %v1661_v26  ;;  %v1660_v33 = vmul.f32 0.03125, %v1658_v27 }
 0x7e9   :  { %v1665_v36 = vadd.f32 1e-05, %v1663_v31  ;;  %v1664_v38 = vsub.f32 %v1660_v33, %v1662_v30 }
 0x7eb   :  { %6632 = vrsqrt.f32 %v1665_v36  ;;  %v1666_v41 = vadd.f32 1e-05, %v1664_v38 }
 0x7ed   :  { %6634 = vrsqrt.f32 %v1666_v41 }
 0x7f5   :  { %v6633_v50 = vpop.eup %6632 }
 0x7f6   :  { %v1671_v53 = vmul.f32 %v6633_v50, %v1669_v48  ;;  %v1922_v50 = vld [vmem:[#allocation2 + $0x200] sm:$0xff] }
 0x7f7   :  { %v6635_v54 = vpop.eup %6634 }
 0x7f8   :  { %v1678_v57 = vmul.f32 %v5224_v51, %v1671_v53  ;;  %v1672_v58 = vmul.f32 %v6635_v54, %v1670_v52  ;;  %v2096_v52 = vld [vmem:[#allocation2 + $0x240] sm:$0xff]  ;;  %v2097_v54 = vld [vmem:[#allocation2 + $0x248] sm:$0xff] }
 0x7fa   :  { %v1685_v45 = vadd.f32 %v5225_v55, %v1678_v57  ;;  %v1679_v59 = vmul.f32 %v5224_v51, %v1672_v58  ;;  %v1923_v51 = vld [vmem:[#allocation2 + $0x208] sm:$0xff]  ;;  %v1925_v57 = vld [vmem:[#allocation2 + $0x218] sm:$0xff]  ;;  %v6358_v58 = vpack.c.bf16 %v2097_v54, %v2096_v52 }
 0x7fb   :  { %v6342_v53 = vpack.c.bf16 %v1923_v51, %v1922_v50 }
 0x7fc   :  { %v1687_v60 = vadd.f32 %v1685_v45, %v6878_v15  ;;  %v1686_v35 = vadd.f32 %v5225_v55, %v1679_v59  ;;  %v1924_v55 = vld [vmem:[#allocation2 + $0x210] sm:$0xff]  ;;  %6359 = vmatprep.subr.bf16.mxu1 %v6358_v58 }
 0x7fd   :  { %v6346_v45 = vpack.c.bf16 %v1925_v57, %v1924_v55  ;;  %v2098_v59 = vld [vmem:[#allocation2 + $0x250] sm:$0xff]  ;;  %6343 = vmatprep.subr.bf16.mxu0 %v6342_v53  ;;  %v2015_v57 = vld [vmem:[#allocation2 + $0x238] sm:$0xff] }
 0x7fe   :  { %5807 = vmatprep.mubr.msk.f32.mxu0 %vm704_vm15, %v1687_v60  ;;  %v1688_v61 = vadd.f32 %v1686_v35, %v6876_v13  ;;  %v5229_v13 = vld [vmem:[%s7612_s5 + $0xb] ss:$0 sm:$0xff]  ;;  %v2014_v55 = vld [vmem:[#allocation2 + $0x230] sm:$0xff] }
 0x800   :  { %5808 = vmatmul.mubr.msk.f32.vlgmr.msra.gmra.mrb[18].mxu0 %vm704_vm15, %v1688_v61 }
 0x801   :  { %6345 = vmatpush3.bf16.msra.mxu0 %v6342_v53  ;;  %v5233_v53 = vld [vmem:[%s7612_s5 + $0x12] ss:$0 sm:$0xff] }
 0x802   :  { %6347 = vmatprep.subr.bf16.mxu0 %v6346_v45 }
 0x805   :  { %6349 = vmatpush3.bf16.msra.mxu0 %v6346_v45  ;;  %v5240_v45 = vld [vmem:[%s7612_s5 + $0x1d] ss:$0 sm:$0xff] }
 0x8d3   :  { %v5809_v3 = vpop.f32.mrb[18].mxu0 }
 0x8d4   :  { %v1776_v5 = vadd.f32 %v5809_v3, %v5226_v0  ;;  %v1770_v7 = vpop.f32.mrb[19].mxu0 }
 0x8d5   :  { %v1771_v15 = vadd.f32 %v5226_v0, %v1770_v7 }
 0x8d6   :  { %v1780_v9 = vmax.f32 %v1776_v5, 0.0 }
 0x8d7   :  { %v1779_v8 = vmax.f32 %v1771_v15, 0.0 }
 0x8d9   :  { %5826 = vmatprep.mubr.msk.f32.mxu1 %vm1794_vm14, %v1779_v8 }
 0x8da   :  { %5827 = vmatmul.mubr.msk.f32.vlgmr.msra.gmra.mrb[14].mxu1 %vm1794_vm14, %v1780_v9 }
 0x8db   :  { %6361 = vmatpush3.bf16.msra.mxu1 %v6358_v58 }
 0x9ad   :  { %v5828_v2 = vpop.f32.mrb[14].mxu1 }
 0x9ae   :  { %v1873_v24 = vadd.f32 %v5828_v2, %v5229_v13  ;;  %v1867_v25 = vpop.f32.mrb[15].mxu1 }
 0x9af   :  { %v1868_v26 = vadd.f32 %v5229_v13, %v1867_v25 }
 0x9b0   :  { %v1877_v27 = vadd.f32 %v1873_v24, %v1688_v61  ;;  %v2012_v61 = vld [vmem:[#allocation2 + $0x220] sm:$0xff] }
 0x9b1   :  { %v1876_v30 = vadd.f32 %v1868_v26, %v1687_v60  ;;  %v2099_v60 = vld [vmem:[#allocation2 + $0x258] sm:$0xff]  ;;  %v6350_v62 = vpack.c.bf16 %v2013_v32, %v2012_v61 }
 0x9b2   :  { %v1881_v31 = vsel %vm704_vm15, %v1877_v27, 0.0  ;;  %v1887_v33 = vmul.f32 %v1877_v27, %v1877_v27  ;;  %v6362_v35 = vpack.c.bf16 %v2099_v60, %v2098_v59 }
 0x9b3   :  { %1882 = vadd.xlane.f32.xlu0 %v1881_v31  ;;  %v1878_v36 = vsel %vm704_vm15, %v1876_v30, 0.0  ;;  %v1886_v38 = vmul.f32 %v1876_v30, %v1876_v30  ;;  %6351 = vmatprep.subr.bf16.mxu0 %v6350_v62 }
 0x9b4   :  { %1879 = vadd.xlane.f32.xlu1 %v1878_v36  ;;  %v1891_v41 = vsel %vm704_vm15, %v1887_v33, 0.0  ;;  %6363 = vmatprep.subr.bf16.mxu1 %v6362_v35 }
 0x9b5   :  { %v1888_v48 = vsel %vm704_vm15, %v1886_v38, 0.0  ;;  %6365 = vmatpush3.bf16.msra.mxu1 %v6362_v35 }
 0x9b6   :  { %6374 = vmatprep.subr.bf16.mxu1 %v6723_v23 }
 0x9b7   :  { %1892 = vadd.xlane.f32.xlu0 %v1891_v41  ;;  %v5232_v41 = vld [vmem:[%s7612_s5 + $0x11] ss:$0 sm:$0xff] }
 0x9b8   :  { %1889 = vadd.xlane.f32.xlu1 %v1888_v48 }
 0xa40   :  { %v1883_v63 = vpop.xlane.xlu0 %1882 }
 0xa41   :  { %v1885_v0 = vmul.f32 0.03125, %v1883_v63  ;;  %v1880_v3 = vpop.xlane.xlu1 %1879 }
 0xa42   :  { %v1884_v5 = vmul.f32 0.03125, %v1880_v3 }
 0xa43   :  { %v1897_v15 = vmul.f32 %v1885_v0, %v1885_v0  ;;  %v1905_v33 = vsub.f32 %v1877_v27, %v1885_v0 }
 0xa44   :  { %v1893_v7 = vpop.xlane.xlu0 %1892  ;;  %v1896_v13 = vmul.f32 %v1884_v5, %v1884_v5  ;;  %v1904_v38 = vsub.f32 %v1876_v30, %v1884_v5  ;;  %v6354_v30 = vpack.c.bf16 %v2015_v57, %v2014_v55 }
 0xa45   :  { %v1895_v8 = vmul.f32 0.03125, %v1893_v7  ;;  %v1890_v9 = vpop.xlane.xlu1 %1889 }
 0xa46   :  { %v1894_v2 = vmul.f32 0.03125, %v1890_v9 }
 0xa47   :  { %v1899_v24 = vsub.f32 %v1895_v8, %v1897_v15 }
 0xa48   :  { %v1898_v25 = vsub.f32 %v1894_v2, %v1896_v13 }
 0xa49   :  { %v1901_v26 = vadd.f32 1e-05, %v1899_v24  ;;  %v5234_v24 = vld [vmem:[%s7612_s5 + $0x1b] ss:$0 sm:$0xff] }
 0xa4a   :  { %v1900_v31 = vadd.f32 1e-05, %v1898_v25 }
 0xa4b   :  { %6636 = vrsqrt.f32 %v1901_v26 }
 0xa4c   :  { %6638 = vrsqrt.f32 %v1900_v31 }
 0xa55   :  { %v6637_v36 = vpop.eup %6636 }
 0xa56   :  { %v6639_v48 = vpop.eup %6638  ;;  %v1907_v50 = vmul.f32 %v6637_v36, %v1905_v33 }
 0xa57   :  { %v1906_v51 = vmul.f32 %v6639_v48, %v1904_v38 }
 0xa58   :  { %v1914_v52 = vmul.f32 %v5232_v41, %v1907_v50 }
 0xa59   :  { %v1913_v54 = vmul.f32 %v5232_v41, %v1906_v51 }
 0xa5a   :  { %v7104_v27 = vadd.f32 %v5233_v53, %v1914_v52 }
 0xa5b   :  { %v7102_v58 = vadd.f32 %v5233_v53, %v1913_v54 }
 0xa5d   :  { %5837 = vmatprep.mubr.msk.f32.mxu0 %vm704_vm15, %v7102_v58  ;;  %5859 = vmatprep.mubr.msk.f32.mxu1 %vm704_vm15, %v7102_v58 }
 0xa5e   :  { %5838 = vmatmul.mubr.msk.f32.vlgmr.msra.gmra.mrb[20].mxu0 %vm704_vm15, %v7104_v27  ;;  %5860 = vmatmul.mubr.msk.f32.vlgmr.msra.gmra.mrb[16].mxu1 %vm704_vm15, %v7104_v27 }
 0xa5f   :  { %6353 = vmatpush3.bf16.msra.mxu0 %v6350_v62  ;;  %5848 = vmatprep.mubr.msk.f32.mxu0 %vm704_vm15, %v7102_v58  ;;  %v5237_v62 = vld [vmem:[%s7612_s5 + $0x1c] ss:$0 sm:$0xff] }
 0xa60   :  { %6355 = vmatprep.subr.bf16.mxu0 %v6354_v30  ;;  %6376 = vmatpush3.bf16.msk.msra.mxu1 %vm6997_vm12, %v6725_v11 }
 0xa61   :  { %6377 = vmatprep.subr.bf16.mxu1 %v6723_v23  ;;  %5881 = vmatprep.mubr.msk.f32.mxu1 %vm6724_vm0, %v6721_v14 }
 0xa63   :  { %6357 = vmatpush3.bf16.msra.mxu0 %v6354_v30 }
 0xa64   :  { %6366 = vmatprep.subr.bf16.mxu0 %v6723_v23  ;;  %6379 = vmatpush3.bf16.msk.msra.mxu1 %vm7009_vm13, %v6725_v11 }
 0xa65   :  { %6380 = vmatprep.subr.bf16.mxu1 %v6723_v23 }
 0xa66   :  { %5849 = vmatmul.mubr.msk.f32.vlgmr.msra.gmra.mrb[22].mxu0 %vm704_vm15, %v7104_v27 }
 0xa67   :  { %5870 = vmatprep.mubr.msk.f32.mxu0 %vm6724_vm0, %v6721_v14 }
 0xb31   :  { %v5839_v59 = vpop.f32.mrb[20].mxu0  ;;  %v5861_v60 = vpop.f32.mrb[16].mxu1 }
 0xb32   :  { %v7134_v35 = vadd.f32 %v5861_v60, %v5240_v45  ;;  %v2003_v61 = vpop.f32.mrb[21].mxu0  ;;  %v2171_v32 = vpop.f32.mrb[17].mxu1  ;;  %v2009_v48 = vadd.f32 %v5839_v59, %v5234_v24 }
 0xb33   :  { %v2004_v31 = vadd.f32 %v5234_v24, %v2003_v61  ;;  %v2172_v59 = vadd.f32 %v5240_v45, %v2171_v32 }
 0xb39   :  { %v5850_v63 = vpop.f32.mrb[22].mxu0 }
 0xb3a   :  { %v2087_v0 = vpop.f32.mrb[23].mxu0  ;;  %v2093_v13 = vadd.f32 %v5850_v63, %v5237_v62  ;;  %v2184_v63 = vmul.f32 %v2172_v59, %v6932_v28 }
 0xb3b   :  { %v2088_v3 = vadd.f32 %v5237_v62, %v2087_v0  ;;  %v2185_v0 = vmul.f32 %v2172_v59, %v6937_v29 }
 0xb3c   :  { %v2428_v25 = vmul.f32 %v2093_v13, %v6932_v28  ;;  %v2429_v26 = vmul.f32 %v2093_v13, %v6937_v29  ;;  %v2430_v36 = vmul.f32 %v2093_v13, %v6958_v42  ;;  %v2431_v38 = vmul.f32 %v2093_v13, %v6963_v44 }
 0xb3d   :  { %v2180_v5 = vmul.f32 %v2088_v3, %v6932_v28  ;;  %v2181_v7 = vmul.f32 %v2088_v3, %v6937_v29  ;;  %v2182_v8 = vmul.f32 %v2088_v3, %v6958_v42  ;;  %v2183_v9 = vmul.f32 %v2088_v3, %v6963_v44 }
 0xb3e   :  { %v6387_v33 = vpack.c.bf16 %v2429_v26, %v2428_v25  ;;  %v6391_v41 = vpack.c.bf16 %v2431_v38, %v2430_v36  ;;  %v2432_v25 = vmul.f32 %v7134_v35, %v6932_v28  ;;  %v2433_v26 = vmul.f32 %v7134_v35, %v6937_v29 }
 0xb3f   :  { %v6367_v15 = vpack.c.bf16 %v2181_v7, %v2180_v5  ;;  %v6371_v2 = vpack.c.bf16 %v2183_v9, %v2182_v8  ;;  %v2186_v5 = vmul.f32 %v2172_v59, %v6958_v42  ;;  %v2187_v7 = vmul.f32 %v2172_v59, %v6963_v44 }
 0xb40   :  { %v2435_v36 = vmul.f32 %v7134_v35, %v6963_v44  ;;  %v6401_v38 = vpack.c.bf16 %v2433_v26, %v2432_v25  ;;  %v2815_v25 = vld [vmem:[#allocation2 + $0x298] sm:$0xff] }
 0xb41   :  { %6369 = vmatpush3.bf16.xpose.msk.msra.mxu0 %vm6951_vm11, %v6367_v15  ;;  %v6381_v15 = vpack.c.bf16 %v2185_v0, %v2184_v63  ;;  %v5265_v63 = vld [vmem:[%s7612_s5 + $0x1e] ss:$0 sm:$0xff] }
 0xb42   :  { %6370 = vmatprep.subr.bf16.mxu0 %v6723_v23 }
 0xb49   :  { %6373 = vmatpush3.bf16.xpose.msk.msra.mxu0 %vm6951_vm11, %v6371_v2 }
 0xb4a   :  { %6386 = vmatprep.subr.bf16.mxu0 %v6723_v23 }
 0xb50   :  { %5871 = vmatmul.mubr.msk.f32.vlgmr.msra.gmra.mrb[24].mxu0 %vm704_vm15, %v2004_v31 }
 0xb51   :  { %6389 = vmatpush3.bf16.xpose.msk.msra.mxu0 %vm6951_vm11, %v6387_v33  ;;  %5903 = vmatprep.mubr.msk.f32.mxu0 %vm6724_vm0, %v6721_v14  ;;  %v2434_v33 = vmul.f32 %v7134_v35, %v6958_v42 }
 0xb52   :  { %6390 = vmatprep.subr.bf16.mxu0 %v6723_v23 }
 0xb59   :  { %6393 = vmatpush3.bf16.xpose.msk.msra.mxu0 %vm6951_vm11, %v6391_v41  ;;  %v6404_v41 = vpack.c.bf16 %v2435_v36, %v2434_v33  ;;  %v2905_v33 = vld [vmem:[#allocation2 + $0x2a8] sm:$0xff]  ;;  %v2906_v36 = vld [vmem:[#allocation2 + $0x2b0] sm:$0xff] }
 0xb60   :  { %5904 = vmatmul.mubr.msk.f32.vlgmr.msra.gmra.mrb[26].mxu0 %vm704_vm15, %v2009_v48  ;;  %v2676_v48 = vld [vmem:[#allocation2 + $0x260] sm:$0xff] }
 0xc23   :  { %v2269_v50 = vpop.f32.mrb[24].mxu0 }
 0xc24   :  { %v2273_v51 = vmul.f32 0.35355338, %v2269_v50  ;;  %v5872_v52 = vpop.f32.mrb[25].mxu0  ;;  %v2677_v50 = vld [vmem:[#allocation2 + $0x268] sm:$0xff] }
 0xc25   :  { %v6406_v52 = vpack.c.bf16 %v2677_v50, %v2676_v48  ;;  %v2908_v50 = vld [vmem:[#allocation2 + $0x2c0] sm:$0xff] }
 0xc26   :  { %v2274_v53 = vsel %vm704_vm15, %v2273_v51, -inf }
 0xc27   :  { %2275 = vmax.xlane.f32.xlu1 %v2274_v53  ;;  %v2679_v53 = vld [vmem:[#allocation2 + $0x278] sm:$0xff]  ;;  %6407 = vmatprep.subr.bf16.mxu0 %v6406_v52 }
 0xc28   :  { %6409 = vmatpush3.bf16.msra.mxu0 %v6406_v52 }
 0xc33   :  { %v2517_v54 = vpop.f32.mrb[26].mxu0 }
 0xc34   :  { %v2521_v55 = vmul.f32 0.35355338, %v2517_v54  ;;  %v5905_v57 = vpop.f32.mrb[27].mxu0 }
 0xc36   :  { %v2522_v30 = vsel %vm704_vm15, %v2521_v55, -inf }
 0xc37   :  { %2523 = vmax.xlane.f32.xlu0 %v2522_v30 }
 0xc38   :  { %568 = vperm.xlu1 %6623, %v6903_v20   ;;  %v6384_v20 = vpack.c.bf16 %v2187_v7, %v2186_v5 }
 0xcb4   :  { %v2276_v60 = vpop.xlane.xlu1 %2275 }
 0xcb5   :  { %v2277_v61 = vsub.f32 %v2273_v51, %v2276_v60  ;;  %v2678_v51 = vld [vmem:[#allocation2 + $0x270] sm:$0xff] }
 0xcb6   :  { %v6410_v54 = vpack.c.bf16 %v2679_v53, %v2678_v51  ;;  %v2909_v51 = vld [vmem:[#allocation2 + $0x2c8] sm:$0xff] }
 0xcb7   :  { %v2278_v62 = vmul.f32 1.442695, %v2277_v61  ;;  %v6430_v52 = vpack.c.bf16 %v2909_v51, %v2908_v50 }
 0xcb8   :  { %6411 = vmatprep.subr.bf16.mxu0 %v6410_v54  ;;  %v569_v53 = vpop.permute.xlu1 %568 }
 0xcb9   :  { %6640 = vpow2.f32 %v2278_v62  ;;  %6413 = vmatpush3.bf16.msra.mxu0 %v6410_v54 }
 0xcc3   :  { %v6641_v3 = vpop.eup %6640 }
 0xcc4   :  { %5882 = vmatmul.mubr.msk.f32.vlgmr.msra.gmra.mrb[18].mxu1 %vm704_vm15, %v6641_v3  ;;  %v2524_v45 = vpop.xlane.xlu0 %2523 }
 0xcc5   :  { %6382 = vmatpush3.bf16.msra.mxu1 %v6381_v15  ;;  %5892 = vmatprep.mubr.msk.f32.mxu1 %vm6724_vm0, %v6721_v14  ;;  %v2525_v9 = vsub.f32 %v2521_v55, %v2524_v45 }
 0xcc6   :  { %6383 = vmatprep.subr.bf16.mxu1 %v6723_v23 }
 0xcc7   :  { %v2526_v13 = vmul.f32 1.442695, %v2525_v9 }
 0xcc9   :  { %6385 = vmatpush3.bf16.msra.mxu1 %v6384_v20 }
 0xcca   :  { %6394 = vmatprep.subr.bf16.mxu1 %v6723_v23 }
 0xd97   :  { %v2349_v32 = vpop.f32.mrb[18].mxu1 }
 0xd98   :  { %6642 = vrcp.f32 %v2349_v32  ;;  %v5883_v8 = vpop.f32.mrb[19].mxu1 }
 0xd99   :  { %6644 = vpow2.f32 %v2526_v13 }
 0xda2   :  { %v6643_v2 = vpop.eup %6642 }
 0xda3   :  { %v2354_v24 = vmul.f32 %v6643_v2, %v6641_v3  ;;  %v6645_v31 = vpop.eup %6644  ;;  %v6689_v2 = vld [vmem:[%s7608_s1 + $0x8] sm:$0xff] }
 0xda5   :  { %5893 = vmatmul.mubr.msk.f32.vlgmr.msra.gmra.mrb[20].mxu1 %vm704_vm15, %v2354_v24  ;;  %v2814_v24 = vld [vmem:[#allocation2 + $0x290] sm:$0xff] }
 0xda6   :  { %6396 = vmatpush3.bf16.msk.msra.mxu1 %vm6997_vm12, %v6725_v11  ;;  %5914 = vmatprep.mubr.msk.f32.mxu1 %vm6724_vm0, %v6721_v14  ;;  %v6418_v26 = vpack.c.bf16 %v2815_v25, %v2814_v24 }
 0xda7   :  { %6397 = vmatprep.subr.bf16.mxu1 %v6723_v23 }
 0xdaa   :  { %6399 = vmatpush3.bf16.msk.msra.mxu1 %vm7009_vm13, %v6725_v11 }
 0xdab   :  { %6400 = vmatprep.subr.bf16.mxu1 %v6723_v23 }
 0xdad   :  { %5915 = vmatmul.mubr.msk.f32.vlgmr.msra.gmra.mrb[22].mxu1 %vm704_vm15, %v6645_v31 }
 0xdae   :  { %6402 = vmatpush3.bf16.msra.mxu1 %v6401_v38  ;;  %5925 = vmatprep.mubr.msk.f32.mxu1 %vm6724_vm0, %v6721_v14 }
 0xdaf   :  { %6403 = vmatprep.subr.bf16.mxu1 %v6723_v23 }
 0xdb2   :  { %6405 = vmatpush3.bf16.msra.mxu1 %v6404_v41  ;;  %v2907_v41 = vld [vmem:[#allocation2 + $0x2b8] sm:$0xff] }
 0xdb3   :  { %v6426_v48 = vpack.c.bf16 %v2907_v41, %v2906_v36 }
 0xe78   :  { %v2424_v35 = vpop.f32.mrb[20].mxu1 }
 0xe79   :  { %v5894_v55 = vpop.f32.mrb[21].mxu1  ;;  %5936 = vmatprep.mubr.msk.f32.mxu0 %vm704_vm15, %v2424_v35 }
 0xe80   :  { %v2597_v57 = vpop.f32.mrb[22].mxu1 }
 0xe81   :  { %6646 = vrcp.f32 %v2597_v57  ;;  %v5916_v30 = vpop.f32.mrb[23].mxu1 }
 0xe8b   :  { %v6647_v60 = vpop.eup %6646 }
 0xe8c   :  { %v2602_v61 = vmul.f32 %v6647_v60, %v6645_v31  ;;  %v2904_v31 = vld [vmem:[#allocation2 + $0x2a0] sm:$0xff] }
 0xe8d   :  { %v6422_v38 = vpack.c.bf16 %v2905_v33, %v2904_v31 }
 0xe8e   :  { %5926 = vmatmul.mubr.msk.f32.vlgmr.msra.gmra.mrb[24].mxu1 %vm704_vm15, %v2602_v61 }
 0xe8f   :  { %6423 = vmatprep.subr.bf16.mxu0 %v6422_v38 }
 0xf61   :  { %v2672_v62 = vpop.f32.mrb[24].mxu1 }
 0xf62   :  { %v5927_v59 = vpop.f32.mrb[25].mxu1  ;;  %5937 = vmatmul.mubr.msk.f32.vlgmr.msra.gmra.mrb[28].mxu0 %vm704_vm15, %v2672_v62 }
 0xf63   :  { %6425 = vmatpush3.bf16.msra.mxu0 %v6422_v38 }
 0xf64   :  { %6427 = vmatprep.subr.bf16.mxu0 %v6426_v48 }
 0xf67   :  { %6429 = vmatpush3.bf16.msra.mxu0 %v6426_v48 }
 0xf68   :  { %6431 = vmatprep.subr.bf16.mxu0 %v6430_v52 }
 0xf6b   :  { %6433 = vmatpush3.bf16.msra.mxu0 %v6430_v52 }
0x1035   :  { %v5938_v0 = vpop.f32.mrb[28].mxu0 }
0x1036   :  { %v2763_v3 = vadd.f32 %v5938_v0, %v5265_v63  ;;  %v2757_v5 = vpop.f32.mrb[29].mxu0 }
0x1037   :  { %v2758_v7 = vadd.f32 %v5265_v63, %v2757_v5 }
0x1038   :  { %v7207_v15 = vadd.f32 %v2763_v3, %v7104_v27 }
0x1039   :  { %v7210_v20 = vadd.f32 %v2758_v7, %v7102_v58  ;;  %v6688_v58 = vld [vmem:[%s7608_s1] sm:$0xff] }
0x103a   :  { %v2771_v45 = vsel %vm704_vm15, %v7207_v15, 0.0  ;;  %v2777_v32 = vmul.f32 %v7207_v15, %v7207_v15 }
0x103b   :  { %2772 = vadd.xlane.f32.xlu0 %v2771_v45  ;;  %v2768_v8 = vsel %vm704_vm15, %v7210_v20, 0.0  ;;  %v2776_v27 = vmul.f32 %v7210_v20, %v7210_v20 }
0x103c   :  { %2769 = vadd.xlane.f32.xlu1 %v2768_v8  ;;  %v2781_v9 = vsel %vm704_vm15, %v2777_v32, 0.0  ;;  %v490_v8 = vld [vmem:[#allocation2 + $0x10] sm:$0x7] }
0x103d   :  { %v2778_v13 = vsel %vm704_vm15, %v2776_v27, 0.0  ;;  %v579_v27 = vrot.slane %v490_v8, %v255_v47  ;;  %v690_v25 = vrot.slane %v490_v8, %v390_v56  ;;  %v5268_v47 = vld [vmem:[%s7612_s5 + $0x21] ss:$0 sm:$0xff] }
0x103f   :  { %2782 = vadd.xlane.f32.xlu0 %v2781_v9  ;;  %v580_v24 = vmul.f32 %v579_v27, %v569_v53 }
0x104d   :  { %661 = vperm.xlu1 %6623, %v6907_v22   ;;  %v2812_v22 = vld [vmem:[#allocation2 + $0x280] sm:$0xff] }
0x1051   :  { %666 = vperm.xlu1 %6623, %v6905_v21   ;;  %v2813_v21 = vld [vmem:[#allocation2 + $0x288] sm:$0xff] }
0x1055   :  { %573 = vperm.xlu0 %6622, %v6901_v19   ;;  %v6414_v19 = vpack.c.bf16 %v2813_v21, %v2812_v22  ;;  %v5182_v22 = vld [vmem:[%s7612_s5 + $0x1] ss:$0 sm:$0xff] }
0x1056   :  { %v482_v31 = vadd.f32 %v5182_v22, %v6899_v18  ;;  %v487_v51 = vadd.f32 %v6897_v17, %v5182_v22 }
0x1057   :  { %6415 = vmatprep.subr.bf16.mxu1 %v6414_v19 }
0x1058   :  { %6417 = vmatpush3.bf16.msra.mxu1 %v6414_v19  ;;  %v582_v38 = vadd.f32 %v580_v24, %v482_v31 }
0x1059   :  { %679 = vperm.xlu0 %6622, %v6688_v58   ;;  %6419 = vmatprep.subr.bf16.mxu1 %v6418_v26 }
0x105c   :  { %6421 = vmatpush3.bf16.msra.mxu1 %v6418_v26 }
0x105d   :  { %6439 = vmatprep.subr.bf16.mxu1 %v6840_v34 }
0x1075   :  { %2779 = vadd.xlane.f32.xlu1 %v2778_v13 }
0x1086   :  { %684 = vperm.xlu1 %6623, %v6689_v2   ;;  %v672_v2 = vrot.slane %v490_v8, %v372_v49 }
0x10c8   :  { %v2773_v54 = vpop.xlane.xlu0 %2772 }
0x10c9   :  { %v2770_v35 = vpop.xlane.xlu1 %2769  ;;  %v2775_v57 = vmul.f32 0.03125, %v2773_v54 }
0x10ca   :  { %v2774_v63 = vmul.f32 0.03125, %v2770_v35 }
0x10cb   :  { %v2787_v61 = vmul.f32 %v2775_v57, %v2775_v57  ;;  %v2795_v13 = vsub.f32 %v7207_v15, %v2775_v57 }
0x10cc   :  { %v2783_v55 = vpop.xlane.xlu0 %2782  ;;  %v2786_v5 = vmul.f32 %v2774_v63, %v2774_v63  ;;  %v2794_v19 = vsub.f32 %v7210_v20, %v2774_v63  ;;  %v5269_v20 = vld [vmem:[%s7612_s5 + $0x22] ss:$0 sm:$0xff] }
0x10cd   :  { %v2785_v30 = vmul.f32 0.03125, %v2783_v55  ;;  %v662_v60 = vpop.permute.xlu1 %661 }
0x10ce   :  { %v673_v49 = vmul.f32 %v672_v2, %v662_v60 }
0x10cf   :  { %v2789_v62 = vsub.f32 %v2785_v30, %v2787_v61 }
0x10d0   :  { %v675_v56 = vadd.f32 %v673_v49, %v582_v38  ;;  %v5273_v38 = vld [vmem:[%s7612_s5 + $0x20] ss:$0 sm:$0xff] }
0x10d1   :  { %v667_v59 = vpop.permute.xlu1 %666  ;;  %v2791_v0 = vadd.f32 1e-05, %v2789_v62 }
0x10d2   :  { %v674_v35 = vmul.f32 %v672_v2, %v667_v59 }
0x10d3   :  { %6648 = vrsqrt.f32 %v2791_v0 }
0x10d4   :  { %v574_v9 = vpop.permute.xlu0 %573 }
0x10d5   :  { %v581_v1 = vmul.f32 %v579_v27, %v574_v9 }
0x10d7   :  { %v583_v54 = vadd.f32 %v581_v1, %v487_v51 }
0x10d8   :  { %v680_v15 = vpop.permute.xlu0 %679 }
0x10d9   :  { %v691_v41 = vmul.f32 %v690_v25, %v680_v15  ;;  %v676_v17 = vadd.f32 %v674_v35, %v583_v54 }
0x10db   :  { %v7255_v53 = vadd.f32 %v691_v41, %v675_v56 }
0x10dd   :  { %v6649_v58 = vpop.eup %6648 }
0x10de   :  { %v2797_v21 = vmul.f32 %v6649_v58, %v2795_v13 }
0x10e0   :  { %v2804_v36 = vmul.f32 %v5268_v47, %v2797_v21  ;;  %v6691_v21 = vld [vmem:[%s7612_s5 + $0x2] ss:$0 sm:$0xff] }
0x10e2   :  { %v7253_v52 = vadd.f32 %v5269_v20, %v2804_v36 }
0x1102   :  { %v2780_v3 = vpop.xlane.xlu1 %2779 }
0x1103   :  { %v2784_v7 = vmul.f32 0.03125, %v2780_v3 }
0x1105   :  { %v2788_v45 = vsub.f32 %v2784_v7, %v2786_v5 }
0x1106   :  { %v685_v18 = vpop.permute.xlu1 %684 }
0x1107   :  { %v2790_v32 = vadd.f32 1e-05, %v2788_v45  ;;  %v692_v55 = vmul.f32 %v690_v25, %v685_v18 }
0x1109   :  { %6650 = vrsqrt.f32 %v2790_v32  ;;  %v7266_v57 = vadd.f32 %v692_v55, %v676_v17 }
0x1113   :  { %v6651_v26 = vpop.eup %6650 }
0x1114   :  { %v2796_v33 = vmul.f32 %v6651_v26, %v2794_v19 }
0x1116   :  { %v2803_v48 = vmul.f32 %v5268_v47, %v2796_v33 }
0x1118   :  { %v7250_v50 = vadd.f32 %v5269_v20, %v2803_v48 }
0x111a   :  { %5947 = vmatprep.mubr.msk.f32.mxu1 %vm704_vm15, %v7250_v50 }
0x111b   :  { %5948 = vmatmul.mubr.msk.f32.vlgmr.msra.gmra.mrb[26].mxu1 %vm704_vm15, %v7253_v52 }
0x111c   :  { %6441 = vmatpush3.bf16.msra.mxu1 %v6840_v34  ;;  %5977 = vmatprep.mubr.msk.f32.mxu1 %vm704_vm15, %v7255_v53  ;;  %v2910_v34 = vld [vmem:[#allocation2 + $0x2d0] sm:$0xff] }
0x111d   :  { %6443 = vmatprep.subr.bf16.mxu1 %v6848_v40 }
0x1120   :  { %6445 = vmatpush3.bf16.msra.mxu1 %v6848_v40  ;;  %v2911_v40 = vld [vmem:[#allocation2 + $0x2d8] sm:$0xff] }
0x1121   :  { %6447 = vmatprep.subr.bf16.mxu1 %v6843_v37  ;;  %v6434_v30 = vpack.c.bf16 %v2911_v40, %v2910_v34 }
0x1123   :  { %5978 = vmatmul.mubr.msk.f32.vlgmr.msra.gmra.mrb[28].mxu1 %vm704_vm15, %v7266_v57  ;;  %6435 = vmatprep.subr.bf16.mxu0 %v6434_v30 }
0x1124   :  { %6449 = vmatpush3.bf16.msra.mxu1 %v6843_v37  ;;  %5988 = vmatprep.mubr.msk.f32.mxu1 %vm704_vm15, %v7255_v53  ;;  %v5270_v37 = vld [vmem:[%s7612_s5 + $0x1f] ss:$0 sm:$0xff] }
0x1125   :  { %6451 = vmatprep.subr.bf16.mxu1 %v6851_v43  ;;  %6437 = vmatpush3.bf16.msra.mxu0 %v6434_v30 }
0x1126   :  { %6455 = vmatprep.subr.bf16.mxu0 %v6858_v46 }
0x1128   :  { %6453 = vmatpush3.bf16.msra.mxu1 %v6851_v43 }
0x1129   :  { %6462 = vmatprep.subr.bf16.mxu1 %v6723_v23 }
0x112b   :  { %5989 = vmatmul.mubr.msk.f32.vlgmr.msra.gmra.mrb[30].mxu1 %vm704_vm15, %v7266_v57 }
0x112c   :  { %6010 = vmatprep.mubr.msk.f32.mxu1 %vm6724_vm0, %v6721_v14 }
0x11ee   :  { %v5949_v43 = vpop.f32.mrb[26].mxu1 }
0x11ef   :  { %v2899_v60 = vadd.f32 %v5949_v43, %v5270_v37  ;;  %v2893_v61 = vpop.f32.mrb[27].mxu1 }
0x11f0   :  { %v2894_v62 = vadd.f32 %v5270_v37, %v2893_v61  ;;  %v6692_v61 = vld [vmem:[%s7612_s5 + $0x4] ss:$0 sm:$0xff] }
0x11f1   :  { %v2903_v63 = vmax.f32 %v2899_v60, 0.0 }
0x11f2   :  { %v2902_v59 = vmax.f32 %v2894_v62, 0.0 }
0x11f4   :  { %5966 = vmatprep.mubr.msk.f32.mxu0 %vm1794_vm14, %v2902_v59 }
0x11f5   :  { %5967 = vmatmul.mubr.msk.f32.vlgmr.msra.gmra.mrb[30].mxu0 %vm1794_vm14, %v2903_v63 }
0x11f6   :  { %v5979_v0 = vpop.f32.mrb[28].mxu1  ;;  %6457 = vmatpush3.bf16.msra.mxu0 %v6858_v46  ;;  %5999 = vmatprep.mubr.msk.f32.mxu0 %vm704_vm15, %v7255_v53 }
0x11f7   :  { %v3116_v3 = vpop.f32.mrb[29].mxu1  ;;  %6459 = vmatprep.subr.bf16.mxu0 %v6880_v16  ;;  %v3122_v15 = vadd.f32 %v6691_v21, %v5979_v0 }
0x11f8   :  { %v3117_v24 = vadd.f32 %v6691_v21, %v3116_v3 }
0x11fa   :  { %6461 = vmatpush3.bf16.msra.mxu0 %v6880_v16  ;;  %v6690_v16 = vld [vmem:[%s7612_s5 + $0x3] ss:$0 sm:$0xff] }
0x11fb   :  { %6470 = vmatprep.subr.bf16.mxu0 %v6723_v23 }
0x11fd   :  { %6000 = vmatmul.mubr.msk.f32.vlgmr.msra.gmra.mrb[32].mxu0 %vm704_vm15, %v7266_v57 }
0x11fe   :  { %v5990_v5 = vpop.f32.mrb[30].mxu1  ;;  %6472 = vmatpush3.bf16.msk.msra.mxu0 %vm6997_vm12, %v6725_v11  ;;  %6021 = vmatprep.mubr.msk.f32.mxu0 %vm6724_vm0, %v6721_v14 }
0x11ff   :  { %v3191_v46 = vpop.f32.mrb[31].mxu1  ;;  %6473 = vmatprep.subr.bf16.mxu0 %v6723_v23  ;;  %v3197_v27 = vadd.f32 %v6690_v16, %v5990_v5 }
0x1200   :  { %v3192_v7 = vadd.f32 %v6690_v16, %v3191_v46 }
0x1201   :  { %v3523_v2 = vmul.f32 %v3197_v27, %v6932_v28  ;;  %v3524_v22 = vmul.f32 %v3197_v27, %v6937_v29  ;;  %v3525_v25 = vmul.f32 %v3197_v27, %v6958_v42  ;;  %v3526_v47 = vmul.f32 %v3197_v27, %v6963_v44 }
0x1202   :  { %v3275_v45 = vmul.f32 %v3192_v7, %v6932_v28  ;;  %v3276_v32 = vmul.f32 %v3192_v7, %v6937_v29  ;;  %6475 = vmatpush3.bf16.msk.msra.mxu0 %vm7009_vm13, %v6725_v11  ;;  %v3277_v9 = vmul.f32 %v3192_v7, %v6958_v42  ;;  %v3278_v58 = vmul.f32 %v3192_v7, %v6963_v44 }
0x1203   :  { %6476 = vmatprep.subr.bf16.mxu0 %v6723_v23  ;;  %v6483_v19 = vpack.c.bf16 %v3524_v22, %v3523_v2  ;;  %v6487_v26 = vpack.c.bf16 %v3526_v47, %v3525_v25 }
0x1204   :  { %v6463_v8 = vpack.c.bf16 %v3276_v32, %v3275_v45  ;;  %v6467_v13 = vpack.c.bf16 %v3278_v58, %v3277_v9 }
0x1206   :  { %6465 = vmatpush3.bf16.xpose.msk.msra.mxu1 %vm6951_vm11, %v6463_v8 }
0x1207   :  { %6466 = vmatprep.subr.bf16.mxu1 %v6723_v23 }
0x120e   :  { %6469 = vmatpush3.bf16.xpose.msk.msra.mxu1 %vm6951_vm11, %v6467_v13 }
0x120f   :  { %6482 = vmatprep.subr.bf16.mxu1 %v6723_v23 }
0x1215   :  { %6011 = vmatmul.mubr.msk.f32.vlgmr.msra.gmra.mrb[32].mxu1 %vm704_vm15, %v3117_v24 }
0x1216   :  { %6485 = vmatpush3.bf16.xpose.msk.msra.mxu1 %vm6951_vm11, %v6483_v19  ;;  %6043 = vmatprep.mubr.msk.f32.mxu1 %vm6724_vm0, %v6721_v14 }
0x1217   :  { %6486 = vmatprep.subr.bf16.mxu1 %v6723_v23 }
0x121e   :  { %6489 = vmatpush3.bf16.xpose.msk.msra.mxu1 %vm6951_vm11, %v6487_v26 }
0x121f   :  { %6503 = vmatprep.subr.bf16.mxu1 %v7049_v4 }
0x1225   :  { %6044 = vmatmul.mubr.msk.f32.vlgmr.msra.gmra.mrb[34].mxu1 %vm704_vm15, %v3122_v15 }
0x1226   :  { %6505 = vmatpush3.bf16.msra.mxu1 %v7049_v4 }
0x1227   :  { %6507 = vmatprep.subr.bf16.mxu1 %v7051_v6 }
0x122a   :  { %6509 = vmatpush3.bf16.msra.mxu1 %v7051_v6 }
0x12c8   :  { %v5968_v31 = vpop.f32.mrb[30].mxu0 }
0x12c9   :  { %v2989_v49 = vpop.f32.mrb[31].mxu0  ;;  %v2995_v56 = vadd.f32 %v5968_v31, %v5273_v38 }
0x12ca   :  { %v2990_v41 = vadd.f32 %v5273_v38, %v2989_v49  ;;  %v3988_v38 = vld [vmem:[#allocation2 + $0xc0] sm:$0xff] }
0x12cb   :  { %v7346_v6 = vadd.f32 %v2995_v56, %v7253_v52 }
0x12cc   :  { %v7342_v51 = vadd.f32 %v2990_v41, %v7250_v50  ;;  %v3989_v41 = vld [vmem:[#allocation2 + $0xc8] sm:$0xff] }
0x12cd   :  { %v3003_v54 = vsel %vm704_vm15, %v7346_v6, 0.0  ;;  %v3009_v35 = vmul.f32 %v7346_v6, %v7346_v6 }
0x12ce   :  { %v3000_v18 = vsel %vm704_vm15, %v7342_v51, 0.0  ;;  %v3008_v40 = vmul.f32 %v7342_v51, %v7342_v51 }
0x12cf   :  { %v3013_v50 = vsel %vm704_vm15, %v3009_v35, 0.0 }
0x12d0   :  { %v6001_v33 = vpop.f32.mrb[32].mxu0  ;;  %v3010_v30 = vsel %vm704_vm15, %v3008_v40, 0.0 }
0x12d1   :  { %v3266_v36 = vpop.f32.mrb[33].mxu0  ;;  %v3272_v13 = vadd.f32 %v6692_v61, %v6001_v33 }
0x12d2   :  { %v3267_v62 = vadd.f32 %v6692_v61, %v3266_v36  ;;  %v5276_v61 = vld [vmem:[%s7612_s5 + $0x23] ss:$0 sm:$0xff] }
0x12d3   :  { %v3527_v2 = vmul.f32 %v3272_v13, %v6932_v28  ;;  %v3528_v22 = vmul.f32 %v3272_v13, %v6937_v29  ;;  %v3529_v24 = vmul.f32 %v3272_v13, %v6958_v42  ;;  %v3530_v19 = vmul.f32 %v3272_v13, %v6963_v44 }
0x12d4   :  { %v3279_v59 = vmul.f32 %v3267_v62, %v6932_v28  ;;  %v3280_v63 = vmul.f32 %v3267_v62, %v6937_v29  ;;  %v3281_v3 = vmul.f32 %v3267_v62, %v6958_v42  ;;  %v3282_v5 = vmul.f32 %v3267_v62, %v6963_v44 }
0x12d5   :  { %v6497_v25 = vpack.c.bf16 %v3528_v22, %v3527_v2  ;;  %v6500_v47 = vpack.c.bf16 %v3530_v19, %v3529_v24  ;;  %v5313_v19 = vld [vmem:[%s7612_s5 + $0x7] ss:$0 sm:$0xff] }
0x12d6   :  { %v6477_v46 = vpack.c.bf16 %v3280_v63, %v3279_v59  ;;  %v6480_v16 = vpack.c.bf16 %v3282_v5, %v3281_v3  ;;  %v3990_v63 = vld [vmem:[#allocation2 + $0xd0] sm:$0xff] }
0x12e8   :  { %v3364_v48 = vpop.f32.mrb[32].mxu1 }
0x12e9   :  { %v3368_v20 = vmul.f32 0.35355338, %v3364_v48  ;;  %v6012_v1 = vpop.f32.mrb[33].mxu1  ;;  %v6518_v48 = vpack.c.bf16 %v3989_v41, %v3988_v38 }
0x12eb   :  { %v3369_v4 = vsel %vm704_vm15, %v3368_v20, -inf  ;;  %6519 = vmatprep.subr.bf16.mxu1 %v6518_v48 }
0x12ec   :  { %3370 = vmax.xlane.f32.xlu0 %v3369_v4 }
0x12f0   :  { %3001 = vadd.xlane.f32.xlu0 %v3000_v18 }
0x12f4   :  { %3004 = vadd.xlane.f32.xlu0 %v3003_v54 }
0x12f8   :  { %3014 = vadd.xlane.f32.xlu0 %v3013_v50  ;;  %v3612_v55 = vpop.f32.mrb[34].mxu1 }
0x12f9   :  { %v3616_v17 = vmul.f32 0.35355338, %v3612_v55  ;;  %v6045_v34 = vpop.f32.mrb[35].mxu1 }
0x12fb   :  { %v3617_v52 = vsel %vm704_vm15, %v3616_v17, -inf }
0x12fc   :  { %3618 = vmax.xlane.f32.xlu1 %v3617_v52 }
0x1300   :  { %3011 = vadd.xlane.f32.xlu1 %v3010_v30 }
0x1379   :  { %v3371_v37 = vpop.xlane.xlu0 %3370 }
0x137a   :  { %v3372_v43 = vsub.f32 %v3368_v20, %v3371_v37 }
0x137c   :  { %v3373_v60 = vmul.f32 1.442695, %v3372_v43 }
0x137d   :  { %v3002_v20 = vpop.xlane.xlu0 %3001 }
0x137e   :  { %6652 = vpow2.f32 %v3373_v60  ;;  %v3006_v56 = vmul.f32 0.03125, %v3002_v20 }
0x1380   :  { %v3018_v54 = vmul.f32 %v3006_v56, %v3006_v56  ;;  %v3026_v43 = vsub.f32 %v7342_v51, %v3006_v56  ;;  %v3899_v56 = vld [vmem:[#allocation2 + $0xa8] sm:$0xff] }
0x1381   :  { %v3005_v4 = vpop.xlane.xlu0 %3004 }
0x1382   :  { %v3007_v55 = vmul.f32 0.03125, %v3005_v4 }
0x1384   :  { %v3019_v52 = vmul.f32 %v3007_v55, %v3007_v55  ;;  %v3027_v3 = vsub.f32 %v7346_v6, %v3007_v55  ;;  %v4079_v55 = vld [vmem:[#allocation2 + $0xe8] sm:$0xff] }
0x1385   :  { %v3015_v35 = vpop.xlane.xlu0 %3014 }
0x1388   :  { %v6653_v0 = vpop.eup %6652 }
0x1389   :  { %6022 = vmatmul.mubr.msk.f32.vlgmr.msra.gmra.mrb[34].mxu0 %vm704_vm15, %v6653_v0  ;;  %v3619_v7 = vpop.xlane.xlu1 %3618 }
0x138a   :  { %6478 = vmatpush3.bf16.msra.mxu0 %v6477_v46  ;;  %6032 = vmatprep.mubr.msk.f32.mxu0 %vm6724_vm0, %v6721_v14  ;;  %v3620_v8 = vsub.f32 %v3616_v17, %v3619_v7  ;;  %v3017_v17 = vmul.f32 0.03125, %v3015_v35  ;;  %v5277_v46 = vld [vmem:[%s7612_s5 + $0x24] ss:$0 sm:$0xff] }
0x138b   :  { %6479 = vmatprep.subr.bf16.mxu0 %v6723_v23 }
0x138c   :  { %v3621_v9 = vmul.f32 1.442695, %v3620_v8  ;;  %v3021_v40 = vsub.f32 %v3017_v17, %v3019_v52 }
0x138d   :  { %v3012_v1 = vpop.xlane.xlu1 %3011 }
0x138e   :  { %6481 = vmatpush3.bf16.msra.mxu0 %v6480_v16  ;;  %v3016_v18 = vmul.f32 0.03125, %v3012_v1  ;;  %v3023_v30 = vadd.f32 1e-05, %v3021_v40  ;;  %v3898_v1 = vld [vmem:[#allocation2 + $0xa0] sm:$0xff] }
0x138f   :  { %6490 = vmatprep.subr.bf16.mxu0 %v6723_v23  ;;  %v6510_v4 = vpack.c.bf16 %v3899_v56, %v3898_v1 }
0x1390   :  { %v3020_v50 = vsub.f32 %v3016_v18, %v3018_v54  ;;  %v3900_v18 = vld [vmem:[#allocation2 + $0xb0] sm:$0xff]  ;;  %v3901_v54 = vld [vmem:[#allocation2 + $0xb8] sm:$0xff] }
0x1391   :  { %v6514_v35 = vpack.c.bf16 %v3901_v54, %v3900_v18 }
0x1392   :  { %v3022_v34 = vadd.f32 1e-05, %v3020_v50  ;;  %v4078_v50 = vld [vmem:[#allocation2 + $0xe0] sm:$0xff] }
0x1393   :  { %v6526_v17 = vpack.c.bf16 %v4079_v55, %v4078_v50 }
0x145c   :  { %v3444_v45 = vpop.f32.mrb[34].mxu0 }
0x145d   :  { %6654 = vrcp.f32 %v3444_v45  ;;  %v6023_v32 = vpop.f32.mrb[35].mxu0 }
0x145e   :  { %6656 = vpow2.f32 %v3621_v9  ;;  %v6693_v9 = vld [vmem:[%s7612_s5 + $0x5] ss:$0 sm:$0xff] }
0x1467   :  { %v6655_v58 = vpop.eup %6654 }
0x1468   :  { %v3449_v27 = vmul.f32 %v6655_v58, %v6653_v0  ;;  %v6657_v21 = vpop.eup %6656  ;;  %v3991_v0 = vld [vmem:[#allocation2 + $0xd8] sm:$0xff] }
0x1469   :  { %v6522_v16 = vpack.c.bf16 %v3991_v0, %v3990_v63 }
0x146a   :  { %6033 = vmatmul.mubr.msk.f32.vlgmr.msra.gmra.mrb[36].mxu0 %vm704_vm15, %v3449_v27 }
0x146b   :  { %6492 = vmatpush3.bf16.msk.msra.mxu0 %vm6997_vm12, %v6725_v11  ;;  %6054 = vmatprep.mubr.msk.f32.mxu0 %vm6724_vm0, %v6721_v14 }
0x146c   :  { %6493 = vmatprep.subr.bf16.mxu0 %v6723_v23 }
0x146f   :  { %6495 = vmatpush3.bf16.msk.msra.mxu0 %vm7009_vm13, %v6725_v11 }
0x1470   :  { %6496 = vmatprep.subr.bf16.mxu0 %v6723_v23 }
0x1472   :  { %6055 = vmatmul.mubr.msk.f32.vlgmr.msra.gmra.mrb[38].mxu0 %vm704_vm15, %v6657_v21 }
0x1473   :  { %6498 = vmatpush3.bf16.msra.mxu0 %v6497_v25  ;;  %6065 = vmatprep.mubr.msk.f32.mxu0 %vm6724_vm0, %v6721_v14 }
0x1474   :  { %6499 = vmatprep.subr.bf16.mxu0 %v6723_v23 }
0x1477   :  { %6501 = vmatpush3.bf16.msra.mxu0 %v6500_v47 }
0x1478   :  { %6511 = vmatprep.subr.bf16.mxu0 %v6510_v4 }
0x153d   :  { %v3519_v26 = vpop.f32.mrb[36].mxu0 }
0x153e   :  { %v6034_v15 = vpop.f32.mrb[37].mxu0  ;;  %6076 = vmatprep.mubr.msk.f32.mxu1 %vm704_vm15, %v3519_v26 }
0x1545   :  { %v3692_v31 = vpop.f32.mrb[38].mxu0 }
0x1546   :  { %6658 = vrcp.f32 %v3692_v31  ;;  %v6056_v49 = vpop.f32.mrb[39].mxu0 }
0x1547   :  { %6660 = vrsqrt.f32 %v3022_v34 }
0x1548   :  { %6662 = vrsqrt.f32 %v3023_v30 }
0x1550   :  { %v6659_v33 = vpop.eup %6658 }
0x1551   :  { %v3697_v36 = vmul.f32 %v6659_v33, %v6657_v21  ;;  %v6661_v37 = vpop.eup %6660 }
0x1552   :  { %v3028_v60 = vmul.f32 %v6661_v37, %v3026_v43  ;;  %v6663_v62 = vpop.eup %6662 }
0x1553   :  { %6066 = vmatmul.mubr.msk.f32.vlgmr.msra.gmra.mrb[40].mxu0 %vm704_vm15, %v3697_v36  ;;  %v3029_v5 = vmul.f32 %v6663_v62, %v3027_v3 }
0x1554   :  { %v3035_v59 = vmul.f32 %v5276_v61, %v3028_v60  ;;  %6513 = vmatpush3.bf16.msra.mxu0 %v6510_v4 }
0x1555   :  { %v3036_v32 = vmul.f32 %v5276_v61, %v3029_v5  ;;  %6515 = vmatprep.subr.bf16.mxu0 %v6514_v35 }
0x1556   :  { %v7400_v45 = vadd.f32 %v5277_v46, %v3035_v59 }
0x1557   :  { %v7405_v6 = vadd.f32 %v5277_v46, %v3036_v32 }
0x1558   :  { %6517 = vmatpush3.bf16.msra.mxu0 %v6514_v35 }
0x1559   :  { %6527 = vmatprep.subr.bf16.mxu0 %v6526_v17 }
0x1626   :  { %v3767_v7 = vpop.f32.mrb[40].mxu0 }
0x1627   :  { %v6067_v51 = vpop.f32.mrb[41].mxu0  ;;  %6077 = vmatmul.mubr.msk.f32.vlgmr.msra.gmra.mrb[36].mxu1 %vm704_vm15, %v3767_v7 }
0x1628   :  { %6521 = vmatpush3.bf16.msra.mxu1 %v6518_v48  ;;  %6098 = vmatprep.mubr.msk.f32.mxu1 %vm704_vm15, %v7400_v45  ;;  %v5308_v51 = vld [vmem:[%s7612_s5 + $0x13] ss:$0 sm:$0xff] }
0x1629   :  { %6523 = vmatprep.subr.bf16.mxu1 %v6522_v16 }
0x162c   :  { %6525 = vmatpush3.bf16.msra.mxu1 %v6522_v16 }
0x162d   :  { %6534 = vmatprep.subr.bf16.mxu1 %v6723_v23 }
0x162f   :  { %6099 = vmatmul.mubr.msk.f32.vlgmr.msra.gmra.mrb[38].mxu1 %vm704_vm15, %v7405_v6 }
0x1630   :  { %6120 = vmatprep.mubr.msk.f32.mxu1 %vm6724_vm0, %v6721_v14 }
0x16fa   :  { %v6078_v8 = vpop.f32.mrb[36].mxu1 }
0x16fb   :  { %v7415_v58 = vadd.f32 %v6693_v9, %v6078_v8  ;;  %v3843_v27 = vpop.f32.mrb[37].mxu1 }
0x16fc   :  { %v7417_v13 = vadd.f32 %v6693_v9, %v3843_v27  ;;  %v5309_v27 = vld [vmem:[%s7612_s5 + $0x14] ss:$0 sm:$0xff] }
0x16fd   :  { %v3855_v2 = vsel %vm704_vm15, %v7415_v58, 0.0  ;;  %v3861_v22 = vmul.f32 %v7415_v58, %v7415_v58 }
0x16fe   :  { %3856 = vadd.xlane.f32.xlu0 %v3855_v2  ;;  %v3852_v21 = vsel %vm704_vm15, %v7417_v13, 0.0  ;;  %v3860_v24 = vmul.f32 %v7417_v13, %v7417_v13 }
0x16ff   :  { %3853 = vadd.xlane.f32.xlu1 %v3852_v21  ;;  %v3865_v25 = vsel %vm704_vm15, %v3861_v22, 0.0 }
0x1700   :  { %v3862_v26 = vsel %vm704_vm15, %v3860_v24, 0.0 }
0x1702   :  { %v6100_v47 = vpop.f32.mrb[38].mxu1  ;;  %3866 = vadd.xlane.f32.xlu0 %v3865_v25 }
0x1703   :  { %v7432_v15 = vadd.f32 %v6100_v47, %v5313_v19  ;;  %v4069_v31 = vpop.f32.mrb[39].mxu1  ;;  %3863 = vadd.xlane.f32.xlu1 %v3862_v26 }
0x1704   :  { %v4070_v49 = vadd.f32 %v5313_v19, %v4069_v31  ;;  %v4080_v19 = vld [vmem:[#allocation2 + $0xf0] sm:$0xff] }
0x1706   :  { %v4162_v33 = vmul.f32 %v4070_v49, %v6932_v28  ;;  %v4163_v36 = vmul.f32 %v4070_v49, %v6937_v29  ;;  %v4164_v41 = vmul.f32 %v4070_v49, %v6958_v42  ;;  %v4165_v48 = vmul.f32 %v4070_v49, %v6963_v44 }
0x1708   :  { %v6535_v38 = vpack.c.bf16 %v4163_v36, %v4162_v33  ;;  %v6539_v20 = vpack.c.bf16 %v4165_v48, %v4164_v41  ;;  %v5316_v33 = vld [vmem:[%s7612_s5 + $0x8] ss:$0 sm:$0xff]  ;;  %v4412_v36 = vmul.f32 %v7432_v15, %v6958_v42 }
0x170a   :  { %6537 = vmatpush3.bf16.xpose.msk.msra.mxu1 %vm6951_vm11, %v6535_v38  ;;  %v4413_v38 = vmul.f32 %v7432_v15, %v6963_v44 }
0x170b   :  { %6538 = vmatprep.subr.bf16.mxu1 %v6723_v23 }
0x170c   :  { %v6559_v1 = vpack.c.bf16 %v4413_v38, %v4412_v36 }
0x1712   :  { %6541 = vmatpush3.bf16.xpose.msk.msra.mxu1 %vm6951_vm11, %v6539_v20 }
0x1713   :  { %6554 = vmatprep.subr.bf16.mxu1 %v6723_v23 }
0x178b   :  { %v3857_v34 = vpop.xlane.xlu0 %3856 }
0x178c   :  { %v3859_v52 = vmul.f32 0.03125, %v3857_v34  ;;  %v3854_v40 = vpop.xlane.xlu1 %3853 }
0x178d   :  { %v3858_v30 = vmul.f32 0.03125, %v3854_v40 }
0x178e   :  { %v3871_v43 = vmul.f32 %v3859_v52, %v3859_v52  ;;  %v3879_v46 = vsub.f32 %v7415_v58, %v3859_v52  ;;  %v4081_v58 = vld [vmem:[#allocation2 + $0xf8] sm:$0xff] }
0x178f   :  { %v3867_v37 = vpop.xlane.xlu0 %3866  ;;  %v3870_v62 = vmul.f32 %v3858_v30, %v3858_v30  ;;  %v3878_v7 = vsub.f32 %v7417_v13, %v3858_v30  ;;  %v6530_v47 = vpack.c.bf16 %v4081_v58, %v4080_v19 }
0x1790   :  { %v3869_v60 = vmul.f32 0.03125, %v3867_v37  ;;  %v3864_v61 = vpop.xlane.xlu1 %3863 }
0x1791   :  { %v3868_v59 = vmul.f32 0.03125, %v3864_v61 }
0x1792   :  { %v3873_v63 = vsub.f32 %v3869_v60, %v3871_v43 }
0x1793   :  { %v3872_v0 = vsub.f32 %v3868_v59, %v3870_v62 }
0x1794   :  { %v3875_v3 = vadd.f32 1e-05, %v3873_v63 }
0x1795   :  { %v3874_v5 = vadd.f32 1e-05, %v3872_v0 }
0x1796   :  { %6664 = vrsqrt.f32 %v3875_v3 }
0x1797   :  { %6666 = vrsqrt.f32 %v3874_v5 }
0x17a0   :  { %v6665_v16 = vpop.eup %6664 }
0x17a1   :  { %v6667_v32 = vpop.eup %6666  ;;  %v3881_v8 = vmul.f32 %v6665_v16, %v3879_v46 }
0x17a2   :  { %v3880_v9 = vmul.f32 %v6667_v32, %v3878_v7 }
0x17a3   :  { %v3888_v2 = vmul.f32 %v5308_v51, %v3881_v8 }
0x17a4   :  { %v3887_v22 = vmul.f32 %v5308_v51, %v3880_v9 }
0x17a5   :  { %v3895_v21 = vadd.f32 %v5309_v27, %v3888_v2 }
0x17a6   :  { %v3894_v24 = vadd.f32 %v5309_v27, %v3887_v22  ;;  %v4661_v22 = vld [vmem:[#allocation2 + $0x118] sm:$0xff] }
0x17a7   :  { %v7456_v13 = vadd.f32 %v3895_v21, %v7266_v57  ;;  %v4411_v57 = vmul.f32 %v7432_v15, %v6937_v29  ;;  %v6578_v21 = vpack.c.bf16 %v4661_v22, %v4660_v12  ;;  %v4892_v22 = vld [vmem:[#allocation2 + $0x1d0] sm:$0xff] }
0x17a8   :  { %v7453_v25 = vadd.f32 %v3894_v24, %v7255_v53  ;;  %v4410_v53 = vmul.f32 %v7432_v15, %v6932_v28 }
0x17aa   :  { %6087 = vmatprep.mubr.msk.f32.mxu0 %vm704_vm15, %v7453_v25  ;;  %v6555_v49 = vpack.c.bf16 %v4411_v57, %v4410_v53  ;;  %v5341_v53 = vld [vmem:[%s7612_s5 + $0x9] ss:$0 sm:$0xff] }
0x17ab   :  { %6088 = vmatmul.mubr.msk.f32.vlgmr.msra.gmra.mrb[42].mxu0 %vm704_vm15, %v7456_v13 }
0x17ac   :  { %6529 = vmatpush3.bf16.msra.mxu0 %v6526_v17  ;;  %6109 = vmatprep.mubr.msk.f32.mxu0 %vm704_vm15, %v7400_v45  ;;  %v5310_v45 = vld [vmem:[%s7612_s5 + $0x6] ss:$0 sm:$0xff] }
0x17ad   :  { %6531 = vmatprep.subr.bf16.mxu0 %v6530_v47 }
0x17b0   :  { %6533 = vmatpush3.bf16.msra.mxu0 %v6530_v47 }
0x17b1   :  { %6542 = vmatprep.subr.bf16.mxu0 %v6723_v23 }
0x17b3   :  { %6110 = vmatmul.mubr.msk.f32.vlgmr.msra.gmra.mrb[44].mxu0 %vm704_vm15, %v7405_v6 }
0x17b4   :  { %6544 = vmatpush3.bf16.msk.msra.mxu0 %vm6997_vm12, %v6725_v11  ;;  %6131 = vmatprep.mubr.msk.f32.mxu0 %vm6724_vm0, %v6721_v14 }
0x17b5   :  { %6545 = vmatprep.subr.bf16.mxu0 %v6723_v23 }
0x17b8   :  { %6547 = vmatpush3.bf16.msk.msra.mxu0 %vm7009_vm13, %v6725_v11 }
0x17b9   :  { %6548 = vmatprep.subr.bf16.mxu0 %v6723_v23 }
0x187e   :  { %v6089_v6 = vpop.f32.mrb[42].mxu0 }
0x187f   :  { %v3979_v26 = vpop.f32.mrb[43].mxu0  ;;  %v3985_v56 = vadd.f32 %v6089_v6, %v5310_v45 }
0x1880   :  { %v3980_v31 = vadd.f32 %v5310_v45, %v3979_v26 }
0x1882   :  { %6121 = vmatmul.mubr.msk.f32.vlgmr.msra.gmra.mrb[40].mxu1 %vm704_vm15, %v3980_v31 }
0x1883   :  { %6557 = vmatpush3.bf16.xpose.msk.msra.mxu1 %vm6951_vm11, %v6555_v49  ;;  %6153 = vmatprep.mubr.msk.f32.mxu1 %vm6724_vm0, %v6721_v14 }
0x1884   :  { %6558 = vmatprep.subr.bf16.mxu1 %v6723_v23 }
0x1886   :  { %v6111_v41 = vpop.f32.mrb[44].mxu0 }
0x1887   :  { %v4159_v48 = vadd.f32 %v6111_v41, %v5316_v33  ;;  %v4153_v20 = vpop.f32.mrb[45].mxu0 }
0x1888   :  { %v4154_v39 = vadd.f32 %v5316_v33, %v4153_v20  ;;  %v4795_v20 = vld [vmem:[#allocation2 + $0x188] sm:$0xff] }
0x1889   :  { %v4414_v51 = vmul.f32 %v4159_v48, %v6932_v28  ;;  %v4415_v32 = vmul.f32 %v4159_v48, %v6937_v29  ;;  %v4416_v9 = vmul.f32 %v4159_v48, %v6958_v42  ;;  %v4417_v10 = vmul.f32 %v4159_v48, %v6963_v44  ;;  %v4794_v48 = vld [vmem:[#allocation2 + $0x180] sm:$0xff] }
0x188a   :  { %v4166_v30 = vmul.f32 %v4154_v39, %v6932_v28  ;;  %v4167_v37 = vmul.f32 %v4154_v39, %v6937_v29  ;;  %v4168_v60 = vmul.f32 %v4154_v39, %v6958_v42  ;;  %v4169_v61 = vmul.f32 %v4154_v39, %v6963_v44  ;;  %v4658_v29 = vld [vmem:[#allocation2 + $0x100] sm:$0xff] }
0x188b   :  { %6561 = vmatpush3.bf16.xpose.msk.msra.mxu1 %vm6951_vm11, %v6559_v1  ;;  %v6569_v27 = vpack.c.bf16 %v4415_v32, %v4414_v51  ;;  %v6572_v28 = vpack.c.bf16 %v4417_v10, %v4416_v9  ;;  %v4796_v1 = vld [vmem:[#allocation2 + $0x190] sm:$0xff] }
0x188c   :  { %v6549_v62 = vpack.c.bf16 %v4167_v37, %v4166_v30  ;;  %v6552_v59 = vpack.c.bf16 %v4169_v61, %v4168_v60 }
0x1892   :  { %6154 = vmatmul.mubr.msk.f32.vlgmr.msra.gmra.mrb[42].mxu1 %vm704_vm15, %v3985_v56  ;;  %v6582_v56 = vpack.c.bf16 %v4795_v20, %v4794_v48 }
0x1955   :  { %v4251_v4 = vpop.f32.mrb[40].mxu1 }
0x1956   :  { %v4255_v18 = vmul.f32 0.35355338, %v4251_v4  ;;  %v6122_v54 = vpop.f32.mrb[41].mxu1  ;;  %v4797_v4 = vld [vmem:[#allocation2 + $0x198] sm:$0xff] }
0x1957   :  { %v4886_v54 = vld [vmem:[#allocation2 + $0x1a0] sm:$0xff] }
0x1958   :  { %v4256_v35 = vsel %vm704_vm15, %v4255_v18, -inf }
0x1959   :  { %4257 = vmax.xlane.f32.xlu1 %v4256_v35  ;;  %v4887_v35 = vld [vmem:[#allocation2 + $0x1a8] sm:$0xff] }
0x1965   :  { %v4499_v50 = vpop.f32.mrb[42].mxu1 }
0x1966   :  { %v4503_v55 = vmul.f32 0.35355338, %v4499_v50  ;;  %v6155_v17 = vpop.f32.mrb[43].mxu1  ;;  %v4888_v50 = vld [vmem:[#allocation2 + $0x1b0] sm:$0xff] }
0x1967   :  { %v4889_v17 = vld [vmem:[#allocation2 + $0x1b8] sm:$0xff] }
0x1968   :  { %v4504_v15 = vsel %vm704_vm15, %v4503_v55, -inf }
0x1969   :  { %4505 = vmax.xlane.f32.xlu0 %v4504_v15  ;;  %v6594_v15 = vpack.c.bf16 %v4889_v17, %v4888_v50 }
0x19e6   :  { %v4258_v34 = vpop.xlane.xlu1 %4257 }
0x19e7   :  { %v4259_v52 = vsub.f32 %v4255_v18, %v4258_v34  ;;  %v6586_v18 = vpack.c.bf16 %v4797_v4, %v4796_v1  ;;  %v4890_v34 = vld [vmem:[#allocation2 + $0x1c0] sm:$0xff] }
0x19e9   :  { %v4260_v40 = vmul.f32 1.442695, %v4259_v52  ;;  %v4891_v52 = vld [vmem:[#allocation2 + $0x1c8] sm:$0xff] }
0x19eb   :  { %6668 = vpow2.f32 %v4260_v40  ;;  %v6598_v40 = vpack.c.bf16 %v4891_v52, %v4890_v34 }
0x19f5   :  { %v6669_v43 = vpop.eup %6668 }
0x19f6   :  { %6132 = vmatmul.mubr.msk.f32.vlgmr.msra.gmra.mrb[46].mxu0 %vm704_vm15, %v6669_v43  ;;  %v4506_v63 = vpop.xlane.xlu0 %4505 }
0x19f7   :  { %6550 = vmatpush3.bf16.msra.mxu0 %v6549_v62  ;;  %6142 = vmatprep.mubr.msk.f32.mxu0 %vm6724_vm0, %v6721_v14  ;;  %v4507_v5 = vsub.f32 %v4503_v55, %v4506_v63  ;;  %v6590_v55 = vpack.c.bf16 %v4887_v35, %v4886_v54 }
0x19f8   :  { %6551 = vmatprep.subr.bf16.mxu0 %v6723_v23 }
0x19f9   :  { %v4508_v46 = vmul.f32 1.442695, %v4507_v5 }
0x19fb   :  { %6553 = vmatpush3.bf16.msra.mxu0 %v6552_v59 }
0x19fc   :  { %6562 = vmatprep.subr.bf16.mxu0 %v6723_v23 }
0x1ac9   :  { %v4331_v0 = vpop.f32.mrb[46].mxu0 }
0x1aca   :  { %6670 = vrcp.f32 %v4331_v0  ;;  %v6133_v3 = vpop.f32.mrb[47].mxu0 }
0x1acb   :  { %6672 = vpow2.f32 %v4508_v46 }
0x1ad4   :  { %v6671_v16 = vpop.eup %6670 }
0x1ad5   :  { %v4336_v7 = vmul.f32 %v6671_v16, %v6669_v43  ;;  %v6673_v8 = vpop.eup %6672 }
0x1ad7   :  { %6143 = vmatmul.mubr.msk.f32.vlgmr.msra.gmra.mrb[48].mxu0 %vm704_vm15, %v4336_v7 }
0x1ad8   :  { %6564 = vmatpush3.bf16.msk.msra.mxu0 %vm6997_vm12, %v6725_v11  ;;  %6164 = vmatprep.mubr.msk.f32.mxu0 %vm6724_vm0, %v6721_v14 }
0x1ad9   :  { %6565 = vmatprep.subr.bf16.mxu0 %v6723_v23 }
0x1adc   :  { %6567 = vmatpush3.bf16.msk.msra.mxu0 %vm7009_vm13, %v6725_v11  ;;  %v4659_v11 = vld [vmem:[#allocation2 + $0x108] sm:$0xff] }
0x1add   :  { %6568 = vmatprep.subr.bf16.mxu0 %v6723_v23  ;;  %v6574_v2 = vpack.c.bf16 %v4659_v11, %v4658_v29  ;;  %v5345_v29 = vld [vmem:[%s7612_s5 + $0x16] ss:$0 sm:$0xff] }
0x1adf   :  { %6165 = vmatmul.mubr.msk.f32.vlgmr.msra.gmra.mrb[50].mxu0 %vm704_vm15, %v6673_v8  ;;  %6575 = vmatprep.subr.bf16.mxu1 %v6574_v2 }
0x1ae0   :  { %6570 = vmatpush3.bf16.msra.mxu0 %v6569_v27  ;;  %6175 = vmatprep.mubr.msk.f32.mxu0 %vm6724_vm0, %v6721_v14  ;;  %vm5162_vm0 = vcmask 7168  }
0x1ae1   :  { %6571 = vmatprep.subr.bf16.mxu0 %v6723_v23  ;;  %6577 = vmatpush3.bf16.msra.mxu1 %v6574_v2 }
0x1ae2   :  { %6579 = vmatprep.subr.bf16.mxu1 %v6578_v21 }
0x1ae4   :  { %6573 = vmatpush3.bf16.msra.mxu0 %v6572_v28 }
0x1ae5   :  { %6581 = vmatpush3.bf16.msra.mxu1 %v6578_v21  ;;  %6583 = vmatprep.subr.bf16.mxu0 %v6582_v56  ;;  %v4893_v21 = vld [vmem:[#allocation2 + $0x1d8] sm:$0xff] }
0x1ae6   :  { %6591 = vmatprep.subr.bf16.mxu1 %v6590_v55 }
0x1baa   :  { %v4406_v42 = vpop.f32.mrb[48].mxu0 }
0x1bab   :  { %v6144_v44 = vpop.f32.mrb[49].mxu0  ;;  %6186 = vmatprep.mubr.msk.f32.mxu1 %vm704_vm15, %v4406_v42  ;;  %v6602_v42 = vpack.c.bf16 %v4893_v21, %v4892_v22 }
0x1bac   :  { %v5346_v44 = vld [vmem:[%s7612_s5 + $0xc] ss:$0 sm:$0xff] }
0x1bb2   :  { %v4579_v24 = vpop.f32.mrb[50].mxu0 }
0x1bb3   :  { %6674 = vrcp.f32 %v4579_v24  ;;  %v6166_v14 = vpop.f32.mrb[51].mxu0 }
0x1bbd   :  { %v6675_v23 = vpop.eup %6674 }
0x1bbe   :  { %v4584_v19 = vmul.f32 %v6675_v23, %v6673_v8  ;;  %v5344_v8 = vld [vmem:[%s7612_s5 + $0x15] ss:$0 sm:$0xff] }
0x1bc0   :  { %6176 = vmatmul.mubr.msk.f32.vlgmr.msra.gmra.mrb[52].mxu0 %vm704_vm15, %v4584_v19 }
0x1bc1   :  { %6585 = vmatpush3.bf16.msra.mxu0 %v6582_v56 }
0x1bc2   :  { %6587 = vmatprep.subr.bf16.mxu0 %v6586_v18 }
0x1bc5   :  { %6589 = vmatpush3.bf16.msra.mxu0 %v6586_v18 }
0x1c93   :  { %v4654_v58 = vpop.f32.mrb[52].mxu0 }
0x1c94   :  { %v6177_v47 = vpop.f32.mrb[53].mxu0  ;;  %6187 = vmatmul.mubr.msk.f32.vlgmr.msra.gmra.mrb[44].mxu1 %vm704_vm15, %v4654_v58 }
0x1c95   :  { %6593 = vmatpush3.bf16.msra.mxu1 %v6590_v55 }
0x1c96   :  { %6595 = vmatprep.subr.bf16.mxu1 %v6594_v15 }
0x1c99   :  { %6597 = vmatpush3.bf16.msra.mxu1 %v6594_v15 }
0x1c9a   :  { %6599 = vmatprep.subr.bf16.mxu1 %v6598_v40 }
0x1c9d   :  { %6601 = vmatpush3.bf16.msra.mxu1 %v6598_v40 }
0x1c9e   :  { %6603 = vmatprep.subr.bf16.mxu1 %v6602_v42 }
0x1ca1   :  { %6605 = vmatpush3.bf16.msra.mxu1 %v6602_v42 }
0x1d67   :  { %v6188_v57 = vpop.f32.mrb[44].mxu1 }
0x1d68   :  { %v4745_v45 = vadd.f32 %v6188_v57, %v5341_v53  ;;  %v4739_v6 = vpop.f32.mrb[45].mxu1 }
0x1d69   :  { %v4740_v26 = vadd.f32 %v5341_v53, %v4739_v6  ;;  %v5349_v53 = vld [vmem:[%s7612_s5 + $0xd] ss:$0 sm:$0xff] }
0x1d6a   :  { %v7537_v31 = vadd.f32 %v4745_v45, %v7456_v13 }
0x1d6b   :  { %v7540_v49 = vadd.f32 %v4740_v26, %v7453_v25 }
0x1d6c   :  { %v4753_v33 = vsel %vm704_vm15, %v7537_v31, 0.0  ;;  %v4759_v36 = vmul.f32 %v7537_v31, %v7537_v31 }
0x1d6d   :  { %4754 = vadd.xlane.f32.xlu0 %v4753_v33  ;;  %v4750_v38 = vsel %vm704_vm15, %v7540_v49, 0.0  ;;  %v4758_v41 = vmul.f32 %v7540_v49, %v7540_v49 }
0x1d6e   :  { %4751 = vadd.xlane.f32.xlu1 %v4750_v38  ;;  %v4763_v13 = vsel %vm704_vm15, %v4759_v36, 0.0 }
0x1d6f   :  { %v4760_v25 = vsel %vm704_vm15, %v4758_v41, 0.0 }
0x1d71   :  { %4764 = vadd.xlane.f32.xlu0 %v4763_v13 }
0x1d72   :  { %4761 = vadd.xlane.f32.xlu1 %v4760_v25 }
0x1dfa   :  { %v4755_v39 = vpop.xlane.xlu0 %4754 }
0x1dfb   :  { %v4757_v30 = vmul.f32 0.03125, %v4755_v39  ;;  %v4752_v37 = vpop.xlane.xlu1 %4751 }
0x1dfc   :  { %v4756_v43 = vmul.f32 0.03125, %v4752_v37  ;;  %v5352_v37 = vld [vmem:[%s7612_s5 + $0x17] ss:$0 sm:$0xff] }
0x1dfd   :  { %v4769_v61 = vmul.f32 %v4757_v30, %v4757_v30  ;;  %v4777_v7 = vsub.f32 %v7537_v31, %v4757_v30 }
0x1dfe   :  { %v4765_v60 = vpop.xlane.xlu0 %4764  ;;  %v4768_v63 = vmul.f32 %v4756_v43, %v4756_v43  ;;  %v4776_v32 = vsub.f32 %v7540_v49, %v4756_v43 }
0x1dff   :  { %v4767_v62 = vmul.f32 0.03125, %v4765_v60  ;;  %v4762_v59 = vpop.xlane.xlu1 %4761 }
0x1e00   :  { %v4766_v0 = vmul.f32 0.03125, %v4762_v59 }
0x1e01   :  { %v4771_v3 = vsub.f32 %v4767_v62, %v4769_v61  ;;  %v5353_v61 = vld [vmem:[%s7612_s5 + $0x18] ss:$0 sm:$0xff] }
0x1e02   :  { %v4770_v5 = vsub.f32 %v4766_v0, %v4768_v63 }
0x1e03   :  { %v4773_v46 = vadd.f32 1e-05, %v4771_v3 }
0x1e04   :  { %v4772_v16 = vadd.f32 1e-05, %v4770_v5 }
0x1e05   :  { %6676 = vrsqrt.f32 %v4773_v46 }
0x1e06   :  { %6678 = vrsqrt.f32 %v4772_v16 }
0x1e0f   :  { %v6677_v51 = vpop.eup %6676 }
0x1e10   :  { %v6679_v9 = vpop.eup %6678  ;;  %v4779_v10 = vmul.f32 %v6677_v51, %v4777_v7 }
0x1e11   :  { %v4778_v27 = vmul.f32 %v6679_v9, %v4776_v32 }
0x1e12   :  { %v4786_v28 = vmul.f32 %v5344_v8, %v4779_v10  ;;  %v5072_v10 = vld [vmem:[#allocation2 + $0x1e0] sm:$0xff] }
0x1e13   :  { %v4785_v11 = vmul.f32 %v5344_v8, %v4778_v27  ;;  %v5073_v27 = vld [vmem:[#allocation2 + $0x1e8] sm:$0xff] }
0x1e14   :  { %v4793_v2 = vadd.f32 %v5345_v29, %v4786_v28  ;;  %v5074_v28 = vld [vmem:[#allocation2 + $0x1f0] sm:$0xff] }
0x1e15   :  { %v7560_v12 = vadd.f32 %v5345_v29, %v4785_v11  ;;  %v6606_v29 = vpack.c.bf16 %v5073_v27, %v5072_v10  ;;  %v5075_v11 = vld [vmem:[#allocation2 + $0x1f8] sm:$0xff] }
0x1e17   :  { %6197 = vmatprep.mubr.msk.f32.mxu0 %vm704_vm15, %v7560_v12  ;;  %6607 = vmatprep.subr.bf16.mxu0 %v6606_v29 }
0x1e18   :  { %6198 = vmatmul.mubr.msk.f32.vlgmr.msra.gmra.mrb[54].mxu0 %vm704_vm15, %v4793_v2 }
0x1e19   :  { %6609 = vmatpush3.bf16.msra.mxu0 %v6606_v29 }
0x1eeb   :  { %v6199_v24 = vpop.f32.mrb[54].mxu0 }
0x1eec   :  { %v4881_v14 = vadd.f32 %v6199_v24, %v5346_v44  ;;  %v4875_v23 = vpop.f32.mrb[55].mxu0 }
0x1eed   :  { %v4876_v19 = vadd.f32 %v5346_v44, %v4875_v23 }
0x1eee   :  { %v4885_v47 = vmax.f32 %v4881_v14, 0.0 }
0x1eef   :  { %v4884_v58 = vmax.f32 %v4876_v19, 0.0 }
0x1ef1   :  { %6216 = vmatprep.mubr.msk.f32.mxu1 %vm1794_vm14, %v4884_v58 }
0x1ef2   :  { %6217 = vmatmul.mubr.msk.f32.vlgmr.msra.gmra.mrb[46].mxu1 %vm1794_vm14, %v4885_v47 }
0x1fc5   :  { %v6218_v57 = vpop.f32.mrb[46].mxu1 }
0x1fc6   :  { %v4977_v45 = vadd.f32 %v6218_v57, %v5349_v53  ;;  %v4971_v6 = vpop.f32.mrb[47].mxu1 }
0x1fc7   :  { %v4972_v26 = vadd.f32 %v5349_v53, %v4971_v6 }
0x1fc8   :  { %v4981_v33 = vadd.f32 %v4977_v45, %v7537_v31 }
0x1fc9   :  { %v4980_v36 = vadd.f32 %v4972_v26, %v7540_v49 }
0x1fca   :  { %v4985_v38 = vsel %vm704_vm15, %v4981_v33, 0.0  ;;  %v4991_v41 = vmul.f32 %v4981_v33, %v4981_v33 }
0x1fcb   :  { %4986 = vadd.xlane.f32.xlu0 %v4985_v38  ;;  %v4982_v13 = vsel %vm704_vm15, %v4980_v36, 0.0  ;;  %v4990_v25 = vmul.f32 %v4980_v36, %v4980_v36 }
0x1fcc   :  { %4983 = vadd.xlane.f32.xlu1 %v4982_v13  ;;  %v4995_v48 = vsel %vm704_vm15, %v4991_v41, 0.0 }
0x1fcd   :  { %v4992_v20 = vsel %vm704_vm15, %v4990_v25, 0.0 }
0x1fcf   :  { %4996 = vadd.xlane.f32.xlu0 %v4995_v48  ;;  %v5355_v48 = vld [vmem:[%s7612_s5 + $0x1a] ss:$0 sm:$0xff] }
0x1fd0   :  { %4993 = vadd.xlane.f32.xlu1 %v4992_v20 }
0x2058   :  { %v4987_v1 = vpop.xlane.xlu0 %4986 }
0x2059   :  { %v4989_v56 = vmul.f32 0.03125, %v4987_v1  ;;  %v4984_v4 = vpop.xlane.xlu1 %4983 }
0x205a   :  { %v4988_v31 = vmul.f32 0.03125, %v4984_v4  ;;  %v5356_v4 = vld [vmem:[%s7612_s5 + $0xe] ss:$0 sm:$0xff] }
0x205b   :  { %v5001_v49 = vmul.f32 %v4989_v56, %v4989_v56  ;;  %v5009_v40 = vsub.f32 %v4981_v33, %v4989_v56 }
0x205c   :  { %v4997_v18 = vpop.xlane.xlu0 %4996  ;;  %v5000_v50 = vmul.f32 %v4988_v31, %v4988_v31  ;;  %v5008_v30 = vsub.f32 %v4980_v36, %v4988_v31  ;;  %v5354_v36 = vld [vmem:[%s7612_s5 + $0x19] ss:$0 sm:$0xff] }
0x205d   :  { %v4999_v54 = vmul.f32 0.03125, %v4997_v18  ;;  %v4994_v35 = vpop.xlane.xlu1 %4993 }
0x205e   :  { %v4998_v55 = vmul.f32 0.03125, %v4994_v35 }
0x205f   :  { %v5003_v17 = vsub.f32 %v4999_v54, %v5001_v49 }
0x2060   :  { %v5002_v15 = vsub.f32 %v4998_v55, %v5000_v50 }
0x2061   :  { %v5005_v34 = vadd.f32 1e-05, %v5003_v17 }
0x2062   :  { %v5004_v52 = vadd.f32 1e-05, %v5002_v15 }
0x2063   :  { %6680 = vrsqrt.f32 %v5005_v34 }
0x2064   :  { %6682 = vrsqrt.f32 %v5004_v52 }
0x206d   :  { %v6681_v39 = vpop.eup %6680 }
0x206e   :  { %v6683_v43 = vpop.eup %6682  ;;  %v5011_v60 = vmul.f32 %v6681_v39, %v5009_v40 }
0x206f   :  { %v5010_v62 = vmul.f32 %v6683_v43, %v5008_v30 }
0x2070   :  { %v5018_v59 = vmul.f32 %v5352_v37, %v5011_v60 }
0x2071   :  { %v5017_v63 = vmul.f32 %v5352_v37, %v5010_v62 }
0x2072   :  { %v5025_v0 = vadd.f32 %v5353_v61, %v5018_v59 }
0x2073   :  { %v5024_v3 = vadd.f32 %v5353_v61, %v5017_v63 }
0x2074   :  { %v5027_v5 = vadd.f32 %v5025_v0, %v4793_v2 }
0x2075   :  { %v5026_v46 = vadd.f32 %v5024_v3, %v7560_v12  ;;  %v6610_v12 = vpack.c.bf16 %v5075_v11, %v5074_v28 }
0x2076   :  { %v5031_v16 = vsel %vm704_vm15, %v5027_v5, 0.0  ;;  %v5037_v7 = vmul.f32 %v5027_v5, %v5027_v5 }
0x2077   :  { %5032 = vadd.xlane.f32.xlu0 %v5031_v16  ;;  %v5028_v51 = vsel %vm704_vm15, %v5026_v46, 0.0  ;;  %v5036_v32 = vmul.f32 %v5026_v46, %v5026_v46  ;;  %6611 = vmatprep.subr.bf16.mxu0 %v6610_v12 }
0x2078   :  { %5029 = vadd.xlane.f32.xlu1 %v5028_v51  ;;  %v5041_v8 = vsel %vm704_vm15, %v5037_v7, 0.0  ;;  %6613 = vmatpush3.bf16.msra.mxu0 %v6610_v12 }
0x2079   :  { %v5038_v9 = vsel %vm704_vm15, %v5036_v32, 0.0 }
0x207b   :  { %5042 = vadd.xlane.f32.xlu0 %v5041_v8 }
0x207c   :  { %5039 = vadd.xlane.f32.xlu1 %v5038_v9 }
0x2104   :  { %v5033_v2 = vpop.xlane.xlu0 %5032 }
0x2105   :  { %v5035_v22 = vmul.f32 0.03125, %v5033_v2  ;;  %v5030_v21 = vpop.xlane.xlu1 %5029 }
0x2106   :  { %v5034_v42 = vmul.f32 0.03125, %v5030_v21 }
0x2107   :  { %v5047_v24 = vmul.f32 %v5035_v22, %v5035_v22  ;;  %v5055_v6 = vsub.f32 %v5027_v5, %v5035_v22 }
0x2108   :  { %v5043_v44 = vpop.xlane.xlu0 %5042  ;;  %v5046_v19 = vmul.f32 %v5034_v42, %v5034_v42  ;;  %v5054_v33 = vsub.f32 %v5026_v46, %v5034_v42 }
0x2109   :  { %v5045_v14 = vmul.f32 0.03125, %v5043_v44  ;;  %v5040_v23 = vpop.xlane.xlu1 %5039 }
0x210a   :  { %v5044_v58 = vmul.f32 0.03125, %v5040_v23 }
0x210b   :  { %v5049_v47 = vsub.f32 %v5045_v14, %v5047_v24 }
0x210c   :  { %v5048_v53 = vsub.f32 %v5044_v58, %v5046_v19 }
0x210d   :  { %v5051_v57 = vadd.f32 1e-05, %v5049_v47 }
0x210e   :  { %v5050_v45 = vadd.f32 1e-05, %v5048_v53 }
0x210f   :  { %6684 = vrsqrt.f32 %v5051_v57 }
0x2110   :  { %6686 = vrsqrt.f32 %v5050_v45 }
0x2119   :  { %v6685_v26 = vpop.eup %6684 }
0x211a   :  { %v6687_v38 = vpop.eup %6686  ;;  %v5057_v41 = vmul.f32 %v6685_v26, %v5055_v6 }
0x211b   :  { %v5056_v13 = vmul.f32 %v6687_v38, %v5054_v33 }
0x211c   :  { %v5064_v25 = vmul.f32 %v5354_v36, %v5057_v41 }
0x211d   :  { %v5063_v20 = vmul.f32 %v5354_v36, %v5056_v13 }
0x211e   :  { %v5071_v56 = vadd.f32 %v5355_v48, %v5064_v25 }
0x211f   :  { %v5070_v1 = vadd.f32 %v5355_v48, %v5063_v20 }
0x2121   :  { %6227 = vmatprep.mubr.msk.f32.mxu0 %vm704_vm15, %v5070_v1 }
0x2122   :  { %6228 = vmatmul.mubr.msk.f32.vlgmr.msra.gmra.mrb[56].mxu0 %vm704_vm15, %v5071_v56 }
0x21f5   :  { %v6229_v31 = vpop.f32.mrb[56].mxu0 }
0x21f6   :  { %v5159_v18 = vadd.f32 %v6229_v31, %v5356_v4  ;;  %v5153_v49 = vpop.f32.mrb[57].mxu0 }
0x21f7   :  { %v5154_v54 = vadd.f32 %v5356_v4, %v5153_v49 }
0x21f8   :  { %5164 = vst.msk [vmem:[%s7613_s6 + $0x8] sm:$0xff] %vm5162_vm0, %v5159_v18 }
0x21f9   :  { %5163 = vst.msk [vmem:[%s7613_s6] sm:$0xff] %vm5162_vm0, %v5154_v54 }
0x21fa   :  { %5169 = vsyncpa [#allocation3], 1 }

</bundles_post_ra>
